<compile_context>
chip_gen: v7x
topology: tpu7x:2x2x1
jax: 0.10.0
libtpu: 0.0.40
codegen_flags: <defaults>
</compile_context>

<pallas_src>
import functools

import jax
import jax.numpy as jnp
from jax import lax
from jax.experimental import pallas as pl
from jax.experimental.pallas import tpu as pltpu

# ---- small synthetic shapes (CLIP RN50 text tower scaled down) ----
B, S, D = 2, 8, 32          # batch, context length, transformer width
H = 4                       # attention heads
HD = D // H                 # head dim
FF = 4 * D                  # MLP hidden
LAYERS = 2                  # transformer layers
VOCAB = 64                  # vocab size for token_embedding
EMBED = 32                  # text_projection output dim
EPS = 1e-5
NEG_INF = -1e30             # only safe while the mask/softmax path stays f32

MM_DTYPE = jnp.bfloat16     # MXU input dtype; accumulation stays f32


def _mm(a, b):
    """Matmul with f32 accumulation; `b` is expected to be pre-cast to MM_DTYPE."""
    return jnp.dot(a.astype(b.dtype), b, preferred_element_type=jnp.float32)


def _ln(x, g, b):
    mu = jnp.mean(x, axis=-1, keepdims=True)
    var = jnp.mean((x - mu) ** 2, axis=-1, keepdims=True)
    return (x - mu) * lax.rsqrt(var + EPS) * g + b


# ------------------- fused full-forward kernel (one prompt per grid step) ---
def _fused_kernel(if_sequence,
                  eot_ref,                                   # SMEM (scalar prefetch)
                  x_ref, pos_ref,
                  ln1g_ref, ln1b_ref, wqkv_ref, bqkv_ref, wo_ref, bo_ref,
                  ln2g_ref, ln2b_ref, wfc_ref, bfc_ref, wpr_ref, bpr_ref,
                  lnfg_ref, lnfb_ref, proj_ref,
                  o_ref,
                  x_sc):
    x = x_ref[...] + pos_ref[...]                               # (S, D) f32

    # causal mask, built once per grid step (hoisted out of the layer loop)
    row = lax.broadcasted_iota(jnp.int32, (S, S), 0)
    col = lax.broadcasted_iota(jnp.int32, (S, S), 1)
    causal = (col > row)[None]                                  # (1, S, S) True=masked

    for l in range(LAYERS):                                     # static unroll
        # ---- pre-LN + head-major fused QKV projection -------------------
        # wqkv is (3H, D, HD) bf16; q-scale pre-folded into the q heads.
        xl = _ln(x, ln1g_ref[l], ln1b_ref[l])
        xb = jnp.broadcast_to(xl.astype(MM_DTYPE)[None], (3 * H, S, D))
        qkv = jnp.einsum('gsd,gdf->gsf', xb, wqkv_ref[l],
                         preferred_element_type=jnp.float32) + bqkv_ref[l]
        qh = qkv[:H]                                            # (H, S, HD) f32
        kh = qkv[H:2 * H]
        vh = qkv[2 * H:]

        # ---- causal multi-head attention (leading-batch einsums) --------
        s = jnp.einsum('hqd,hkd->hqk', qh.astype(MM_DTYPE), kh.astype(MM_DTYPE),
                       preferred_element_type=jnp.float32)      # (H, S, S)
        s = jnp.where(causal, NEG_INF, s)
        p = jax.nn.softmax(s, axis=-1)                          # f32 softmax
        oh = jnp.einsum('hqk,hkd->hqd', p.astype(MM_DTYPE), vh.astype(MM_DTYPE),
                        preferred_element_type=jnp.float32)     # (H, S, HD)
        # per-head output projection, head merge as a leading-axis sum
        attn = jnp.einsum('hsf,hfd->hsd', oh.astype(MM_DTYPE), wo_ref[l],
                          preferred_element_type=jnp.float32)   # (H, S, D)
        x = x + jnp.sum(attn, axis=0) + bo_ref[l]

        # ---- MLP with QuickGELU ------------------------------------------
        xl2 = _ln(x, ln2g_ref[l], ln2b_ref[l])
        h1 = _mm(xl2, wfc_ref[l]) + bfc_ref[l]                  # (S, FF)
        h1 = h1 * jax.nn.sigmoid(1.702 * h1)
        x = x + _mm(h1, wpr_ref[l]) + bpr_ref[l]

    x = _ln(x, lnfg_ref[...], lnfb_ref[...])                    # (S, D)

    if if_sequence:
        o_ref[...] = _mm(x, proj_ref[...])                      # (S, EMBED)
    else:
        # EOT gather: index was argmax'ed in the wrapper, scalar-prefetched to
        # SMEM; one dynamic sublane slice replaces the old one-hot construction.
        x_sc[...] = x
        eot = eot_ref[pl.program_id(0)]
        x_eot = x_sc[pl.ds(eot, 1), :]                          # (1, D)
        o_ref[0] = _mm(x_eot, proj_ref[...])                    # (1, EMBED)


def _weight_spec(shape, pipeline_mode):
    nd = len(shape)
    index_map = lambda b, eot_ref, nd=nd: (0,) * nd             # grid-invariant
    if pipeline_mode is None:
        return pl.BlockSpec(shape, index_map)
    return pl.BlockSpec(shape, index_map, pipeline_mode=pipeline_mode)


def fused_forward(prep, x2d, eot, if_sequence):
    """prep: prepared (head-major, bf16, q-scale folded) params. x2d: (B*S, D) f32."""
    weight_args = (prep['ln1_g'], prep['ln1_b'], prep['w_qkv'], prep['b_qkv'],
                   prep['w_o'], prep['b_o'], prep['ln2_g'], prep['ln2_b'],
                   prep['w_fc'], prep['b_fc'], prep['w_pr'], prep['b_pr'],
                   prep['lnf_g'], prep['lnf_b'], prep['text_projection'])

    if if_sequence:
        out_shape = jax.ShapeDtypeStruct((B * S, EMBED), jnp.float32)
        out_spec = pl.BlockSpec((S, EMBED), lambda b, eot_ref: (b, 0))
    else:
        out_shape = jax.ShapeDtypeStruct((B, 1, EMBED), jnp.float32)
        out_spec = pl.BlockSpec((1, 1, EMBED), lambda b, eot_ref: (b, 0, 0))

    def call(weight_mode):
        in_specs = [
            pl.BlockSpec((S, D), lambda b, eot_ref: (b, 0)),    # embedded prompt
            pl.BlockSpec((S, D), lambda b, eot_ref: (0, 0)),    # positional emb
        ] + [_weight_spec(a.shape, weight_mode) for a in weight_args]
        grid_spec = pltpu.PrefetchScalarGridSpec(
            num_scalar_prefetch=1,
            grid=(B,),
            in_specs=in_specs,
            out_specs=out_spec,
            scratch_shapes=[pltpu.VMEM((S, D), jnp.float32)],   # ln_final slab (EOT slice)
        )
        return pl.pallas_call(
            functools.partial(_fused_kernel, if_sequence),
            grid_spec=grid_spec,
            out_shape=out_shape,
            compiler_params=pltpu.CompilerParams(
                dimension_semantics=("parallel",)),             # v7x: 2 TCs split batch
        )(eot, x2d, prep['pos_emb'], *weight_args)

    try:
        # grid-invariant weights: single pipeline buffer (no dead 2nd buffer)
        out = call(pl.Buffered(buffer_count=1))
    except Exception:
        # pipeline_mode / Buffered(1) not supported on this jax build
        out = call(None)

    if if_sequence:
        return out.reshape(B, S, EMBED)
    return out.reshape(B, EMBED)


# ------------------- parameter prep (one-time, outside the kernel) ----------
def prepare_params(params, mm_dtype=MM_DTYPE):
    """Repack raw params into kernel-friendly layouts.

    * head-major QKV weights (LAYERS, 3H, D, HD), biases (LAYERS, 3H, 1, HD);
      out-projection (LAYERS, H, HD, D) so heads are leading-axis selects.
    * HD**-0.5 query scale folded into BOTH q weights and q bias (exact:
      CLIP / nn.MultiheadAttention scales q AFTER the in-proj bias add).
    * matmul weights cast to `mm_dtype` once (bf16 by default); biases, LN
      params, positional / token embeddings stay f32.
    """
    scale = HD ** -0.5

    w_qkv = params['w_qkv'].reshape(LAYERS, D, 3, H, HD)
    w_qkv = w_qkv.transpose(0, 2, 3, 1, 4).reshape(LAYERS, 3 * H, D, HD)
    w_qkv = w_qkv.at[:, :H].multiply(scale)

    b_qkv = params['b_qkv'].reshape(LAYERS, 1, 3, H, HD)
    b_qkv = b_qkv.transpose(0, 2, 3, 1, 4).reshape(LAYERS, 3 * H, 1, HD)
    b_qkv = b_qkv.at[:, :H].multiply(scale)

    w_o = params['w_o'].reshape(LAYERS, H, HD, D)

    cast = lambda w: w.astype(mm_dtype)
    return dict(
        token_embedding=params['token_embedding'],
        pos_emb=params['pos_emb'],
        ln1_g=params['ln1_g'], ln1_b=params['ln1_b'],
        w_qkv=cast(w_qkv), b_qkv=b_qkv,
        w_o=cast(w_o), b_o=params['b_o'],
        ln2_g=params['ln2_g'], ln2_b=params['ln2_b'],
        w_fc=cast(params['w_fc']), b_fc=params['b_fc'],
        w_pr=cast(params['w_pr']), b_pr=params['b_pr'],
        lnf_g=params['lnf_g'], lnf_b=params['lnf_b'],
        text_projection=cast(params['text_projection']),
    )


# ------------------- full TextEncoder forward -------------------------------
def text_encoder_forward(prep, prompts, tokenized_prompts,
                         if_embedding=True, if_sequence=False):
    if not if_embedding:
        tokenized_prompts = prompts
        # token-embedding lookup is a vocab gather -> kept as JAX glue
        prompts = jnp.take(prep['token_embedding'], prompts, axis=0)
    x2d = prompts.astype(jnp.float32).reshape(B * S, D)
    if tokenized_prompts is None:
        eot = jnp.zeros((B,), jnp.int32)          # unused in sequence mode
    else:
        eot = jnp.argmax(tokenized_prompts, axis=-1).astype(jnp.int32)
    return fused_forward(prep, x2d, eot, if_sequence)


# ------------------- pure-JAX reference (same layouts / dtype policy) -------
def reference_forward(prep, tokens, if_sequence=False):
    mmdt = prep['w_qkv'].dtype
    x = jnp.take(prep['token_embedding'], tokens, axis=0) + prep['pos_emb']
    causal = (jnp.arange(S)[None, :] > jnp.arange(S)[:, None])[None, None]
    for l in range(LAYERS):
        xl = _ln(x, prep['ln1_g'][l], prep['ln1_b'][l])
        qkv = jnp.einsum('bsd,gdf->bgsf', xl.astype(mmdt), prep['w_qkv'][l],
                         preferred_element_type=jnp.float32) + prep['b_qkv'][l]
        q, k, v = qkv[:, :H], qkv[:, H:2 * H], qkv[:, 2 * H:]
        s = jnp.einsum('bhqd,bhkd->bhqk', q.astype(mmdt), k.astype(mmdt),
                       preferred_element_type=jnp.float32)
        s = jnp.where(causal, NEG_INF, s)
        p = jax.nn.softmax(s, axis=-1)
        oh = jnp.einsum('bhqk,bhkd->bhqd', p.astype(mmdt), v.astype(mmdt),
                        preferred_element_type=jnp.float32)
        attn = jnp.einsum('bhsf,hfd->bsd', oh.astype(mmdt), prep['w_o'][l],
                          preferred_element_type=jnp.float32)
        x = x + attn + prep['b_o'][l]
        xl2 = _ln(x, prep['ln2_g'][l], prep['ln2_b'][l])
        h1 = jnp.einsum('bsd,df->bsf', xl2.astype(mmdt), prep['w_fc'][l],
                        preferred_element_type=jnp.float32) + prep['b_fc'][l]
        h1 = h1 * jax.nn.sigmoid(1.702 * h1)
        x = x + jnp.einsum('bsf,fd->bsd', h1.astype(mmdt), prep['w_pr'][l],
                           preferred_element_type=jnp.float32) + prep['b_pr'][l]
    x = _ln(x, prep['lnf_g'], prep['lnf_b'])
    if if_sequence:
        return jnp.einsum('bsd,de->bse', x.astype(mmdt), prep['text_projection'],
                          preferred_element_type=jnp.float32)
    eot = jnp.argmax(tokens, axis=-1)
    x_eot = x[jnp.arange(B), eot]
    return jnp.einsum('bd,de->be', x_eot.astype(mmdt), prep['text_projection'],
                      preferred_element_type=jnp.float32)


# ------------------- deterministic parameter init ---------------------------
def init_params(key):
    ks = iter(jax.random.split(key, 32))
    scale = 0.02

    def rnd(shape):
        return (scale * jax.random.normal(next(ks), shape)).astype(jnp.float32)

    return dict(
        token_embedding=rnd((VOCAB, D)),
        pos_emb=rnd((S, D)),
        ln1_g=jnp.ones((LAYERS, 1, D), jnp.float32),
        ln1_b=jnp.zeros((LAYERS, 1, D), jnp.float32),
        w_qkv=rnd((LAYERS, D, 3 * D)), b_qkv=rnd((LAYERS, 1, 3 * D)),
        w_o=rnd((LAYERS, D, D)), b_o=rnd((LAYERS, 1, D)),
        ln2_g=jnp.ones((LAYERS, 1, D), jnp.float32),
        ln2_b=jnp.zeros((LAYERS, 1, D), jnp.float32),
        w_fc=rnd((LAYERS, D, FF)), b_fc=rnd((LAYERS, 1, FF)),
        w_pr=rnd((LAYERS, FF, D)), b_pr=rnd((LAYERS, 1, D)),
        lnf_g=jnp.ones((1, D), jnp.float32),
        lnf_b=jnp.zeros((1, D), jnp.float32),
        text_projection=rnd((D, EMBED)),
    )


if __name__ == "__main__":
    params = init_params(jax.random.PRNGKey(0))
    prep = prepare_params(params)                       # bf16 matmul weights
    prep_f32 = prepare_params(params, jnp.float32)      # full-f32 fidelity ref

    tokens = jax.random.randint(jax.random.PRNGKey(1), (B, S), 1, VOCAB,
                                dtype=jnp.int32)

    # default usage in the source script: raw token ids, if_embedding=False
    out = text_encoder_forward(prep, tokens, None,
                               if_embedding=False, if_sequence=False)
    out = jax.block_until_ready(out)
    assert out.shape == (B, EMBED), out.shape
    ref = reference_forward(prep, tokens, if_sequence=False)
    assert jnp.allclose(out, ref, rtol=1e-3, atol=1e-3), \
        float(jnp.max(jnp.abs(out - ref)))
    ref32 = reference_forward(prep_f32, tokens, if_sequence=False)
    assert jnp.allclose(out, ref32, rtol=2e-2, atol=2e-2), \
        float(jnp.max(jnp.abs(out - ref32)))

    # if_sequence=True path (per-position projected features)
    seq = text_encoder_forward(prep, tokens, None,
                               if_embedding=False, if_sequence=True)
    seq = jax.block_until_ready(seq)
    assert seq.shape == (B, S, EMBED), seq.shape
    ref_seq = reference_forward(prep, tokens, if_sequence=True)
    assert jnp.allclose(seq, ref_seq, rtol=1e-3, atol=1e-3), \
        float(jnp.max(jnp.abs(seq - ref_seq)))
    ref_seq32 = reference_forward(prep_f32, tokens, if_sequence=True)
    assert jnp.allclose(seq, ref_seq32, rtol=2e-2, atol=2e-2), \
        float(jnp.max(jnp.abs(seq - ref_seq32)))

    print("KERNEL_OK")
</pallas_src>

<mosaic_0001>
module attributes {stable_mosaic.version = 11 : i64} {
  func.func @_fused_kernel(%arg0: i32, %arg1: memref<2xi32, #tpu.memory_space<smem>>, %arg2: memref<8x32xf32, #tpu.memory_space<vmem>>, %arg3: memref<8x32xf32, #tpu.memory_space<vmem>>, %arg4: memref<2x1x32xf32, #tpu.memory_space<vmem>>, %arg5: memref<2x1x32xf32, #tpu.memory_space<vmem>>, %arg6: memref<2x12x32x8xbf16, #tpu.memory_space<vmem>>, %arg7: memref<2x12x1x8xf32, #tpu.memory_space<vmem>>, %arg8: memref<2x4x8x32xbf16, #tpu.memory_space<vmem>>, %arg9: memref<2x1x32xf32, #tpu.memory_space<vmem>>, %arg10: memref<2x1x32xf32, #tpu.memory_space<vmem>>, %arg11: memref<2x1x32xf32, #tpu.memory_space<vmem>>, %arg12: memref<2x32x128xbf16, #tpu.memory_space<vmem>>, %arg13: memref<2x1x128xf32, #tpu.memory_space<vmem>>, %arg14: memref<2x128x32xbf16, #tpu.memory_space<vmem>>, %arg15: memref<2x1x32xf32, #tpu.memory_space<vmem>>, %arg16: memref<1x32xf32, #tpu.memory_space<vmem>>, %arg17: memref<1x32xf32, #tpu.memory_space<vmem>>, %arg18: memref<32x32xbf16, #tpu.memory_space<vmem>>, %arg19: memref<1x1x32xf32, #tpu.memory_space<vmem>>, %arg20: memref<8x32xf32, #tpu.memory_space<vmem>>) attributes {dimension_semantics = [#tpu.dimension_semantics<parallel>], iteration_bounds = array<i64: 2>, scalar_prefetch = 1 : i64, scratch_operands = 1 : i64, tpu.core_type = #tpu.core_type<tc>, window_params = [{transform_indices = @transform_0, window_bounds = array<i64: 8, 32>}, {pipeline_mode = #tpu.pipeline_mode<synchronous>, transform_indices = @transform_1, window_bounds = array<i64: 8, 32>}, {pipeline_mode = #tpu.pipeline_mode<synchronous>, transform_indices = @transform_2, window_bounds = array<i64: 2, 1, 32>}, {pipeline_mode = #tpu.pipeline_mode<synchronous>, transform_indices = @transform_3, window_bounds = array<i64: 2, 1, 32>}, {pipeline_mode = #tpu.pipeline_mode<synchronous>, transform_indices = @transform_4, window_bounds = array<i64: 2, 12, 32, 8>}, {pipeline_mode = #tpu.pipeline_mode<synchronous>, transform_indices = @transform_5, window_bounds = array<i64: 2, 12, 1, 8>}, {pipeline_mode = #tpu.pipeline_mode<synchronous>, transform_indices = @transform_6, window_bounds = array<i64: 2, 4, 8, 32>}, {pipeline_mode = #tpu.pipeline_mode<synchronous>, transform_indices = @transform_7, window_bounds = array<i64: 2, 1, 32>}, {pipeline_mode = #tpu.pipeline_mode<synchronous>, transform_indices = @transform_8, window_bounds = array<i64: 2, 1, 32>}, {pipeline_mode = #tpu.pipeline_mode<synchronous>, transform_indices = @transform_9, window_bounds = array<i64: 2, 1, 32>}, {pipeline_mode = #tpu.pipeline_mode<synchronous>, transform_indices = @transform_10, window_bounds = array<i64: 2, 32, 128>}, {pipeline_mode = #tpu.pipeline_mode<synchronous>, transform_indices = @transform_11, window_bounds = array<i64: 2, 1, 128>}, {pipeline_mode = #tpu.pipeline_mode<synchronous>, transform_indices = @transform_12, window_bounds = array<i64: 2, 128, 32>}, {pipeline_mode = #tpu.pipeline_mode<synchronous>, transform_indices = @transform_13, window_bounds = array<i64: 2, 1, 32>}, {pipeline_mode = #tpu.pipeline_mode<synchronous>, transform_indices = @transform_14, window_bounds = array<i64: 1, 32>}, {pipeline_mode = #tpu.pipeline_mode<synchronous>, transform_indices = @transform_15, window_bounds = array<i64: 1, 32>}, {pipeline_mode = #tpu.pipeline_mode<synchronous>, transform_indices = @transform_16, window_bounds = array<i64: 32, 32>}, {transform_indices = @transform_17, window_bounds = array<i64: 1, 1, 32>}]} {
    %c0 = arith.constant 0 : index
    %c0_0 = arith.constant 0 : index
    %0 = vector.load %arg2[%c0, %c0_0] : memref<8x32xf32, #tpu.memory_space<vmem>>, vector<8x32xf32>
    %c0_1 = arith.constant 0 : index
    %c0_2 = arith.constant 0 : index
    %1 = vector.load %arg3[%c0_1, %c0_2] : memref<8x32xf32, #tpu.memory_space<vmem>>, vector<8x32xf32>
    %2 = arith.addf %0, %1 : vector<8x32xf32>
    %3 = tpu.iota {dimensions = array<i32: 0>} : vector<8x8xi32>
    %4 = tpu.iota {dimensions = array<i32: 1>} : vector<8x8xi32>
    %5 = arith.cmpi sgt, %4, %3 : vector<8x8xi32>
    %6 = vector.shape_cast %5 : vector<8x8xi1> to vector<1x8x8xi1>
    %c0_3 = arith.constant 0 : index
    %c0_4 = arith.constant 0 : index
    %c0_5 = arith.constant 0 : index
    %7 = vector.load %arg4[%c0_3, %c0_4, %c0_5] : memref<2x1x32xf32, #tpu.memory_space<vmem>>, vector<1x1x32xf32>
    %8 = vector.shape_cast %7 : vector<1x1x32xf32> to vector<1x32xf32>
    %c0_6 = arith.constant 0 : index
    %c0_7 = arith.constant 0 : index
    %c0_8 = arith.constant 0 : index
    %9 = vector.load %arg5[%c0_6, %c0_7, %c0_8] : memref<2x1x32xf32, #tpu.memory_space<vmem>>, vector<1x1x32xf32>
    %10 = vector.shape_cast %9 : vector<1x1x32xf32> to vector<1x32xf32>
    %cst = arith.constant dense<0.000000e+00> : vector<8xf32>
    %11 = vector.multi_reduction <add>, %2, %cst [1] : vector<8x32xf32> to vector<8xf32>
    %12 = vector.shape_cast %11 : vector<8xf32> to vector<8x1xf32>
    %cst_9 = arith.constant 3.200000e+01 : f32
    %13 = vector.broadcast %cst_9 : f32 to vector<8x1xf32>
    %14 = arith.divf %12, %13 : vector<8x1xf32>
    %15 = vector.broadcast %14 : vector<8x1xf32> to vector<8x32xf32>
    %16 = arith.subf %2, %15 : vector<8x32xf32>
    %17 = arith.mulf %16, %16 : vector<8x32xf32>
    %cst_10 = arith.constant dense<0.000000e+00> : vector<8xf32>
    %18 = vector.multi_reduction <add>, %17, %cst_10 [1] : vector<8x32xf32> to vector<8xf32>
    %19 = vector.shape_cast %18 : vector<8xf32> to vector<8x1xf32>
    %cst_11 = arith.constant 3.200000e+01 : f32
    %20 = vector.broadcast %cst_11 : f32 to vector<8x1xf32>
    %21 = arith.divf %19, %20 : vector<8x1xf32>
    %22 = vector.broadcast %14 : vector<8x1xf32> to vector<8x32xf32>
    %23 = arith.subf %2, %22 : vector<8x32xf32>
    %cst_12 = arith.constant 9.99999974E-6 : f32
    %24 = vector.broadcast %cst_12 : f32 to vector<8x1xf32>
    %25 = arith.addf %21, %24 : vector<8x1xf32>
    %26 = math.rsqrt %25 : vector<8x1xf32>
    %27 = vector.broadcast %26 : vector<8x1xf32> to vector<8x32xf32>
    %28 = arith.mulf %23, %27 : vector<8x32xf32>
    %29 = vector.broadcast %8 : vector<1x32xf32> to vector<8x32xf32>
    %30 = arith.mulf %28, %29 : vector<8x32xf32>
    %31 = vector.broadcast %10 : vector<1x32xf32> to vector<8x32xf32>
    %32 = arith.addf %30, %31 : vector<8x32xf32>
    %33 = arith.truncf %32 : vector<8x32xf32> to vector<8x32xbf16>
    %34 = vector.shape_cast %33 : vector<8x32xbf16> to vector<1x8x32xbf16>
    %35 = vector.shape_cast %34 : vector<1x8x32xbf16> to vector<1x8x32xbf16>
    %36 = vector.broadcast %35 : vector<1x8x32xbf16> to vector<12x8x32xbf16>
    %c0_13 = arith.constant 0 : index
    %c0_14 = arith.constant 0 : index
    %c0_15 = arith.constant 0 : index
    %c0_16 = arith.constant 0 : index
    %37 = vector.load %arg6[%c0_13, %c0_14, %c0_15, %c0_16] : memref<2x12x32x8xbf16, #tpu.memory_space<vmem>>, vector<1x12x32x8xbf16>
    %38 = vector.shape_cast %37 : vector<1x12x32x8xbf16> to vector<12x32x8xbf16>
    "tpu.trace_start"() <{level = 10 : i32, message = "gsd,gdf->gsf"}> : () -> ()
    %cst_17 = arith.constant dense<0.000000e+00> : vector<12x8x8xf32>
    %39 = tpu.matmul %36, %38, %cst_17 {dimension_numbers = #tpu.dot_dimension_numbers<[2], [1], [1], [2], [0, 0, 0, 1, 1, 2], [0], [0]>} : vector<12x8x32xbf16>, vector<12x32x8xbf16>, vector<12x8x8xf32> -> vector<12x8x8xf32>
    "tpu.trace_stop"() : () -> ()
    %c0_18 = arith.constant 0 : index
    %c0_19 = arith.constant 0 : index
    %c0_20 = arith.constant 0 : index
    %c0_21 = arith.constant 0 : index
    %40 = vector.load %arg7[%c0_18, %c0_19, %c0_20, %c0_21] : memref<2x12x1x8xf32, #tpu.memory_space<vmem>>, vector<1x12x1x8xf32>
    %41 = vector.shape_cast %40 : vector<1x12x1x8xf32> to vector<12x1x8xf32>
    %42 = vector.broadcast %41 : vector<12x1x8xf32> to vector<12x8x8xf32>
    %43 = arith.addf %39, %42 : vector<12x8x8xf32>
    %44 = vector.extract_strided_slice %43 {offsets = [0, 0, 0], sizes = [4, 8, 8], strides = [1, 1, 1]} : vector<12x8x8xf32> to vector<4x8x8xf32>
    %45 = vector.extract_strided_slice %43 {offsets = [4, 0, 0], sizes = [4, 8, 8], strides = [1, 1, 1]} : vector<12x8x8xf32> to vector<4x8x8xf32>
    %46 = vector.extract_strided_slice %43 {offsets = [8, 0, 0], sizes = [4, 8, 8], strides = [1, 1, 1]} : vector<12x8x8xf32> to vector<4x8x8xf32>
    %47 = arith.truncf %44 : vector<4x8x8xf32> to vector<4x8x8xbf16>
    %48 = arith.truncf %45 : vector<4x8x8xf32> to vector<4x8x8xbf16>
    "tpu.trace_start"() <{level = 10 : i32, message = "hqd,hkd->hqk"}> : () -> ()
    %cst_22 = arith.constant dense<0.000000e+00> : vector<4x8x8xf32>
    %49 = tpu.matmul %47, %48, %cst_22 {dimension_numbers = #tpu.dot_dimension_numbers<[2], [2], [1], [1], [0, 0, 0, 1, 1, 1], [0], [0]>} : vector<4x8x8xbf16>, vector<4x8x8xbf16>, vector<4x8x8xf32> -> vector<4x8x8xf32>
    %cst_23 = arith.constant -1.000000e+30 : f32
    "tpu.trace_stop"() : () -> ()
    %50 = vector.shape_cast %6 : vector<1x8x8xi1> to vector<1x8x8xi1>
    %51 = vector.broadcast %50 : vector<1x8x8xi1> to vector<4x8x8xi1>
    %52 = vector.broadcast %cst_23 : f32 to vector<4x8x8xf32>
    %53 = arith.select %51, %52, %49 : vector<4x8x8xi1>, vector<4x8x8xf32>
    %cst_24 = arith.constant dense<0xFF800000> : vector<4x8xf32>
    %54 = vector.multi_reduction <maximumf>, %53, %cst_24 [2] : vector<4x8x8xf32> to vector<4x8xf32>
    %cst_25 = arith.constant 0xFF800000 : f32
    %55 = vector.broadcast %cst_25 : f32 to vector<4x8xf32>
    %56 = arith.maximumf %55, %54 : vector<4x8xf32>
    %57 = vector.shape_cast %56 : vector<4x8xf32> to vector<4x8x1xf32>
    %58 = vector.broadcast %57 : vector<4x8x1xf32> to vector<4x8x8xf32>
    %59 = arith.subf %53, %58 : vector<4x8x8xf32>
    %60 = math.exp %59 : vector<4x8x8xf32>
    %cst_26 = arith.constant dense<0.000000e+00> : vector<4x8xf32>
    %61 = vector.multi_reduction <add>, %60, %cst_26 [2] : vector<4x8x8xf32> to vector<4x8xf32>
    %62 = vector.shape_cast %61 : vector<4x8xf32> to vector<4x8x1xf32>
    %63 = vector.broadcast %62 : vector<4x8x1xf32> to vector<4x8x8xf32>
    %64 = arith.divf %60, %63 : vector<4x8x8xf32>
    %65 = arith.truncf %64 : vector<4x8x8xf32> to vector<4x8x8xbf16>
    %66 = arith.truncf %46 : vector<4x8x8xf32> to vector<4x8x8xbf16>
    "tpu.trace_start"() <{level = 10 : i32, message = "hqk,hkd->hqd"}> : () -> ()
    %cst_27 = arith.constant dense<0.000000e+00> : vector<4x8x8xf32>
    %67 = tpu.matmul %65, %66, %cst_27 {dimension_numbers = #tpu.dot_dimension_numbers<[2], [1], [1], [2], [0, 0, 0, 1, 1, 2], [0], [0]>} : vector<4x8x8xbf16>, vector<4x8x8xbf16>, vector<4x8x8xf32> -> vector<4x8x8xf32>
    "tpu.trace_stop"() : () -> ()
    %68 = arith.truncf %67 : vector<4x8x8xf32> to vector<4x8x8xbf16>
    %c0_28 = arith.constant 0 : index
    %c0_29 = arith.constant 0 : index
    %c0_30 = arith.constant 0 : index
    %c0_31 = arith.constant 0 : index
    %69 = vector.load %arg8[%c0_28, %c0_29, %c0_30, %c0_31] : memref<2x4x8x32xbf16, #tpu.memory_space<vmem>>, vector<1x4x8x32xbf16>
    %70 = vector.shape_cast %69 : vector<1x4x8x32xbf16> to vector<4x8x32xbf16>
    "tpu.trace_start"() <{level = 10 : i32, message = "hsf,hfd->hsd"}> : () -> ()
    %cst_32 = arith.constant dense<0.000000e+00> : vector<4x8x32xf32>
    %71 = tpu.matmul %68, %70, %cst_32 {dimension_numbers = #tpu.dot_dimension_numbers<[2], [1], [1], [2], [0, 0, 0, 1, 1, 2], [0], [0]>} : vector<4x8x8xbf16>, vector<4x8x32xbf16>, vector<4x8x32xf32> -> vector<4x8x32xf32>
    "tpu.trace_stop"() : () -> ()
    %cst_33 = arith.constant dense<0.000000e+00> : vector<8x32xf32>
    %72 = vector.multi_reduction <add>, %71, %cst_33 [0] : vector<4x8x32xf32> to vector<8x32xf32>
    %73 = arith.addf %2, %72 : vector<8x32xf32>
    %c0_34 = arith.constant 0 : index
    %c0_35 = arith.constant 0 : index
    %c0_36 = arith.constant 0 : index
    %74 = vector.load %arg9[%c0_34, %c0_35, %c0_36] : memref<2x1x32xf32, #tpu.memory_space<vmem>>, vector<1x1x32xf32>
    %75 = vector.shape_cast %74 : vector<1x1x32xf32> to vector<1x32xf32>
    %76 = vector.broadcast %75 : vector<1x32xf32> to vector<8x32xf32>
    %77 = arith.addf %73, %76 : vector<8x32xf32>
    %c0_37 = arith.constant 0 : index
    %c0_38 = arith.constant 0 : index
    %c0_39 = arith.constant 0 : index
    %78 = vector.load %arg10[%c0_37, %c0_38, %c0_39] : memref<2x1x32xf32, #tpu.memory_space<vmem>>, vector<1x1x32xf32>
    %79 = vector.shape_cast %78 : vector<1x1x32xf32> to vector<1x32xf32>
    %c0_40 = arith.constant 0 : index
    %c0_41 = arith.constant 0 : index
    %c0_42 = arith.constant 0 : index
    %80 = vector.load %arg11[%c0_40, %c0_41, %c0_42] : memref<2x1x32xf32, #tpu.memory_space<vmem>>, vector<1x1x32xf32>
    %81 = vector.shape_cast %80 : vector<1x1x32xf32> to vector<1x32xf32>
    %cst_43 = arith.constant dense<0.000000e+00> : vector<8xf32>
    %82 = vector.multi_reduction <add>, %77, %cst_43 [1] : vector<8x32xf32> to vector<8xf32>
    %83 = vector.shape_cast %82 : vector<8xf32> to vector<8x1xf32>
    %cst_44 = arith.constant 3.200000e+01 : f32
    %84 = vector.broadcast %cst_44 : f32 to vector<8x1xf32>
    %85 = arith.divf %83, %84 : vector<8x1xf32>
    %86 = vector.broadcast %85 : vector<8x1xf32> to vector<8x32xf32>
    %87 = arith.subf %77, %86 : vector<8x32xf32>
    %88 = arith.mulf %87, %87 : vector<8x32xf32>
    %cst_45 = arith.constant dense<0.000000e+00> : vector<8xf32>
    %89 = vector.multi_reduction <add>, %88, %cst_45 [1] : vector<8x32xf32> to vector<8xf32>
    %90 = vector.shape_cast %89 : vector<8xf32> to vector<8x1xf32>
    %cst_46 = arith.constant 3.200000e+01 : f32
    %91 = vector.broadcast %cst_46 : f32 to vector<8x1xf32>
    %92 = arith.divf %90, %91 : vector<8x1xf32>
    %93 = vector.broadcast %85 : vector<8x1xf32> to vector<8x32xf32>
    %94 = arith.subf %77, %93 : vector<8x32xf32>
    %cst_47 = arith.constant 9.99999974E-6 : f32
    %95 = vector.broadcast %cst_47 : f32 to vector<8x1xf32>
    %96 = arith.addf %92, %95 : vector<8x1xf32>
    %97 = math.rsqrt %96 : vector<8x1xf32>
    %98 = vector.broadcast %97 : vector<8x1xf32> to vector<8x32xf32>
    %99 = arith.mulf %94, %98 : vector<8x32xf32>
    %100 = vector.broadcast %79 : vector<1x32xf32> to vector<8x32xf32>
    %101 = arith.mulf %99, %100 : vector<8x32xf32>
    %102 = vector.broadcast %81 : vector<1x32xf32> to vector<8x32xf32>
    %103 = arith.addf %101, %102 : vector<8x32xf32>
    %c0_48 = arith.constant 0 : index
    %c0_49 = arith.constant 0 : index
    %c0_50 = arith.constant 0 : index
    %104 = vector.load %arg12[%c0_48, %c0_49, %c0_50] : memref<2x32x128xbf16, #tpu.memory_space<vmem>>, vector<1x32x128xbf16>
    %105 = vector.shape_cast %104 : vector<1x32x128xbf16> to vector<32x128xbf16>
    %106 = arith.truncf %103 : vector<8x32xf32> to vector<8x32xbf16>
    %cst_51 = arith.constant dense<0.000000e+00> : vector<8x128xf32>
    %107 = tpu.matmul %106, %105, %cst_51 {dimension_numbers = #tpu.dot_dimension_numbers<[1], [0], [0], [1], [0, 0, 1, 1], [], []>} : vector<8x32xbf16>, vector<32x128xbf16>, vector<8x128xf32> -> vector<8x128xf32>
    %c0_52 = arith.constant 0 : index
    %c0_53 = arith.constant 0 : index
    %c0_54 = arith.constant 0 : index
    %108 = vector.load %arg13[%c0_52, %c0_53, %c0_54] : memref<2x1x128xf32, #tpu.memory_space<vmem>>, vector<1x1x128xf32>
    %109 = vector.shape_cast %108 : vector<1x1x128xf32> to vector<1x128xf32>
    %110 = vector.broadcast %109 : vector<1x128xf32> to vector<8x128xf32>
    %111 = arith.addf %107, %110 : vector<8x128xf32>
    %cst_55 = arith.constant 1.702000e+00 : f32
    %112 = vector.broadcast %cst_55 : f32 to vector<8x128xf32>
    %113 = arith.mulf %112, %111 : vector<8x128xf32>
    %114 = arith.negf %113 : vector<8x128xf32>
    %115 = math.exp %114 : vector<8x128xf32>
    %cst_56 = arith.constant 1.000000e+00 : f32
    %116 = vector.broadcast %cst_56 : f32 to vector<8x128xf32>
    %117 = arith.addf %116, %115 : vector<8x128xf32>
    %118 = arith.divf %116, %117 : vector<8x128xf32>
    %119 = arith.mulf %111, %118 : vector<8x128xf32>
    %c0_57 = arith.constant 0 : index
    %c0_58 = arith.constant 0 : index
    %c0_59 = arith.constant 0 : index
    %120 = vector.load %arg14[%c0_57, %c0_58, %c0_59] : memref<2x128x32xbf16, #tpu.memory_space<vmem>>, vector<1x128x32xbf16>
    %121 = vector.shape_cast %120 : vector<1x128x32xbf16> to vector<128x32xbf16>
    %122 = arith.truncf %119 : vector<8x128xf32> to vector<8x128xbf16>
    %cst_60 = arith.constant dense<0.000000e+00> : vector<8x32xf32>
    %123 = tpu.matmul %122, %121, %cst_60 {dimension_numbers = #tpu.dot_dimension_numbers<[1], [0], [0], [1], [0, 0, 1, 1], [], []>} : vector<8x128xbf16>, vector<128x32xbf16>, vector<8x32xf32> -> vector<8x32xf32>
    %124 = arith.addf %77, %123 : vector<8x32xf32>
    %c0_61 = arith.constant 0 : index
    %c0_62 = arith.constant 0 : index
    %c0_63 = arith.constant 0 : index
    %125 = vector.load %arg15[%c0_61, %c0_62, %c0_63] : memref<2x1x32xf32, #tpu.memory_space<vmem>>, vector<1x1x32xf32>
    %126 = vector.shape_cast %125 : vector<1x1x32xf32> to vector<1x32xf32>
    %127 = vector.broadcast %126 : vector<1x32xf32> to vector<8x32xf32>
    %128 = arith.addf %124, %127 : vector<8x32xf32>
    %c1 = arith.constant 1 : index
    %c0_64 = arith.constant 0 : index
    %c0_65 = arith.constant 0 : index
    %129 = vector.load %arg4[%c1, %c0_64, %c0_65] : memref<2x1x32xf32, #tpu.memory_space<vmem>>, vector<1x1x32xf32>
    %130 = vector.shape_cast %129 : vector<1x1x32xf32> to vector<1x32xf32>
    %c1_66 = arith.constant 1 : index
    %c0_67 = arith.constant 0 : index
    %c0_68 = arith.constant 0 : index
    %131 = vector.load %arg5[%c1_66, %c0_67, %c0_68] : memref<2x1x32xf32, #tpu.memory_space<vmem>>, vector<1x1x32xf32>
    %132 = vector.shape_cast %131 : vector<1x1x32xf32> to vector<1x32xf32>
    %cst_69 = arith.constant dense<0.000000e+00> : vector<8xf32>
    %133 = vector.multi_reduction <add>, %128, %cst_69 [1] : vector<8x32xf32> to vector<8xf32>
    %134 = vector.shape_cast %133 : vector<8xf32> to vector<8x1xf32>
    %cst_70 = arith.constant 3.200000e+01 : f32
    %135 = vector.broadcast %cst_70 : f32 to vector<8x1xf32>
    %136 = arith.divf %134, %135 : vector<8x1xf32>
    %137 = vector.broadcast %136 : vector<8x1xf32> to vector<8x32xf32>
    %138 = arith.subf %128, %137 : vector<8x32xf32>
    %139 = arith.mulf %138, %138 : vector<8x32xf32>
    %cst_71 = arith.constant dense<0.000000e+00> : vector<8xf32>
    %140 = vector.multi_reduction <add>, %139, %cst_71 [1] : vector<8x32xf32> to vector<8xf32>
    %141 = vector.shape_cast %140 : vector<8xf32> to vector<8x1xf32>
    %cst_72 = arith.constant 3.200000e+01 : f32
    %142 = vector.broadcast %cst_72 : f32 to vector<8x1xf32>
    %143 = arith.divf %141, %142 : vector<8x1xf32>
    %144 = vector.broadcast %136 : vector<8x1xf32> to vector<8x32xf32>
    %145 = arith.subf %128, %144 : vector<8x32xf32>
    %cst_73 = arith.constant 9.99999974E-6 : f32
    %146 = vector.broadcast %cst_73 : f32 to vector<8x1xf32>
    %147 = arith.addf %143, %146 : vector<8x1xf32>
    %148 = math.rsqrt %147 : vector<8x1xf32>
    %149 = vector.broadcast %148 : vector<8x1xf32> to vector<8x32xf32>
    %150 = arith.mulf %145, %149 : vector<8x32xf32>
    %151 = vector.broadcast %130 : vector<1x32xf32> to vector<8x32xf32>
    %152 = arith.mulf %150, %151 : vector<8x32xf32>
    %153 = vector.broadcast %132 : vector<1x32xf32> to vector<8x32xf32>
    %154 = arith.addf %152, %153 : vector<8x32xf32>
    %155 = arith.truncf %154 : vector<8x32xf32> to vector<8x32xbf16>
    %156 = vector.shape_cast %155 : vector<8x32xbf16> to vector<1x8x32xbf16>
    %157 = vector.shape_cast %156 : vector<1x8x32xbf16> to vector<1x8x32xbf16>
    %158 = vector.broadcast %157 : vector<1x8x32xbf16> to vector<12x8x32xbf16>
    %c1_74 = arith.constant 1 : index
    %c0_75 = arith.constant 0 : index
    %c0_76 = arith.constant 0 : index
    %c0_77 = arith.constant 0 : index
    %159 = vector.load %arg6[%c1_74, %c0_75, %c0_76, %c0_77] : memref<2x12x32x8xbf16, #tpu.memory_space<vmem>>, vector<1x12x32x8xbf16>
    %160 = vector.shape_cast %159 : vector<1x12x32x8xbf16> to vector<12x32x8xbf16>
    "tpu.trace_start"() <{level = 10 : i32, message = "gsd,gdf->gsf"}> : () -> ()
    %cst_78 = arith.constant dense<0.000000e+00> : vector<12x8x8xf32>
    %161 = tpu.matmul %158, %160, %cst_78 {dimension_numbers = #tpu.dot_dimension_numbers<[2], [1], [1], [2], [0, 0, 0, 1, 1, 2], [0], [0]>} : vector<12x8x32xbf16>, vector<12x32x8xbf16>, vector<12x8x8xf32> -> vector<12x8x8xf32>
    "tpu.trace_stop"() : () -> ()
    %c1_79 = arith.constant 1 : index
    %c0_80 = arith.constant 0 : index
    %c0_81 = arith.constant 0 : index
    %c0_82 = arith.constant 0 : index
    %162 = vector.load %arg7[%c1_79, %c0_80, %c0_81, %c0_82] : memref<2x12x1x8xf32, #tpu.memory_space<vmem>>, vector<1x12x1x8xf32>
    %163 = vector.shape_cast %162 : vector<1x12x1x8xf32> to vector<12x1x8xf32>
    %164 = vector.broadcast %163 : vector<12x1x8xf32> to vector<12x8x8xf32>
    %165 = arith.addf %161, %164 : vector<12x8x8xf32>
    %166 = vector.extract_strided_slice %165 {offsets = [0, 0, 0], sizes = [4, 8, 8], strides = [1, 1, 1]} : vector<12x8x8xf32> to vector<4x8x8xf32>
    %167 = vector.extract_strided_slice %165 {offsets = [4, 0, 0], sizes = [4, 8, 8], strides = [1, 1, 1]} : vector<12x8x8xf32> to vector<4x8x8xf32>
    %168 = vector.extract_strided_slice %165 {offsets = [8, 0, 0], sizes = [4, 8, 8], strides = [1, 1, 1]} : vector<12x8x8xf32> to vector<4x8x8xf32>
    %169 = arith.truncf %166 : vector<4x8x8xf32> to vector<4x8x8xbf16>
    %170 = arith.truncf %167 : vector<4x8x8xf32> to vector<4x8x8xbf16>
    "tpu.trace_start"() <{level = 10 : i32, message = "hqd,hkd->hqk"}> : () -> ()
    %cst_83 = arith.constant dense<0.000000e+00> : vector<4x8x8xf32>
    %171 = tpu.matmul %169, %170, %cst_83 {dimension_numbers = #tpu.dot_dimension_numbers<[2], [2], [1], [1], [0, 0, 0, 1, 1, 1], [0], [0]>} : vector<4x8x8xbf16>, vector<4x8x8xbf16>, vector<4x8x8xf32> -> vector<4x8x8xf32>
    %cst_84 = arith.constant -1.000000e+30 : f32
    "tpu.trace_stop"() : () -> ()
    %172 = vector.shape_cast %6 : vector<1x8x8xi1> to vector<1x8x8xi1>
    %173 = vector.broadcast %172 : vector<1x8x8xi1> to vector<4x8x8xi1>
    %174 = vector.broadcast %cst_84 : f32 to vector<4x8x8xf32>
    %175 = arith.select %173, %174, %171 : vector<4x8x8xi1>, vector<4x8x8xf32>
    %cst_85 = arith.constant dense<0xFF800000> : vector<4x8xf32>
    %176 = vector.multi_reduction <maximumf>, %175, %cst_85 [2] : vector<4x8x8xf32> to vector<4x8xf32>
    %cst_86 = arith.constant 0xFF800000 : f32
    %177 = vector.broadcast %cst_86 : f32 to vector<4x8xf32>
    %178 = arith.maximumf %177, %176 : vector<4x8xf32>
    %179 = vector.shape_cast %178 : vector<4x8xf32> to vector<4x8x1xf32>
    %180 = vector.broadcast %179 : vector<4x8x1xf32> to vector<4x8x8xf32>
    %181 = arith.subf %175, %180 : vector<4x8x8xf32>
    %182 = math.exp %181 : vector<4x8x8xf32>
    %cst_87 = arith.constant dense<0.000000e+00> : vector<4x8xf32>
    %183 = vector.multi_reduction <add>, %182, %cst_87 [2] : vector<4x8x8xf32> to vector<4x8xf32>
    %184 = vector.shape_cast %183 : vector<4x8xf32> to vector<4x8x1xf32>
    %185 = vector.broadcast %184 : vector<4x8x1xf32> to vector<4x8x8xf32>
    %186 = arith.divf %182, %185 : vector<4x8x8xf32>
    %187 = arith.truncf %186 : vector<4x8x8xf32> to vector<4x8x8xbf16>
    %188 = arith.truncf %168 : vector<4x8x8xf32> to vector<4x8x8xbf16>
    "tpu.trace_start"() <{level = 10 : i32, message = "hqk,hkd->hqd"}> : () -> ()
    %cst_88 = arith.constant dense<0.000000e+00> : vector<4x8x8xf32>
    %189 = tpu.matmul %187, %188, %cst_88 {dimension_numbers = #tpu.dot_dimension_numbers<[2], [1], [1], [2], [0, 0, 0, 1, 1, 2], [0], [0]>} : vector<4x8x8xbf16>, vector<4x8x8xbf16>, vector<4x8x8xf32> -> vector<4x8x8xf32>
    "tpu.trace_stop"() : () -> ()
    %190 = arith.truncf %189 : vector<4x8x8xf32> to vector<4x8x8xbf16>
    %c1_89 = arith.constant 1 : index
    %c0_90 = arith.constant 0 : index
    %c0_91 = arith.constant 0 : index
    %c0_92 = arith.constant 0 : index
    %191 = vector.load %arg8[%c1_89, %c0_90, %c0_91, %c0_92] : memref<2x4x8x32xbf16, #tpu.memory_space<vmem>>, vector<1x4x8x32xbf16>
    %192 = vector.shape_cast %191 : vector<1x4x8x32xbf16> to vector<4x8x32xbf16>
    "tpu.trace_start"() <{level = 10 : i32, message = "hsf,hfd->hsd"}> : () -> ()
    %cst_93 = arith.constant dense<0.000000e+00> : vector<4x8x32xf32>
    %193 = tpu.matmul %190, %192, %cst_93 {dimension_numbers = #tpu.dot_dimension_numbers<[2], [1], [1], [2], [0, 0, 0, 1, 1, 2], [0], [0]>} : vector<4x8x8xbf16>, vector<4x8x32xbf16>, vector<4x8x32xf32> -> vector<4x8x32xf32>
    "tpu.trace_stop"() : () -> ()
    %cst_94 = arith.constant dense<0.000000e+00> : vector<8x32xf32>
    %194 = vector.multi_reduction <add>, %193, %cst_94 [0] : vector<4x8x32xf32> to vector<8x32xf32>
    %195 = arith.addf %128, %194 : vector<8x32xf32>
    %c1_95 = arith.constant 1 : index
    %c0_96 = arith.constant 0 : index
    %c0_97 = arith.constant 0 : index
    %196 = vector.load %arg9[%c1_95, %c0_96, %c0_97] : memref<2x1x32xf32, #tpu.memory_space<vmem>>, vector<1x1x32xf32>
    %197 = vector.shape_cast %196 : vector<1x1x32xf32> to vector<1x32xf32>
    %198 = vector.broadcast %197 : vector<1x32xf32> to vector<8x32xf32>
    %199 = arith.addf %195, %198 : vector<8x32xf32>
    %c1_98 = arith.constant 1 : index
    %c0_99 = arith.constant 0 : index
    %c0_100 = arith.constant 0 : index
    %200 = vector.load %arg10[%c1_98, %c0_99, %c0_100] : memref<2x1x32xf32, #tpu.memory_space<vmem>>, vector<1x1x32xf32>
    %201 = vector.shape_cast %200 : vector<1x1x32xf32> to vector<1x32xf32>
    %c1_101 = arith.constant 1 : index
    %c0_102 = arith.constant 0 : index
    %c0_103 = arith.constant 0 : index
    %202 = vector.load %arg11[%c1_101, %c0_102, %c0_103] : memref<2x1x32xf32, #tpu.memory_space<vmem>>, vector<1x1x32xf32>
    %203 = vector.shape_cast %202 : vector<1x1x32xf32> to vector<1x32xf32>
    %cst_104 = arith.constant dense<0.000000e+00> : vector<8xf32>
    %204 = vector.multi_reduction <add>, %199, %cst_104 [1] : vector<8x32xf32> to vector<8xf32>
    %205 = vector.shape_cast %204 : vector<8xf32> to vector<8x1xf32>
    %cst_105 = arith.constant 3.200000e+01 : f32
    %206 = vector.broadcast %cst_105 : f32 to vector<8x1xf32>
    %207 = arith.divf %205, %206 : vector<8x1xf32>
    %208 = vector.broadcast %207 : vector<8x1xf32> to vector<8x32xf32>
    %209 = arith.subf %199, %208 : vector<8x32xf32>
    %210 = arith.mulf %209, %209 : vector<8x32xf32>
    %cst_106 = arith.constant dense<0.000000e+00> : vector<8xf32>
    %211 = vector.multi_reduction <add>, %210, %cst_106 [1] : vector<8x32xf32> to vector<8xf32>
    %212 = vector.shape_cast %211 : vector<8xf32> to vector<8x1xf32>
    %cst_107 = arith.constant 3.200000e+01 : f32
    %213 = vector.broadcast %cst_107 : f32 to vector<8x1xf32>
    %214 = arith.divf %212, %213 : vector<8x1xf32>
    %215 = vector.broadcast %207 : vector<8x1xf32> to vector<8x32xf32>
    %216 = arith.subf %199, %215 : vector<8x32xf32>
    %cst_108 = arith.constant 9.99999974E-6 : f32
    %217 = vector.broadcast %cst_108 : f32 to vector<8x1xf32>
    %218 = arith.addf %214, %217 : vector<8x1xf32>
    %219 = math.rsqrt %218 : vector<8x1xf32>
    %220 = vector.broadcast %219 : vector<8x1xf32> to vector<8x32xf32>
    %221 = arith.mulf %216, %220 : vector<8x32xf32>
    %222 = vector.broadcast %201 : vector<1x32xf32> to vector<8x32xf32>
    %223 = arith.mulf %221, %222 : vector<8x32xf32>
    %224 = vector.broadcast %203 : vector<1x32xf32> to vector<8x32xf32>
    %225 = arith.addf %223, %224 : vector<8x32xf32>
    %c1_109 = arith.constant 1 : index
    %c0_110 = arith.constant 0 : index
    %c0_111 = arith.constant 0 : index
    %226 = vector.load %arg12[%c1_109, %c0_110, %c0_111] : memref<2x32x128xbf16, #tpu.memory_space<vmem>>, vector<1x32x128xbf16>
    %227 = vector.shape_cast %226 : vector<1x32x128xbf16> to vector<32x128xbf16>
    %228 = arith.truncf %225 : vector<8x32xf32> to vector<8x32xbf16>
    %cst_112 = arith.constant dense<0.000000e+00> : vector<8x128xf32>
    %229 = tpu.matmul %228, %227, %cst_112 {dimension_numbers = #tpu.dot_dimension_numbers<[1], [0], [0], [1], [0, 0, 1, 1], [], []>} : vector<8x32xbf16>, vector<32x128xbf16>, vector<8x128xf32> -> vector<8x128xf32>
    %c1_113 = arith.constant 1 : index
    %c0_114 = arith.constant 0 : index
    %c0_115 = arith.constant 0 : index
    %230 = vector.load %arg13[%c1_113, %c0_114, %c0_115] : memref<2x1x128xf32, #tpu.memory_space<vmem>>, vector<1x1x128xf32>
    %231 = vector.shape_cast %230 : vector<1x1x128xf32> to vector<1x128xf32>
    %232 = vector.broadcast %231 : vector<1x128xf32> to vector<8x128xf32>
    %233 = arith.addf %229, %232 : vector<8x128xf32>
    %cst_116 = arith.constant 1.702000e+00 : f32
    %234 = vector.broadcast %cst_116 : f32 to vector<8x128xf32>
    %235 = arith.mulf %234, %233 : vector<8x128xf32>
    %236 = arith.negf %235 : vector<8x128xf32>
    %237 = math.exp %236 : vector<8x128xf32>
    %cst_117 = arith.constant 1.000000e+00 : f32
    %238 = vector.broadcast %cst_117 : f32 to vector<8x128xf32>
    %239 = arith.addf %238, %237 : vector<8x128xf32>
    %240 = arith.divf %238, %239 : vector<8x128xf32>
    %241 = arith.mulf %233, %240 : vector<8x128xf32>
    %c1_118 = arith.constant 1 : index
    %c0_119 = arith.constant 0 : index
    %c0_120 = arith.constant 0 : index
    %242 = vector.load %arg14[%c1_118, %c0_119, %c0_120] : memref<2x128x32xbf16, #tpu.memory_space<vmem>>, vector<1x128x32xbf16>
    %243 = vector.shape_cast %242 : vector<1x128x32xbf16> to vector<128x32xbf16>
    %244 = arith.truncf %241 : vector<8x128xf32> to vector<8x128xbf16>
    %cst_121 = arith.constant dense<0.000000e+00> : vector<8x32xf32>
    %245 = tpu.matmul %244, %243, %cst_121 {dimension_numbers = #tpu.dot_dimension_numbers<[1], [0], [0], [1], [0, 0, 1, 1], [], []>} : vector<8x128xbf16>, vector<128x32xbf16>, vector<8x32xf32> -> vector<8x32xf32>
    %246 = arith.addf %199, %245 : vector<8x32xf32>
    %c1_122 = arith.constant 1 : index
    %c0_123 = arith.constant 0 : index
    %c0_124 = arith.constant 0 : index
    %247 = vector.load %arg15[%c1_122, %c0_123, %c0_124] : memref<2x1x32xf32, #tpu.memory_space<vmem>>, vector<1x1x32xf32>
    %248 = vector.shape_cast %247 : vector<1x1x32xf32> to vector<1x32xf32>
    %249 = vector.broadcast %248 : vector<1x32xf32> to vector<8x32xf32>
    %250 = arith.addf %246, %249 : vector<8x32xf32>
    %c0_125 = arith.constant 0 : index
    %c0_126 = arith.constant 0 : index
    %251 = vector.load %arg16[%c0_125, %c0_126] : memref<1x32xf32, #tpu.memory_space<vmem>>, vector<1x32xf32>
    %c0_127 = arith.constant 0 : index
    %c0_128 = arith.constant 0 : index
    %252 = vector.load %arg17[%c0_127, %c0_128] : memref<1x32xf32, #tpu.memory_space<vmem>>, vector<1x32xf32>
    %cst_129 = arith.constant dense<0.000000e+00> : vector<8xf32>
    %253 = vector.multi_reduction <add>, %250, %cst_129 [1] : vector<8x32xf32> to vector<8xf32>
    %254 = vector.shape_cast %253 : vector<8xf32> to vector<8x1xf32>
    %cst_130 = arith.constant 3.200000e+01 : f32
    %255 = vector.broadcast %cst_130 : f32 to vector<8x1xf32>
    %256 = arith.divf %254, %255 : vector<8x1xf32>
    %257 = vector.broadcast %256 : vector<8x1xf32> to vector<8x32xf32>
    %258 = arith.subf %250, %257 : vector<8x32xf32>
    %259 = arith.mulf %258, %258 : vector<8x32xf32>
    %cst_131 = arith.constant dense<0.000000e+00> : vector<8xf32>
    %260 = vector.multi_reduction <add>, %259, %cst_131 [1] : vector<8x32xf32> to vector<8xf32>
    %261 = vector.shape_cast %260 : vector<8xf32> to vector<8x1xf32>
    %cst_132 = arith.constant 3.200000e+01 : f32
    %262 = vector.broadcast %cst_132 : f32 to vector<8x1xf32>
    %263 = arith.divf %261, %262 : vector<8x1xf32>
    %264 = vector.broadcast %256 : vector<8x1xf32> to vector<8x32xf32>
    %265 = arith.subf %250, %264 : vector<8x32xf32>
    %cst_133 = arith.constant 9.99999974E-6 : f32
    %266 = vector.broadcast %cst_133 : f32 to vector<8x1xf32>
    %267 = arith.addf %263, %266 : vector<8x1xf32>
    %268 = math.rsqrt %267 : vector<8x1xf32>
    %269 = vector.broadcast %268 : vector<8x1xf32> to vector<8x32xf32>
    %270 = arith.mulf %265, %269 : vector<8x32xf32>
    %271 = vector.broadcast %251 : vector<1x32xf32> to vector<8x32xf32>
    %272 = arith.mulf %270, %271 : vector<8x32xf32>
    %273 = vector.broadcast %252 : vector<1x32xf32> to vector<8x32xf32>
    %274 = arith.addf %272, %273 : vector<8x32xf32>
    %c0_134 = arith.constant 0 : index
    %c0_135 = arith.constant 0 : index
    %275 = vector.load %arg20[%c0_134, %c0_135] : memref<8x32xf32, #tpu.memory_space<vmem>>, vector<8x32xf32>
    tpu.vector_store %arg20[%c0_134, %c0_135], %274 {strides = array<i32>} : memref<8x32xf32, #tpu.memory_space<vmem>>, vector<8x32xf32>,
    %276 = arith.index_cast %arg0 : i32 to index
    %277 = memref.load %arg1[%276] : memref<2xi32, #tpu.memory_space<smem>>
    %278 = arith.index_cast %277 : i32 to index
    %c0_136 = arith.constant 0 : index
    %279 = vector.load %arg20[%278, %c0_136] : memref<8x32xf32, #tpu.memory_space<vmem>>, vector<1x32xf32>
    %c0_137 = arith.constant 0 : index
    %c0_138 = arith.constant 0 : index
    %280 = vector.load %arg18[%c0_137, %c0_138] : memref<32x32xbf16, #tpu.memory_space<vmem>>, vector<32x32xbf16>
    %281 = arith.truncf %279 : vector<1x32xf32> to vector<1x32xbf16>
    %cst_139 = arith.constant dense<0.000000e+00> : vector<1x32xf32>
    %282 = tpu.matmul %281, %280, %cst_139 {dimension_numbers = #tpu.dot_dimension_numbers<[1], [0], [0], [1], [0, 0, 1, 1], [], []>} : vector<1x32xbf16>, vector<32x32xbf16>, vector<1x32xf32> -> vector<1x32xf32>
    %c0_140 = arith.constant 0 : index
    %c0_141 = arith.constant 0 : index
    %c0_142 = arith.constant 0 : index
    %283 = vector.load %arg19[%c0_140, %c0_141, %c0_142] : memref<1x1x32xf32, #tpu.memory_space<vmem>>, vector<1x1x32xf32>
    %284 = vector.shape_cast %283 : vector<1x1x32xf32> to vector<1x32xf32>
    %285 = vector.shape_cast %282 : vector<1x32xf32> to vector<1x1x32xf32>
    tpu.vector_store %arg19[%c0_140, %c0_141, %c0_142], %285 {strides = array<i32>} : memref<1x1x32xf32, #tpu.memory_space<vmem>>, vector<1x1x32xf32>,
    return
  }
  func.func @transform_0(%arg0: i32, %arg1: memref<2xi32, #tpu.memory_space<smem>>) -> (i32, i32) {
    %c0_i32 = arith.constant 0 : i32
    %c0_i32_0 = arith.constant 0 : i32
    return %arg0, %c0_i32 : i32, i32
  }
  func.func @transform_1(%arg0: i32, %arg1: memref<2xi32, #tpu.memory_space<smem>>) -> (i32, i32) {
    %c0_i32 = arith.constant 0 : i32
    %c0_i32_0 = arith.constant 0 : i32
    %c0_i32_1 = arith.constant 0 : i32
    return %c0_i32, %c0_i32_0 : i32, i32
  }
  func.func @transform_2(%arg0: i32, %arg1: memref<2xi32, #tpu.memory_space<smem>>) -> (i32, i32, i32) {
    %c0_i32 = arith.constant 0 : i32
    %c0_i32_0 = arith.constant 0 : i32
    %c0_i32_1 = arith.constant 0 : i32
    %c0_i32_2 = arith.constant 0 : i32
    return %c0_i32, %c0_i32_0, %c0_i32_1 : i32, i32, i32
  }
  func.func @transform_3(%arg0: i32, %arg1: memref<2xi32, #tpu.memory_space<smem>>) -> (i32, i32, i32) {
    %c0_i32 = arith.constant 0 : i32
    %c0_i32_0 = arith.constant 0 : i32
    %c0_i32_1 = arith.constant 0 : i32
    %c0_i32_2 = arith.constant 0 : i32
    return %c0_i32, %c0_i32_0, %c0_i32_1 : i32, i32, i32
  }
  func.func @transform_4(%arg0: i32, %arg1: memref<2xi32, #tpu.memory_space<smem>>) -> (i32, i32, i32, i32) {
    %c0_i32 = arith.constant 0 : i32
    %c0_i32_0 = arith.constant 0 : i32
    %c0_i32_1 = arith.constant 0 : i32
    %c0_i32_2 = arith.constant 0 : i32
    %c0_i32_3 = arith.constant 0 : i32
    return %c0_i32, %c0_i32_0, %c0_i32_1, %c0_i32_2 : i32, i32, i32, i32
  }
  func.func @transform_5(%arg0: i32, %arg1: memref<2xi32, #tpu.memory_space<smem>>) -> (i32, i32, i32, i32) {
    %c0_i32 = arith.constant 0 : i32
    %c0_i32_0 = arith.constant 0 : i32
    %c0_i32_1 = arith.constant 0 : i32
    %c0_i32_2 = arith.constant 0 : i32
    %c0_i32_3 = arith.constant 0 : i32
    return %c0_i32, %c0_i32_0, %c0_i32_1, %c0_i32_2 : i32, i32, i32, i32
  }
  func.func @transform_6(%arg0: i32, %arg1: memref<2xi32, #tpu.memory_space<smem>>) -> (i32, i32, i32, i32) {
    %c0_i32 = arith.constant 0 : i32
    %c0_i32_0 = arith.constant 0 : i32
    %c0_i32_1 = arith.constant 0 : i32
    %c0_i32_2 = arith.constant 0 : i32
    %c0_i32_3 = arith.constant 0 : i32
    return %c0_i32, %c0_i32_0, %c0_i32_1, %c0_i32_2 : i32, i32, i32, i32
  }
  func.func @transform_7(%arg0: i32, %arg1: memref<2xi32, #tpu.memory_space<smem>>) -> (i32, i32, i32) {
    %c0_i32 = arith.constant 0 : i32
    %c0_i32_0 = arith.constant 0 : i32
    %c0_i32_1 = arith.constant 0 : i32
    %c0_i32_2 = arith.constant 0 : i32
    return %c0_i32, %c0_i32_0, %c0_i32_1 : i32, i32, i32
  }
  func.func @transform_8(%arg0: i32, %arg1: memref<2xi32, #tpu.memory_space<smem>>) -> (i32, i32, i32) {
    %c0_i32 = arith.constant 0 : i32
    %c0_i32_0 = arith.constant 0 : i32
    %c0_i32_1 = arith.constant 0 : i32
    %c0_i32_2 = arith.constant 0 : i32
    return %c0_i32, %c0_i32_0, %c0_i32_1 : i32, i32, i32
  }
  func.func @transform_9(%arg0: i32, %arg1: memref<2xi32, #tpu.memory_space<smem>>) -> (i32, i32, i32) {
    %c0_i32 = arith.constant 0 : i32
    %c0_i32_0 = arith.constant 0 : i32
    %c0_i32_1 = arith.constant 0 : i32
    %c0_i32_2 = arith.constant 0 : i32
    return %c0_i32, %c0_i32_0, %c0_i32_1 : i32, i32, i32
  }
  func.func @transform_10(%arg0: i32, %arg1: memref<2xi32, #tpu.memory_space<smem>>) -> (i32, i32, i32) {
    %c0_i32 = arith.constant 0 : i32
    %c0_i32_0 = arith.constant 0 : i32
    %c0_i32_1 = arith.constant 0 : i32
    %c0_i32_2 = arith.constant 0 : i32
    return %c0_i32, %c0_i32_0, %c0_i32_1 : i32, i32, i32
  }
  func.func @transform_11(%arg0: i32, %arg1: memref<2xi32, #tpu.memory_space<smem>>) -> (i32, i32, i32) {
    %c0_i32 = arith.constant 0 : i32
    %c0_i32_0 = arith.constant 0 : i32
    %c0_i32_1 = arith.constant 0 : i32
    %c0_i32_2 = arith.constant 0 : i32
    return %c0_i32, %c0_i32_0, %c0_i32_1 : i32, i32, i32
  }
  func.func @transform_12(%arg0: i32, %arg1: memref<2xi32, #tpu.memory_space<smem>>) -> (i32, i32, i32) {
    %c0_i32 = arith.constant 0 : i32
    %c0_i32_0 = arith.constant 0 : i32
    %c0_i32_1 = arith.constant 0 : i32
    %c0_i32_2 = arith.constant 0 : i32
    return %c0_i32, %c0_i32_0, %c0_i32_1 : i32, i32, i32
  }
  func.func @transform_13(%arg0: i32, %arg1: memref<2xi32, #tpu.memory_space<smem>>) -> (i32, i32, i32) {
    %c0_i32 = arith.constant 0 : i32
    %c0_i32_0 = arith.constant 0 : i32
    %c0_i32_1 = arith.constant 0 : i32
    %c0_i32_2 = arith.constant 0 : i32
    return %c0_i32, %c0_i32_0, %c0_i32_1 : i32, i32, i32
  }
  func.func @transform_14(%arg0: i32, %arg1: memref<2xi32, #tpu.memory_space<smem>>) -> (i32, i32) {
    %c0_i32 = arith.constant 0 : i32
    %c0_i32_0 = arith.constant 0 : i32
    %c0_i32_1 = arith.constant 0 : i32
    return %c0_i32, %c0_i32_0 : i32, i32
  }
  func.func @transform_15(%arg0: i32, %arg1: memref<2xi32, #tpu.memory_space<smem>>) -> (i32, i32) {
    %c0_i32 = arith.constant 0 : i32
    %c0_i32_0 = arith.constant 0 : i32
    %c0_i32_1 = arith.constant 0 : i32
    return %c0_i32, %c0_i32_0 : i32, i32
  }
  func.func @transform_16(%arg0: i32, %arg1: memref<2xi32, #tpu.memory_space<smem>>) -> (i32, i32) {
    %c0_i32 = arith.constant 0 : i32
    %c0_i32_0 = arith.constant 0 : i32
    %c0_i32_1 = arith.constant 0 : i32
    return %c0_i32, %c0_i32_0 : i32, i32
  }
  func.func @transform_17(%arg0: i32, %arg1: memref<2xi32, #tpu.memory_space<smem>>) -> (i32, i32, i32) {
    %c0_i32 = arith.constant 0 : i32
    %c0_i32_0 = arith.constant 0 : i32
    %c0_i32_1 = arith.constant 0 : i32
    return %arg0, %c0_i32, %c0_i32_0 : i32, i32, i32
  }
}

module attributes {stable_mosaic.version = 11 : i64} {
  func.func @_fused_kernel(%arg0: i32, %arg1: memref<2xi32, #tpu.memory_space<smem>>, %arg2: memref<8x32xf32, #tpu.memory_space<vmem>>, %arg3: memref<8x32xf32, #tpu.memory_space<vmem>>, %arg4: memref<2x1x32xf32, #tpu.memory_space<vmem>>, %arg5: memref<2x1x32xf32, #tpu.memory_space<vmem>>, %arg6: memref<2x12x32x8xbf16, #tpu.memory_space<vmem>>, %arg7: memref<2x12x1x8xf32, #tpu.memory_space<vmem>>, %arg8: memref<2x4x8x32xbf16, #tpu.memory_space<vmem>>, %arg9: memref<2x1x32xf32, #tpu.memory_space<vmem>>, %arg10: memref<2x1x32xf32, #tpu.memory_space<vmem>>, %arg11: memref<2x1x32xf32, #tpu.memory_space<vmem>>, %arg12: memref<2x32x128xbf16, #tpu.memory_space<vmem>>, %arg13: memref<2x1x128xf32, #tpu.memory_space<vmem>>, %arg14: memref<2x128x32xbf16, #tpu.memory_space<vmem>>, %arg15: memref<2x1x32xf32, #tpu.memory_space<vmem>>, %arg16: memref<1x32xf32, #tpu.memory_space<vmem>>, %arg17: memref<1x32xf32, #tpu.memory_space<vmem>>, %arg18: memref<32x32xbf16, #tpu.memory_space<vmem>>, %arg19: memref<1x1x32xf32, #tpu.memory_space<vmem>>, %arg20: memref<8x32xf32, #tpu.memory_space<vmem>>) attributes {dimension_semantics = [#tpu.dimension_semantics<parallel>], iteration_bounds = array<i64: 2>, scalar_prefetch = 1 : i64, scratch_operands = 1 : i64, tpu.core_type = #tpu.core_type<tc>, window_params = [{transform_indices = @transform_0, window_bounds = array<i64: 8, 32>}, {pipeline_mode = #tpu.pipeline_mode<synchronous>, transform_indices = @transform_1, window_bounds = array<i64: 8, 32>}, {pipeline_mode = #tpu.pipeline_mode<synchronous>, transform_indices = @transform_2, window_bounds = array<i64: 2, 1, 32>}, {pipeline_mode = #tpu.pipeline_mode<synchronous>, transform_indices = @transform_3, window_bounds = array<i64: 2, 1, 32>}, {pipeline_mode = #tpu.pipeline_mode<synchronous>, transform_indices = @transform_4, window_bounds = array<i64: 2, 12, 32, 8>}, {pipeline_mode = #tpu.pipeline_mode<synchronous>, transform_indices = @transform_5, window_bounds = array<i64: 2, 12, 1, 8>}, {pipeline_mode = #tpu.pipeline_mode<synchronous>, transform_indices = @transform_6, window_bounds = array<i64: 2, 4, 8, 32>}, {pipeline_mode = #tpu.pipeline_mode<synchronous>, transform_indices = @transform_7, window_bounds = array<i64: 2, 1, 32>}, {pipeline_mode = #tpu.pipeline_mode<synchronous>, transform_indices = @transform_8, window_bounds = array<i64: 2, 1, 32>}, {pipeline_mode = #tpu.pipeline_mode<synchronous>, transform_indices = @transform_9, window_bounds = array<i64: 2, 1, 32>}, {pipeline_mode = #tpu.pipeline_mode<synchronous>, transform_indices = @transform_10, window_bounds = array<i64: 2, 32, 128>}, {pipeline_mode = #tpu.pipeline_mode<synchronous>, transform_indices = @transform_11, window_bounds = array<i64: 2, 1, 128>}, {pipeline_mode = #tpu.pipeline_mode<synchronous>, transform_indices = @transform_12, window_bounds = array<i64: 2, 128, 32>}, {pipeline_mode = #tpu.pipeline_mode<synchronous>, transform_indices = @transform_13, window_bounds = array<i64: 2, 1, 32>}, {pipeline_mode = #tpu.pipeline_mode<synchronous>, transform_indices = @transform_14, window_bounds = array<i64: 1, 32>}, {pipeline_mode = #tpu.pipeline_mode<synchronous>, transform_indices = @transform_15, window_bounds = array<i64: 1, 32>}, {pipeline_mode = #tpu.pipeline_mode<synchronous>, transform_indices = @transform_16, window_bounds = array<i64: 32, 32>}, {transform_indices = @transform_17, window_bounds = array<i64: 1, 1, 32>}]} {
    %c0 = arith.constant 0 : index
    %c0_0 = arith.constant 0 : index
    %0 = vector.load %arg2[%c0, %c0_0] : memref<8x32xf32, #tpu.memory_space<vmem>>, vector<8x32xf32>
    %c0_1 = arith.constant 0 : index
    %c0_2 = arith.constant 0 : index
    %1 = vector.load %arg3[%c0_1, %c0_2] : memref<8x32xf32, #tpu.memory_space<vmem>>, vector<8x32xf32>
    %2 = arith.addf %0, %1 : vector<8x32xf32>
    %3 = tpu.iota {dimensions = array<i32: 0>} : vector<8x8xi32>
    %4 = tpu.iota {dimensions = array<i32: 1>} : vector<8x8xi32>
    %5 = arith.cmpi sgt, %4, %3 : vector<8x8xi32>
    %6 = vector.shape_cast %5 : vector<8x8xi1> to vector<1x8x8xi1>
    %c0_3 = arith.constant 0 : index
    %c0_4 = arith.constant 0 : index
    %c0_5 = arith.constant 0 : index
    %7 = vector.load %arg4[%c0_3, %c0_4, %c0_5] : memref<2x1x32xf32, #tpu.memory_space<vmem>>, vector<1x1x32xf32>
    %8 = vector.shape_cast %7 : vector<1x1x32xf32> to vector<1x32xf32>
    %c0_6 = arith.constant 0 : index
    %c0_7 = arith.constant 0 : index
    %c0_8 = arith.constant 0 : index
    %9 = vector.load %arg5[%c0_6, %c0_7, %c0_8] : memref<2x1x32xf32, #tpu.memory_space<vmem>>, vector<1x1x32xf32>
    %10 = vector.shape_cast %9 : vector<1x1x32xf32> to vector<1x32xf32>
    %cst = arith.constant dense<0.000000e+00> : vector<8xf32>
    %11 = vector.multi_reduction <add>, %2, %cst [1] : vector<8x32xf32> to vector<8xf32>
    %12 = vector.shape_cast %11 : vector<8xf32> to vector<8x1xf32>
    %cst_9 = arith.constant 3.200000e+01 : f32
    %13 = vector.broadcast %cst_9 : f32 to vector<8x1xf32>
    %14 = arith.divf %12, %13 : vector<8x1xf32>
    %15 = vector.broadcast %14 : vector<8x1xf32> to vector<8x32xf32>
    %16 = arith.subf %2, %15 : vector<8x32xf32>
    %17 = arith.mulf %16, %16 : vector<8x32xf32>
    %cst_10 = arith.constant dense<0.000000e+00> : vector<8xf32>
    %18 = vector.multi_reduction <add>, %17, %cst_10 [1] : vector<8x32xf32> to vector<8xf32>
    %19 = vector.shape_cast %18 : vector<8xf32> to vector<8x1xf32>
    %cst_11 = arith.constant 3.200000e+01 : f32
    %20 = vector.broadcast %cst_11 : f32 to vector<8x1xf32>
    %21 = arith.divf %19, %20 : vector<8x1xf32>
    %22 = vector.broadcast %14 : vector<8x1xf32> to vector<8x32xf32>
    %23 = arith.subf %2, %22 : vector<8x32xf32>
    %cst_12 = arith.constant 9.99999974E-6 : f32
    %24 = vector.broadcast %cst_12 : f32 to vector<8x1xf32>
    %25 = arith.addf %21, %24 : vector<8x1xf32>
    %26 = math.rsqrt %25 : vector<8x1xf32>
    %27 = vector.broadcast %26 : vector<8x1xf32> to vector<8x32xf32>
    %28 = arith.mulf %23, %27 : vector<8x32xf32>
    %29 = vector.broadcast %8 : vector<1x32xf32> to vector<8x32xf32>
    %30 = arith.mulf %28, %29 : vector<8x32xf32>
    %31 = vector.broadcast %10 : vector<1x32xf32> to vector<8x32xf32>
    %32 = arith.addf %30, %31 : vector<8x32xf32>
    %33 = arith.truncf %32 : vector<8x32xf32> to vector<8x32xbf16>
    %34 = vector.shape_cast %33 : vector<8x32xbf16> to vector<1x8x32xbf16>
    %35 = vector.shape_cast %34 : vector<1x8x32xbf16> to vector<1x8x32xbf16>
    %36 = vector.broadcast %35 : vector<1x8x32xbf16> to vector<12x8x32xbf16>
    %c0_13 = arith.constant 0 : index
    %c0_14 = arith.constant 0 : index
    %c0_15 = arith.constant 0 : index
    %c0_16 = arith.constant 0 : index
    %37 = vector.load %arg6[%c0_13, %c0_14, %c0_15, %c0_16] : memref<2x12x32x8xbf16, #tpu.memory_space<vmem>>, vector<1x12x32x8xbf16>
    %38 = vector.shape_cast %37 : vector<1x12x32x8xbf16> to vector<12x32x8xbf16>
    "tpu.trace_start"() <{level = 10 : i32, message = "gsd,gdf->gsf"}> : () -> ()
    %cst_17 = arith.constant dense<0.000000e+00> : vector<12x8x8xf32>
    %39 = tpu.matmul %36, %38, %cst_17 {dimension_numbers = #tpu.dot_dimension_numbers<[2], [1], [1], [2], [0, 0, 0, 1, 1, 2], [0], [0]>} : vector<12x8x32xbf16>, vector<12x32x8xbf16>, vector<12x8x8xf32> -> vector<12x8x8xf32>
    "tpu.trace_stop"() : () -> ()
    %c0_18 = arith.constant 0 : index
    %c0_19 = arith.constant 0 : index
    %c0_20 = arith.constant 0 : index
    %c0_21 = arith.constant 0 : index
    %40 = vector.load %arg7[%c0_18, %c0_19, %c0_20, %c0_21] : memref<2x12x1x8xf32, #tpu.memory_space<vmem>>, vector<1x12x1x8xf32>
    %41 = vector.shape_cast %40 : vector<1x12x1x8xf32> to vector<12x1x8xf32>
    %42 = vector.broadcast %41 : vector<12x1x8xf32> to vector<12x8x8xf32>
    %43 = arith.addf %39, %42 : vector<12x8x8xf32>
    %44 = vector.extract_strided_slice %43 {offsets = [0, 0, 0], sizes = [4, 8, 8], strides = [1, 1, 1]} : vector<12x8x8xf32> to vector<4x8x8xf32>
    %45 = vector.extract_strided_slice %43 {offsets = [4, 0, 0], sizes = [4, 8, 8], strides = [1, 1, 1]} : vector<12x8x8xf32> to vector<4x8x8xf32>
    %46 = vector.extract_strided_slice %43 {offsets = [8, 0, 0], sizes = [4, 8, 8], strides = [1, 1, 1]} : vector<12x8x8xf32> to vector<4x8x8xf32>
    %47 = arith.truncf %44 : vector<4x8x8xf32> to vector<4x8x8xbf16>
    %48 = arith.truncf %45 : vector<4x8x8xf32> to vector<4x8x8xbf16>
    "tpu.trace_start"() <{level = 10 : i32, message = "hqd,hkd->hqk"}> : () -> ()
    %cst_22 = arith.constant dense<0.000000e+00> : vector<4x8x8xf32>
    %49 = tpu.matmul %47, %48, %cst_22 {dimension_numbers = #tpu.dot_dimension_numbers<[2], [2], [1], [1], [0, 0, 0, 1, 1, 1], [0], [0]>} : vector<4x8x8xbf16>, vector<4x8x8xbf16>, vector<4x8x8xf32> -> vector<4x8x8xf32>
    %cst_23 = arith.constant -1.000000e+30 : f32
    "tpu.trace_stop"() : () -> ()
    %50 = vector.shape_cast %6 : vector<1x8x8xi1> to vector<1x8x8xi1>
    %51 = vector.broadcast %50 : vector<1x8x8xi1> to vector<4x8x8xi1>
    %52 = vector.broadcast %cst_23 : f32 to vector<4x8x8xf32>
    %53 = arith.select %51, %52, %49 : vector<4x8x8xi1>, vector<4x8x8xf32>
    %cst_24 = arith.constant dense<0xFF800000> : vector<4x8xf32>
    %54 = vector.multi_reduction <maximumf>, %53, %cst_24 [2] : vector<4x8x8xf32> to vector<4x8xf32>
    %cst_25 = arith.constant 0xFF800000 : f32
    %55 = vector.broadcast %cst_25 : f32 to vector<4x8xf32>
    %56 = arith.maximumf %55, %54 : vector<4x8xf32>
    %57 = vector.shape_cast %56 : vector<4x8xf32> to vector<4x8x1xf32>
    %58 = vector.broadcast %57 : vector<4x8x1xf32> to vector<4x8x8xf32>
    %59 = arith.subf %53, %58 : vector<4x8x8xf32>
    %60 = math.exp %59 : vector<4x8x8xf32>
    %cst_26 = arith.constant dense<0.000000e+00> : vector<4x8xf32>
    %61 = vector.multi_reduction <add>, %60, %cst_26 [2] : vector<4x8x8xf32> to vector<4x8xf32>
    %62 = vector.shape_cast %61 : vector<4x8xf32> to vector<4x8x1xf32>
    %63 = vector.broadcast %62 : vector<4x8x1xf32> to vector<4x8x8xf32>
    %64 = arith.divf %60, %63 : vector<4x8x8xf32>
    %65 = arith.truncf %64 : vector<4x8x8xf32> to vector<4x8x8xbf16>
    %66 = arith.truncf %46 : vector<4x8x8xf32> to vector<4x8x8xbf16>
    "tpu.trace_start"() <{level = 10 : i32, message = "hqk,hkd->hqd"}> : () -> ()
    %cst_27 = arith.constant dense<0.000000e+00> : vector<4x8x8xf32>
    %67 = tpu.matmul %65, %66, %cst_27 {dimension_numbers = #tpu.dot_dimension_numbers<[2], [1], [1], [2], [0, 0, 0, 1, 1, 2], [0], [0]>} : vector<4x8x8xbf16>, vector<4x8x8xbf16>, vector<4x8x8xf32> -> vector<4x8x8xf32>
    "tpu.trace_stop"() : () -> ()
    %68 = arith.truncf %67 : vector<4x8x8xf32> to vector<4x8x8xbf16>
    %c0_28 = arith.constant 0 : index
    %c0_29 = arith.constant 0 : index
    %c0_30 = arith.constant 0 : index
    %c0_31 = arith.constant 0 : index
    %69 = vector.load %arg8[%c0_28, %c0_29, %c0_30, %c0_31] : memref<2x4x8x32xbf16, #tpu.memory_space<vmem>>, vector<1x4x8x32xbf16>
    %70 = vector.shape_cast %69 : vector<1x4x8x32xbf16> to vector<4x8x32xbf16>
    "tpu.trace_start"() <{level = 10 : i32, message = "hsf,hfd->hsd"}> : () -> ()
    %cst_32 = arith.constant dense<0.000000e+00> : vector<4x8x32xf32>
    %71 = tpu.matmul %68, %70, %cst_32 {dimension_numbers = #tpu.dot_dimension_numbers<[2], [1], [1], [2], [0, 0, 0, 1, 1, 2], [0], [0]>} : vector<4x8x8xbf16>, vector<4x8x32xbf16>, vector<4x8x32xf32> -> vector<4x8x32xf32>
    "tpu.trace_stop"() : () -> ()
    %cst_33 = arith.constant dense<0.000000e+00> : vector<8x32xf32>
    %72 = vector.multi_reduction <add>, %71, %cst_33 [0] : vector<4x8x32xf32> to vector<8x32xf32>
    %73 = arith.addf %2, %72 : vector<8x32xf32>
    %c0_34 = arith.constant 0 : index
    %c0_35 = arith.constant 0 : index
    %c0_36 = arith.constant 0 : index
    %74 = vector.load %arg9[%c0_34, %c0_35, %c0_36] : memref<2x1x32xf32, #tpu.memory_space<vmem>>, vector<1x1x32xf32>
    %75 = vector.shape_cast %74 : vector<1x1x32xf32> to vector<1x32xf32>
    %76 = vector.broadcast %75 : vector<1x32xf32> to vector<8x32xf32>
    %77 = arith.addf %73, %76 : vector<8x32xf32>
    %c0_37 = arith.constant 0 : index
    %c0_38 = arith.constant 0 : index
    %c0_39 = arith.constant 0 : index
    %78 = vector.load %arg10[%c0_37, %c0_38, %c0_39] : memref<2x1x32xf32, #tpu.memory_space<vmem>>, vector<1x1x32xf32>
    %79 = vector.shape_cast %78 : vector<1x1x32xf32> to vector<1x32xf32>
    %c0_40 = arith.constant 0 : index
    %c0_41 = arith.constant 0 : index
    %c0_42 = arith.constant 0 : index
    %80 = vector.load %arg11[%c0_40, %c0_41, %c0_42] : memref<2x1x32xf32, #tpu.memory_space<vmem>>, vector<1x1x32xf32>
    %81 = vector.shape_cast %80 : vector<1x1x32xf32> to vector<1x32xf32>
    %cst_43 = arith.constant dense<0.000000e+00> : vector<8xf32>
    %82 = vector.multi_reduction <add>, %77, %cst_43 [1] : vector<8x32xf32> to vector<8xf32>
    %83 = vector.shape_cast %82 : vector<8xf32> to vector<8x1xf32>
    %cst_44 = arith.constant 3.200000e+01 : f32
    %84 = vector.broadcast %cst_44 : f32 to vector<8x1xf32>
    %85 = arith.divf %83, %84 : vector<8x1xf32>
    %86 = vector.broadcast %85 : vector<8x1xf32> to vector<8x32xf32>
    %87 = arith.subf %77, %86 : vector<8x32xf32>
    %88 = arith.mulf %87, %87 : vector<8x32xf32>
    %cst_45 = arith.constant dense<0.000000e+00> : vector<8xf32>
    %89 = vector.multi_reduction <add>, %88, %cst_45 [1] : vector<8x32xf32> to vector<8xf32>
    %90 = vector.shape_cast %89 : vector<8xf32> to vector<8x1xf32>
    %cst_46 = arith.constant 3.200000e+01 : f32
    %91 = vector.broadcast %cst_46 : f32 to vector<8x1xf32>
    %92 = arith.divf %90, %91 : vector<8x1xf32>
    %93 = vector.broadcast %85 : vector<8x1xf32> to vector<8x32xf32>
    %94 = arith.subf %77, %93 : vector<8x32xf32>
    %cst_47 = arith.constant 9.99999974E-6 : f32
    %95 = vector.broadcast %cst_47 : f32 to vector<8x1xf32>
    %96 = arith.addf %92, %95 : vector<8x1xf32>
    %97 = math.rsqrt %96 : vector<8x1xf32>
    %98 = vector.broadcast %97 : vector<8x1xf32> to vector<8x32xf32>
    %99 = arith.mulf %94, %98 : vector<8x32xf32>
    %100 = vector.broadcast %79 : vector<1x32xf32> to vector<8x32xf32>
    %101 = arith.mulf %99, %100 : vector<8x32xf32>
    %102 = vector.broadcast %81 : vector<1x32xf32> to vector<8x32xf32>
    %103 = arith.addf %101, %102 : vector<8x32xf32>
    %c0_48 = arith.constant 0 : index
    %c0_49 = arith.constant 0 : index
    %c0_50 = arith.constant 0 : index
    %104 = vector.load %arg12[%c0_48, %c0_49, %c0_50] : memref<2x32x128xbf16, #tpu.memory_space<vmem>>, vector<1x32x128xbf16>
    %105 = vector.shape_cast %104 : vector<1x32x128xbf16> to vector<32x128xbf16>
    %106 = arith.truncf %103 : vector<8x32xf32> to vector<8x32xbf16>
    %cst_51 = arith.constant dense<0.000000e+00> : vector<8x128xf32>
    %107 = tpu.matmul %106, %105, %cst_51 {dimension_numbers = #tpu.dot_dimension_numbers<[1], [0], [0], [1], [0, 0, 1, 1], [], []>} : vector<8x32xbf16>, vector<32x128xbf16>, vector<8x128xf32> -> vector<8x128xf32>
    %c0_52 = arith.constant 0 : index
    %c0_53 = arith.constant 0 : index
    %c0_54 = arith.constant 0 : index
    %108 = vector.load %arg13[%c0_52, %c0_53, %c0_54] : memref<2x1x128xf32, #tpu.memory_space<vmem>>, vector<1x1x128xf32>
    %109 = vector.shape_cast %108 : vector<1x1x128xf32> to vector<1x128xf32>
    %110 = vector.broadcast %109 : vector<1x128xf32> to vector<8x128xf32>
    %111 = arith.addf %107, %110 : vector<8x128xf32>
    %cst_55 = arith.constant 1.702000e+00 : f32
    %112 = vector.broadcast %cst_55 : f32 to vector<8x128xf32>
    %113 = arith.mulf %112, %111 : vector<8x128xf32>
    %114 = arith.negf %113 : vector<8x128xf32>
    %115 = math.exp %114 : vector<8x128xf32>
    %cst_56 = arith.constant 1.000000e+00 : f32
    %116 = vector.broadcast %cst_56 : f32 to vector<8x128xf32>
    %117 = arith.addf %116, %115 : vector<8x128xf32>
    %118 = arith.divf %116, %117 : vector<8x128xf32>
    %119 = arith.mulf %111, %118 : vector<8x128xf32>
    %c0_57 = arith.constant 0 : index
    %c0_58 = arith.constant 0 : index
    %c0_59 = arith.constant 0 : index
    %120 = vector.load %arg14[%c0_57, %c0_58, %c0_59] : memref<2x128x32xbf16, #tpu.memory_space<vmem>>, vector<1x128x32xbf16>
    %121 = vector.shape_cast %120 : vector<1x128x32xbf16> to vector<128x32xbf16>
    %122 = arith.truncf %119 : vector<8x128xf32> to vector<8x128xbf16>
    %cst_60 = arith.constant dense<0.000000e+00> : vector<8x32xf32>
    %123 = tpu.matmul %122, %121, %cst_60 {dimension_numbers = #tpu.dot_dimension_numbers<[1], [0], [0], [1], [0, 0, 1, 1], [], []>} : vector<8x128xbf16>, vector<128x32xbf16>, vector<8x32xf32> -> vector<8x32xf32>
    %124 = arith.addf %77, %123 : vector<8x32xf32>
    %c0_61 = arith.constant 0 : index
    %c0_62 = arith.constant 0 : index
    %c0_63 = arith.constant 0 : index
    %125 = vector.load %arg15[%c0_61, %c0_62, %c0_63] : memref<2x1x32xf32, #tpu.memory_space<vmem>>, vector<1x1x32xf32>
    %126 = vector.shape_cast %125 : vector<1x1x32xf32> to vector<1x32xf32>
    %127 = vector.broadcast %126 : vector<1x32xf32> to vector<8x32xf32>
    %128 = arith.addf %124, %127 : vector<8x32xf32>
    %c1 = arith.constant 1 : index
    %c0_64 = arith.constant 0 : index
    %c0_65 = arith.constant 0 : index
    %129 = vector.load %arg4[%c1, %c0_64, %c0_65] : memref<2x1x32xf32, #tpu.memory_space<vmem>>, vector<1x1x32xf32>
    %130 = vector.shape_cast %129 : vector<1x1x32xf32> to vector<1x32xf32>
    %c1_66 = arith.constant 1 : index
    %c0_67 = arith.constant 0 : index
    %c0_68 = arith.constant 0 : index
    %131 = vector.load %arg5[%c1_66, %c0_67, %c0_68] : memref<2x1x32xf32, #tpu.memory_space<vmem>>, vector<1x1x32xf32>
    %132 = vector.shape_cast %131 : vector<1x1x32xf32> to vector<1x32xf32>
    %cst_69 = arith.constant dense<0.000000e+00> : vector<8xf32>
    %133 = vector.multi_reduction <add>, %128, %cst_69 [1] : vector<8x32xf32> to vector<8xf32>
    %134 = vector.shape_cast %133 : vector<8xf32> to vector<8x1xf32>
    %cst_70 = arith.constant 3.200000e+01 : f32
    %135 = vector.broadcast %cst_70 : f32 to vector<8x1xf32>
    %136 = arith.divf %134, %135 : vector<8x1xf32>
    %137 = vector.broadcast %136 : vector<8x1xf32> to vector<8x32xf32>
    %138 = arith.subf %128, %137 : vector<8x32xf32>
    %139 = arith.mulf %138, %138 : vector<8x32xf32>
    %cst_71 = arith.constant dense<0.000000e+00> : vector<8xf32>
    %140 = vector.multi_reduction <add>, %139, %cst_71 [1] : vector<8x32xf32> to vector<8xf32>
    %141 = vector.shape_cast %140 : vector<8xf32> to vector<8x1xf32>
    %cst_72 = arith.constant 3.200000e+01 : f32
    %142 = vector.broadcast %cst_72 : f32 to vector<8x1xf32>
    %143 = arith.divf %141, %142 : vector<8x1xf32>
    %144 = vector.broadcast %136 : vector<8x1xf32> to vector<8x32xf32>
    %145 = arith.subf %128, %144 : vector<8x32xf32>
    %cst_73 = arith.constant 9.99999974E-6 : f32
    %146 = vector.broadcast %cst_73 : f32 to vector<8x1xf32>
    %147 = arith.addf %143, %146 : vector<8x1xf32>
    %148 = math.rsqrt %147 : vector<8x1xf32>
    %149 = vector.broadcast %148 : vector<8x1xf32> to vector<8x32xf32>
    %150 = arith.mulf %145, %149 : vector<8x32xf32>
    %151 = vector.broadcast %130 : vector<1x32xf32> to vector<8x32xf32>
    %152 = arith.mulf %150, %151 : vector<8x32xf32>
    %153 = vector.broadcast %132 : vector<1x32xf32> to vector<8x32xf32>
    %154 = arith.addf %152, %153 : vector<8x32xf32>
    %155 = arith.truncf %154 : vector<8x32xf32> to vector<8x32xbf16>
    %156 = vector.shape_cast %155 : vector<8x32xbf16> to vector<1x8x32xbf16>
    %157 = vector.shape_cast %156 : vector<1x8x32xbf16> to vector<1x8x32xbf16>
    %158 = vector.broadcast %157 : vector<1x8x32xbf16> to vector<12x8x32xbf16>
    %c1_74 = arith.constant 1 : index
    %c0_75 = arith.constant 0 : index
    %c0_76 = arith.constant 0 : index
    %c0_77 = arith.constant 0 : index
    %159 = vector.load %arg6[%c1_74, %c0_75, %c0_76, %c0_77] : memref<2x12x32x8xbf16, #tpu.memory_space<vmem>>, vector<1x12x32x8xbf16>
    %160 = vector.shape_cast %159 : vector<1x12x32x8xbf16> to vector<12x32x8xbf16>
    "tpu.trace_start"() <{level = 10 : i32, message = "gsd,gdf->gsf"}> : () -> ()
    %cst_78 = arith.constant dense<0.000000e+00> : vector<12x8x8xf32>
    %161 = tpu.matmul %158, %160, %cst_78 {dimension_numbers = #tpu.dot_dimension_numbers<[2], [1], [1], [2], [0, 0, 0, 1, 1, 2], [0], [0]>} : vector<12x8x32xbf16>, vector<12x32x8xbf16>, vector<12x8x8xf32> -> vector<12x8x8xf32>
    "tpu.trace_stop"() : () -> ()
    %c1_79 = arith.constant 1 : index
    %c0_80 = arith.constant 0 : index
    %c0_81 = arith.constant 0 : index
    %c0_82 = arith.constant 0 : index
    %162 = vector.load %arg7[%c1_79, %c0_80, %c0_81, %c0_82] : memref<2x12x1x8xf32, #tpu.memory_space<vmem>>, vector<1x12x1x8xf32>
    %163 = vector.shape_cast %162 : vector<1x12x1x8xf32> to vector<12x1x8xf32>
    %164 = vector.broadcast %163 : vector<12x1x8xf32> to vector<12x8x8xf32>
    %165 = arith.addf %161, %164 : vector<12x8x8xf32>
    %166 = vector.extract_strided_slice %165 {offsets = [0, 0, 0], sizes = [4, 8, 8], strides = [1, 1, 1]} : vector<12x8x8xf32> to vector<4x8x8xf32>
    %167 = vector.extract_strided_slice %165 {offsets = [4, 0, 0], sizes = [4, 8, 8], strides = [1, 1, 1]} : vector<12x8x8xf32> to vector<4x8x8xf32>
    %168 = vector.extract_strided_slice %165 {offsets = [8, 0, 0], sizes = [4, 8, 8], strides = [1, 1, 1]} : vector<12x8x8xf32> to vector<4x8x8xf32>
    %169 = arith.truncf %166 : vector<4x8x8xf32> to vector<4x8x8xbf16>
    %170 = arith.truncf %167 : vector<4x8x8xf32> to vector<4x8x8xbf16>
    "tpu.trace_start"() <{level = 10 : i32, message = "hqd,hkd->hqk"}> : () -> ()
    %cst_83 = arith.constant dense<0.000000e+00> : vector<4x8x8xf32>
    %171 = tpu.matmul %169, %170, %cst_83 {dimension_numbers = #tpu.dot_dimension_numbers<[2], [2], [1], [1], [0, 0, 0, 1, 1, 1], [0], [0]>} : vector<4x8x8xbf16>, vector<4x8x8xbf16>, vector<4x8x8xf32> -> vector<4x8x8xf32>
    %cst_84 = arith.constant -1.000000e+30 : f32
    "tpu.trace_stop"() : () -> ()
    %172 = vector.shape_cast %6 : vector<1x8x8xi1> to vector<1x8x8xi1>
    %173 = vector.broadcast %172 : vector<1x8x8xi1> to vector<4x8x8xi1>
    %174 = vector.broadcast %cst_84 : f32 to vector<4x8x8xf32>
    %175 = arith.select %173, %174, %171 : vector<4x8x8xi1>, vector<4x8x8xf32>
    %cst_85 = arith.constant dense<0xFF800000> : vector<4x8xf32>
    %176 = vector.multi_reduction <maximumf>, %175, %cst_85 [2] : vector<4x8x8xf32> to vector<4x8xf32>
    %cst_86 = arith.constant 0xFF800000 : f32
    %177 = vector.broadcast %cst_86 : f32 to vector<4x8xf32>
    %178 = arith.maximumf %177, %176 : vector<4x8xf32>
    %179 = vector.shape_cast %178 : vector<4x8xf32> to vector<4x8x1xf32>
    %180 = vector.broadcast %179 : vector<4x8x1xf32> to vector<4x8x8xf32>
    %181 = arith.subf %175, %180 : vector<4x8x8xf32>
    %182 = math.exp %181 : vector<4x8x8xf32>
    %cst_87 = arith.constant dense<0.000000e+00> : vector<4x8xf32>
    %183 = vector.multi_reduction <add>, %182, %cst_87 [2] : vector<4x8x8xf32> to vector<4x8xf32>
    %184 = vector.shape_cast %183 : vector<4x8xf32> to vector<4x8x1xf32>
    %185 = vector.broadcast %184 : vector<4x8x1xf32> to vector<4x8x8xf32>
    %186 = arith.divf %182, %185 : vector<4x8x8xf32>
    %187 = arith.truncf %186 : vector<4x8x8xf32> to vector<4x8x8xbf16>
    %188 = arith.truncf %168 : vector<4x8x8xf32> to vector<4x8x8xbf16>
    "tpu.trace_start"() <{level = 10 : i32, message = "hqk,hkd->hqd"}> : () -> ()
    %cst_88 = arith.constant dense<0.000000e+00> : vector<4x8x8xf32>
    %189 = tpu.matmul %187, %188, %cst_88 {dimension_numbers = #tpu.dot_dimension_numbers<[2], [1], [1], [2], [0, 0, 0, 1, 1, 2], [0], [0]>} : vector<4x8x8xbf16>, vector<4x8x8xbf16>, vector<4x8x8xf32> -> vector<4x8x8xf32>
    "tpu.trace_stop"() : () -> ()
    %190 = arith.truncf %189 : vector<4x8x8xf32> to vector<4x8x8xbf16>
    %c1_89 = arith.constant 1 : index
    %c0_90 = arith.constant 0 : index
    %c0_91 = arith.constant 0 : index
    %c0_92 = arith.constant 0 : index
    %191 = vector.load %arg8[%c1_89, %c0_90, %c0_91, %c0_92] : memref<2x4x8x32xbf16, #tpu.memory_space<vmem>>, vector<1x4x8x32xbf16>
    %192 = vector.shape_cast %191 : vector<1x4x8x32xbf16> to vector<4x8x32xbf16>
    "tpu.trace_start"() <{level = 10 : i32, message = "hsf,hfd->hsd"}> : () -> ()
    %cst_93 = arith.constant dense<0.000000e+00> : vector<4x8x32xf32>
    %193 = tpu.matmul %190, %192, %cst_93 {dimension_numbers = #tpu.dot_dimension_numbers<[2], [1], [1], [2], [0, 0, 0, 1, 1, 2], [0], [0]>} : vector<4x8x8xbf16>, vector<4x8x32xbf16>, vector<4x8x32xf32> -> vector<4x8x32xf32>
    "tpu.trace_stop"() : () -> ()
    %cst_94 = arith.constant dense<0.000000e+00> : vector<8x32xf32>
    %194 = vector.multi_reduction <add>, %193, %cst_94 [0] : vector<4x8x32xf32> to vector<8x32xf32>
    %195 = arith.addf %128, %194 : vector<8x32xf32>
    %c1_95 = arith.constant 1 : index
    %c0_96 = arith.constant 0 : index
    %c0_97 = arith.constant 0 : index
    %196 = vector.load %arg9[%c1_95, %c0_96, %c0_97] : memref<2x1x32xf32, #tpu.memory_space<vmem>>, vector<1x1x32xf32>
    %197 = vector.shape_cast %196 : vector<1x1x32xf32> to vector<1x32xf32>
    %198 = vector.broadcast %197 : vector<1x32xf32> to vector<8x32xf32>
    %199 = arith.addf %195, %198 : vector<8x32xf32>
    %c1_98 = arith.constant 1 : index
    %c0_99 = arith.constant 0 : index
    %c0_100 = arith.constant 0 : index
    %200 = vector.load %arg10[%c1_98, %c0_99, %c0_100] : memref<2x1x32xf32, #tpu.memory_space<vmem>>, vector<1x1x32xf32>
    %201 = vector.shape_cast %200 : vector<1x1x32xf32> to vector<1x32xf32>
    %c1_101 = arith.constant 1 : index
    %c0_102 = arith.constant 0 : index
    %c0_103 = arith.constant 0 : index
    %202 = vector.load %arg11[%c1_101, %c0_102, %c0_103] : memref<2x1x32xf32, #tpu.memory_space<vmem>>, vector<1x1x32xf32>
    %203 = vector.shape_cast %202 : vector<1x1x32xf32> to vector<1x32xf32>
    %cst_104 = arith.constant dense<0.000000e+00> : vector<8xf32>
    %204 = vector.multi_reduction <add>, %199, %cst_104 [1] : vector<8x32xf32> to vector<8xf32>
    %205 = vector.shape_cast %204 : vector<8xf32> to vector<8x1xf32>
    %cst_105 = arith.constant 3.200000e+01 : f32
    %206 = vector.broadcast %cst_105 : f32 to vector<8x1xf32>
    %207 = arith.divf %205, %206 : vector<8x1xf32>
    %208 = vector.broadcast %207 : vector<8x1xf32> to vector<8x32xf32>
    %209 = arith.subf %199, %208 : vector<8x32xf32>
    %210 = arith.mulf %209, %209 : vector<8x32xf32>
    %cst_106 = arith.constant dense<0.000000e+00> : vector<8xf32>
    %211 = vector.multi_reduction <add>, %210, %cst_106 [1] : vector<8x32xf32> to vector<8xf32>
    %212 = vector.shape_cast %211 : vector<8xf32> to vector<8x1xf32>
    %cst_107 = arith.constant 3.200000e+01 : f32
    %213 = vector.broadcast %cst_107 : f32 to vector<8x1xf32>
    %214 = arith.divf %212, %213 : vector<8x1xf32>
    %215 = vector.broadcast %207 : vector<8x1xf32> to vector<8x32xf32>
    %216 = arith.subf %199, %215 : vector<8x32xf32>
    %cst_108 = arith.constant 9.99999974E-6 : f32
    %217 = vector.broadcast %cst_108 : f32 to vector<8x1xf32>
    %218 = arith.addf %214, %217 : vector<8x1xf32>
    %219 = math.rsqrt %218 : vector<8x1xf32>
    %220 = vector.broadcast %219 : vector<8x1xf32> to vector<8x32xf32>
    %221 = arith.mulf %216, %220 : vector<8x32xf32>
    %222 = vector.broadcast %201 : vector<1x32xf32> to vector<8x32xf32>
    %223 = arith.mulf %221, %222 : vector<8x32xf32>
    %224 = vector.broadcast %203 : vector<1x32xf32> to vector<8x32xf32>
    %225 = arith.addf %223, %224 : vector<8x32xf32>
    %c1_109 = arith.constant 1 : index
    %c0_110 = arith.constant 0 : index
    %c0_111 = arith.constant 0 : index
    %226 = vector.load %arg12[%c1_109, %c0_110, %c0_111] : memref<2x32x128xbf16, #tpu.memory_space<vmem>>, vector<1x32x128xbf16>
    %227 = vector.shape_cast %226 : vector<1x32x128xbf16> to vector<32x128xbf16>
    %228 = arith.truncf %225 : vector<8x32xf32> to vector<8x32xbf16>
    %cst_112 = arith.constant dense<0.000000e+00> : vector<8x128xf32>
    %229 = tpu.matmul %228, %227, %cst_112 {dimension_numbers = #tpu.dot_dimension_numbers<[1], [0], [0], [1], [0, 0, 1, 1], [], []>} : vector<8x32xbf16>, vector<32x128xbf16>, vector<8x128xf32> -> vector<8x128xf32>
    %c1_113 = arith.constant 1 : index
    %c0_114 = arith.constant 0 : index
    %c0_115 = arith.constant 0 : index
    %230 = vector.load %arg13[%c1_113, %c0_114, %c0_115] : memref<2x1x128xf32, #tpu.memory_space<vmem>>, vector<1x1x128xf32>
    %231 = vector.shape_cast %230 : vector<1x1x128xf32> to vector<1x128xf32>
    %232 = vector.broadcast %231 : vector<1x128xf32> to vector<8x128xf32>
    %233 = arith.addf %229, %232 : vector<8x128xf32>
    %cst_116 = arith.constant 1.702000e+00 : f32
    %234 = vector.broadcast %cst_116 : f32 to vector<8x128xf32>
    %235 = arith.mulf %234, %233 : vector<8x128xf32>
    %236 = arith.negf %235 : vector<8x128xf32>
    %237 = math.exp %236 : vector<8x128xf32>
    %cst_117 = arith.constant 1.000000e+00 : f32
    %238 = vector.broadcast %cst_117 : f32 to vector<8x128xf32>
    %239 = arith.addf %238, %237 : vector<8x128xf32>
    %240 = arith.divf %238, %239 : vector<8x128xf32>
    %241 = arith.mulf %233, %240 : vector<8x128xf32>
    %c1_118 = arith.constant 1 : index
    %c0_119 = arith.constant 0 : index
    %c0_120 = arith.constant 0 : index
    %242 = vector.load %arg14[%c1_118, %c0_119, %c0_120] : memref<2x128x32xbf16, #tpu.memory_space<vmem>>, vector<1x128x32xbf16>
    %243 = vector.shape_cast %242 : vector<1x128x32xbf16> to vector<128x32xbf16>
    %244 = arith.truncf %241 : vector<8x128xf32> to vector<8x128xbf16>
    %cst_121 = arith.constant dense<0.000000e+00> : vector<8x32xf32>
    %245 = tpu.matmul %244, %243, %cst_121 {dimension_numbers = #tpu.dot_dimension_numbers<[1], [0], [0], [1], [0, 0, 1, 1], [], []>} : vector<8x128xbf16>, vector<128x32xbf16>, vector<8x32xf32> -> vector<8x32xf32>
    %246 = arith.addf %199, %245 : vector<8x32xf32>
    %c1_122 = arith.constant 1 : index
    %c0_123 = arith.constant 0 : index
    %c0_124 = arith.constant 0 : index
    %247 = vector.load %arg15[%c1_122, %c0_123, %c0_124] : memref<2x1x32xf32, #tpu.memory_space<vmem>>, vector<1x1x32xf32>
    %248 = vector.shape_cast %247 : vector<1x1x32xf32> to vector<1x32xf32>
    %249 = vector.broadcast %248 : vector<1x32xf32> to vector<8x32xf32>
    %250 = arith.addf %246, %249 : vector<8x32xf32>
    %c0_125 = arith.constant 0 : index
    %c0_126 = arith.constant 0 : index
    %251 = vector.load %arg16[%c0_125, %c0_126] : memref<1x32xf32, #tpu.memory_space<vmem>>, vector<1x32xf32>
    %c0_127 = arith.constant 0 : index
    %c0_128 = arith.constant 0 : index
    %252 = vector.load %arg17[%c0_127, %c0_128] : memref<1x32xf32, #tpu.memory_space<vmem>>, vector<1x32xf32>
    %cst_129 = arith.constant dense<0.000000e+00> : vector<8xf32>
    %253 = vector.multi_reduction <add>, %250, %cst_129 [1] : vector<8x32xf32> to vector<8xf32>
    %254 = vector.shape_cast %253 : vector<8xf32> to vector<8x1xf32>
    %cst_130 = arith.constant 3.200000e+01 : f32
    %255 = vector.broadcast %cst_130 : f32 to vector<8x1xf32>
    %256 = arith.divf %254, %255 : vector<8x1xf32>
    %257 = vector.broadcast %256 : vector<8x1xf32> to vector<8x32xf32>
    %258 = arith.subf %250, %257 : vector<8x32xf32>
    %259 = arith.mulf %258, %258 : vector<8x32xf32>
    %cst_131 = arith.constant dense<0.000000e+00> : vector<8xf32>
    %260 = vector.multi_reduction <add>, %259, %cst_131 [1] : vector<8x32xf32> to vector<8xf32>
    %261 = vector.shape_cast %260 : vector<8xf32> to vector<8x1xf32>
    %cst_132 = arith.constant 3.200000e+01 : f32
    %262 = vector.broadcast %cst_132 : f32 to vector<8x1xf32>
    %263 = arith.divf %261, %262 : vector<8x1xf32>
    %264 = vector.broadcast %256 : vector<8x1xf32> to vector<8x32xf32>
    %265 = arith.subf %250, %264 : vector<8x32xf32>
    %cst_133 = arith.constant 9.99999974E-6 : f32
    %266 = vector.broadcast %cst_133 : f32 to vector<8x1xf32>
    %267 = arith.addf %263, %266 : vector<8x1xf32>
    %268 = math.rsqrt %267 : vector<8x1xf32>
    %269 = vector.broadcast %268 : vector<8x1xf32> to vector<8x32xf32>
    %270 = arith.mulf %265, %269 : vector<8x32xf32>
    %271 = vector.broadcast %251 : vector<1x32xf32> to vector<8x32xf32>
    %272 = arith.mulf %270, %271 : vector<8x32xf32>
    %273 = vector.broadcast %252 : vector<1x32xf32> to vector<8x32xf32>
    %274 = arith.addf %272, %273 : vector<8x32xf32>
    %c0_134 = arith.constant 0 : index
    %c0_135 = arith.constant 0 : index
    %275 = vector.load %arg20[%c0_134, %c0_135] : memref<8x32xf32, #tpu.memory_space<vmem>>, vector<8x32xf32>
    tpu.vector_store %arg20[%c0_134, %c0_135], %274 {strides = array<i32>} : memref<8x32xf32, #tpu.memory_space<vmem>>, vector<8x32xf32>,
    %276 = arith.index_cast %arg0 : i32 to index
    %277 = memref.load %arg1[%276] : memref<2xi32, #tpu.memory_space<smem>>
    %278 = arith.index_cast %277 : i32 to index
    %c0_136 = arith.constant 0 : index
    %279 = vector.load %arg20[%278, %c0_136] : memref<8x32xf32, #tpu.memory_space<vmem>>, vector<1x32xf32>
    %c0_137 = arith.constant 0 : index
    %c0_138 = arith.constant 0 : index
    %280 = vector.load %arg18[%c0_137, %c0_138] : memref<32x32xbf16, #tpu.memory_space<vmem>>, vector<32x32xbf16>
    %281 = arith.truncf %279 : vector<1x32xf32> to vector<1x32xbf16>
    %cst_139 = arith.constant dense<0.000000e+00> : vector<1x32xf32>
    %282 = tpu.matmul %281, %280, %cst_139 {dimension_numbers = #tpu.dot_dimension_numbers<[1], [0], [0], [1], [0, 0, 1, 1], [], []>} : vector<1x32xbf16>, vector<32x32xbf16>, vector<1x32xf32> -> vector<1x32xf32>
    %c0_140 = arith.constant 0 : index
    %c0_141 = arith.constant 0 : index
    %c0_142 = arith.constant 0 : index
    %283 = vector.load %arg19[%c0_140, %c0_141, %c0_142] : memref<1x1x32xf32, #tpu.memory_space<vmem>>, vector<1x1x32xf32>
    %284 = vector.shape_cast %283 : vector<1x1x32xf32> to vector<1x32xf32>
    %285 = vector.shape_cast %282 : vector<1x32xf32> to vector<1x1x32xf32>
    tpu.vector_store %arg19[%c0_140, %c0_141, %c0_142], %285 {strides = array<i32>} : memref<1x1x32xf32, #tpu.memory_space<vmem>>, vector<1x1x32xf32>,
    return
  }
  func.func @transform_0(%arg0: i32, %arg1: memref<2xi32, #tpu.memory_space<smem>>) -> (i32, i32) {
    %c0_i32 = arith.constant 0 : i32
    %c0_i32_0 = arith.constant 0 : i32
    return %arg0, %c0_i32 : i32, i32
  }
  func.func @transform_1(%arg0: i32, %arg1: memref<2xi32, #tpu.memory_space<smem>>) -> (i32, i32) {
    %c0_i32 = arith.constant 0 : i32
    %c0_i32_0 = arith.constant 0 : i32
    %c0_i32_1 = arith.constant 0 : i32
    return %c0_i32, %c0_i32_0 : i32, i32
  }
  func.func @transform_2(%arg0: i32, %arg1: memref<2xi32, #tpu.memory_space<smem>>) -> (i32, i32, i32) {
    %c0_i32 = arith.constant 0 : i32
    %c0_i32_0 = arith.constant 0 : i32
    %c0_i32_1 = arith.constant 0 : i32
    %c0_i32_2 = arith.constant 0 : i32
    return %c0_i32, %c0_i32_0, %c0_i32_1 : i32, i32, i32
  }
  func.func @transform_3(%arg0: i32, %arg1: memref<2xi32, #tpu.memory_space<smem>>) -> (i32, i32, i32) {
    %c0_i32 = arith.constant 0 : i32
    %c0_i32_0 = arith.constant 0 : i32
    %c0_i32_1 = arith.constant 0 : i32
    %c0_i32_2 = arith.constant 0 : i32
    return %c0_i32, %c0_i32_0, %c0_i32_1 : i32, i32, i32
  }
  func.func @transform_4(%arg0: i32, %arg1: memref<2xi32, #tpu.memory_space<smem>>) -> (i32, i32, i32, i32) {
    %c0_i32 = arith.constant 0 : i32
    %c0_i32_0 = arith.constant 0 : i32
    %c0_i32_1 = arith.constant 0 : i32
    %c0_i32_2 = arith.constant 0 : i32
    %c0_i32_3 = arith.constant 0 : i32
    return %c0_i32, %c0_i32_0, %c0_i32_1, %c0_i32_2 : i32, i32, i32, i32
  }
  func.func @transform_5(%arg0: i32, %arg1: memref<2xi32, #tpu.memory_space<smem>>) -> (i32, i32, i32, i32) {
    %c0_i32 = arith.constant 0 : i32
    %c0_i32_0 = arith.constant 0 : i32
    %c0_i32_1 = arith.constant 0 : i32
    %c0_i32_2 = arith.constant 0 : i32
    %c0_i32_3 = arith.constant 0 : i32
    return %c0_i32, %c0_i32_0, %c0_i32_1, %c0_i32_2 : i32, i32, i32, i32
  }
  func.func @transform_6(%arg0: i32, %arg1: memref<2xi32, #tpu.memory_space<smem>>) -> (i32, i32, i32, i32) {
    %c0_i32 = arith.constant 0 : i32
    %c0_i32_0 = arith.constant 0 : i32
    %c0_i32_1 = arith.constant 0 : i32
    %c0_i32_2 = arith.constant 0 : i32
    %c0_i32_3 = arith.constant 0 : i32
    return %c0_i32, %c0_i32_0, %c0_i32_1, %c0_i32_2 : i32, i32, i32, i32
  }
  func.func @transform_7(%arg0: i32, %arg1: memref<2xi32, #tpu.memory_space<smem>>) -> (i32, i32, i32) {
    %c0_i32 = arith.constant 0 : i32
    %c0_i32_0 = arith.constant 0 : i32
    %c0_i32_1 = arith.constant 0 : i32
    %c0_i32_2 = arith.constant 0 : i32
    return %c0_i32, %c0_i32_0, %c0_i32_1 : i32, i32, i32
  }
  func.func @transform_8(%arg0: i32, %arg1: memref<2xi32, #tpu.memory_space<smem>>) -> (i32, i32, i32) {
    %c0_i32 = arith.constant 0 : i32
    %c0_i32_0 = arith.constant 0 : i32
    %c0_i32_1 = arith.constant 0 : i32
    %c0_i32_2 = arith.constant 0 : i32
    return %c0_i32, %c0_i32_0, %c0_i32_1 : i32, i32, i32
  }
  func.func @transform_9(%arg0: i32, %arg1: memref<2xi32, #tpu.memory_space<smem>>) -> (i32, i32, i32) {
    %c0_i32 = arith.constant 0 : i32
    %c0_i32_0 = arith.constant 0 : i32
    %c0_i32_1 = arith.constant 0 : i32
    %c0_i32_2 = arith.constant 0 : i32
    return %c0_i32, %c0_i32_0, %c0_i32_1 : i32, i32, i32
  }
  func.func @transform_10(%arg0: i32, %arg1: memref<2xi32, #tpu.memory_space<smem>>) -> (i32, i32, i32) {
    %c0_i32 = arith.constant 0 : i32
    %c0_i32_0 = arith.constant 0 : i32
    %c0_i32_1 = arith.constant 0 : i32
    %c0_i32_2 = arith.constant 0 : i32
    return %c0_i32, %c0_i32_0, %c0_i32_1 : i32, i32, i32
  }
  func.func @transform_11(%arg0: i32, %arg1: memref<2xi32, #tpu.memory_space<smem>>) -> (i32, i32, i32) {
    %c0_i32 = arith.constant 0 : i32
    %c0_i32_0 = arith.constant 0 : i32
    %c0_i32_1 = arith.constant 0 : i32
    %c0_i32_2 = arith.constant 0 : i32
    return %c0_i32, %c0_i32_0, %c0_i32_1 : i32, i32, i32
  }
  func.func @transform_12(%arg0: i32, %arg1: memref<2xi32, #tpu.memory_space<smem>>) -> (i32, i32, i32) {
    %c0_i32 = arith.constant 0 : i32
    %c0_i32_0 = arith.constant 0 : i32
    %c0_i32_1 = arith.constant 0 : i32
    %c0_i32_2 = arith.constant 0 : i32
    return %c0_i32, %c0_i32_0, %c0_i32_1 : i32, i32, i32
  }
  func.func @transform_13(%arg0: i32, %arg1: memref<2xi32, #tpu.memory_space<smem>>) -> (i32, i32, i32) {
    %c0_i32 = arith.constant 0 : i32
    %c0_i32_0 = arith.constant 0 : i32
    %c0_i32_1 = arith.constant 0 : i32
    %c0_i32_2 = arith.constant 0 : i32
    return %c0_i32, %c0_i32_0, %c0_i32_1 : i32, i32, i32
  }
  func.func @transform_14(%arg0: i32, %arg1: memref<2xi32, #tpu.memory_space<smem>>) -> (i32, i32) {
    %c0_i32 = arith.constant 0 : i32
    %c0_i32_0 = arith.constant 0 : i32
    %c0_i32_1 = arith.constant 0 : i32
    return %c0_i32, %c0_i32_0 : i32, i32
  }
  func.func @transform_15(%arg0: i32, %arg1: memref<2xi32, #tpu.memory_space<smem>>) -> (i32, i32) {
    %c0_i32 = arith.constant 0 : i32
    %c0_i32_0 = arith.constant 0 : i32
    %c0_i32_1 = arith.constant 0 : i32
    return %c0_i32, %c0_i32_0 : i32, i32
  }
  func.func @transform_16(%arg0: i32, %arg1: memref<2xi32, #tpu.memory_space<smem>>) -> (i32, i32) {
    %c0_i32 = arith.constant 0 : i32
    %c0_i32_0 = arith.constant 0 : i32
    %c0_i32_1 = arith.constant 0 : i32
    return %c0_i32, %c0_i32_0 : i32, i32
  }
  func.func @transform_17(%arg0: i32, %arg1: memref<2xi32, #tpu.memory_space<smem>>) -> (i32, i32, i32) {
    %c0_i32 = arith.constant 0 : i32
    %c0_i32_0 = arith.constant 0 : i32
    %c0_i32_1 = arith.constant 0 : i32
    return %arg0, %c0_i32, %c0_i32_0 : i32, i32, i32
  }
}

</mosaic_0001>

<bundles_post_ra>
// kernel: tpu_custom_call.1
= control target key start
LH: loop header
LB: loop body
LE: loop exit
PB: predicated region body
PF: predicated region fallthrough
CT: control target
= control target key end

     0   :  { %s6034_s0 = inlined_call_operand.vmem [shape: s32[2], index: 0, kind: input, shape index: {}]   ;;  %s6035_s1 = inlined_call_operand.vmem [shape: f32[16,32], index: 1, kind: input, shape index: {}]   ;;  %s6036_s2 = inlined_call_operand.vmem [shape: f32[8,32], index: 2, kind: input, shape index: {}]   ;;  %s6037_s3 = inlined_call_operand.vmem [shape: f32[2,1,32], index: 3, kind: input, shape index: {}]   ;;  %s6038_s4 = inlined_call_operand.vmem [shape: f32[2,1,32], index: 4, kind: input, shape index: {}]   ;;  %s6039_s5 = inlined_call_operand.vmem [shape: bf16[2,12,32,8], index: 5, kind: input, shape index: {}]   ;;  %s6040_s6 = inlined_call_operand.vmem [shape: f32[2,12,1,8], index: 6, kind: input, shape index: {}]   ;;  %s6041_s7 = inlined_call_operand.vmem [shape: bf16[2,4,8,32], index: 7, kind: input, shape index: {}]   ;;  %s6042_s8 = inlined_call_operand.vmem [shape: f32[2,1,32], index: 8, kind: input, shape index: {}]   ;;  %s6043_s9 = inlined_call_operand.vmem [shape: f32[2,1,32], index: 9, kind: input, shape index: {}]   ;;  %s6044_s10 = inlined_call_operand.vmem [shape: f32[2,1,32], index: 10, kind: input, shape index: {}]   ;;  %s6045_s11 = inlined_call_operand.vmem [shape: bf16[2,32,128], index: 11, kind: input, shape index: {}]   ;;  %s6046_s12 = inlined_call_operand.vmem [shape: f32[2,1,128], index: 12, kind: input, shape index: {}]   ;;  %s6047_s13 = inlined_call_operand.vmem [shape: bf16[2,128,32], index: 13, kind: input, shape index: {}]   ;;  %s6048_s14 = inlined_call_operand.vmem [shape: f32[2,1,32], index: 14, kind: input, shape index: {}]   ;;  %s6049_s15 = inlined_call_operand.vmem [shape: f32[1,32], index: 15, kind: input, shape index: {}]   ;;  %s6050_s16 = inlined_call_operand.vmem [shape: f32[1,32], index: 16, kind: input, shape index: {}]   ;;  %s6051_s17 = inlined_call_operand.vmem [shape: bf16[32,32], index: 17, kind: input, shape index: {}]   ;;  %s6052_s18 = inlined_call_operand.hbm [shape: f32[2,1,32], index: 18, kind: output, shape index: {}]  }
   0x1   :  { %6055 = sst [smem:[#allocation11_spill]] %s6034_s0 }
   0x2   :  { %6056 = sst [smem:[#allocation12_spill]] %s6035_s1  ;;  %s6061_s29 = sld [smem:[#allocation11_spill]] }
   0x3   :  { %6057 = sst [smem:[#allocation13_spill]] %s6036_s2 }
   0x4   :  { %6058 = sst [smem:[#allocation14_spill]] %s6037_s3 }
   0x5   :  { %6059 = sst [smem:[#allocation15_spill]] %s6038_s4 }
   0x6   :  { %6060 = sst [smem:[#allocation16_spill]] %s6046_s12 }
   0x8   :  { %s23_s12 = sshll.u32 %s6061_s29, 4  ;;  %s24_s12 = int_to_ptr.vmem [resolvable:$true] %s23_s12 }
   0x9   :  { %s5006_s30 = scalar_lea.vmem %s24_s12, 16  ;;  %p5011_p1 = scmp.lt.s32.totalorder %s24_s12, %s24_s12 }
   0xa   :  { %p5007_p0 = scmp.ne.s32.totalorder %s24_s12, %s5006_s30  ;;  %p5012_p2 = scmp.lt.s32.totalorder %s5006_s30, %s5006_s30 }
   0xc   :  { %p5013_p3 = por %p5012_p2, %p5011_p1 }
   0xe   :  { %p5014_p4 = pnand %p5013_p3, %p5007_p0 }
  0x10   :  { %5017 = shalt.err (!%p5014_p4)  }
  0x11   :  { %s5084_s0 = smov [#allocation4]  }
  0x12   :  { %26 = dma.vmem_to_smem %s24_s12, 16, %s5084_s0, [#allocation3] }
  0x13   :  { %5062 = dma.done.wait [#allocation3], 16 }
  0x14   :  { %5063 = vsyncadd [#allocation3], 4294967280 }
  0x15   :  { %28 = sfence }
  0x16   :  { %29 = vsyncpa [#allocation6], 0 }
  0x17   :  { %31 = vsyncpa [#allocation6 + $0x1], 0  ;;  %s5186_s19 = smov 0   ;;  %s5188_s1 = smov 0  }
  0x18   :  { %s5190_s20 = smov 0   ;;  %s5192_s21 = smov 0  }
  0x19 LB: > { %6062 = sst [smem:[#allocation9_spill]] %s5078_s20  ;;  %s5207_s12 = sadd.s32 4294967295, %s5082_s21   ;;  %s5082_s21 = sphi %s5192_s21, %s6077_s21   ;;  %s5078_s20 = sphi %s5190_s20, %s6074_s20   ;;  %s5074_s1 = sphi %s5188_s1, %s6076_s1   ;;  %s5070_s19 = sphi %s5186_s19, %s6075_s19  }
  0x1a   : > { %s4035_s22 = sadd.s32 4294967294, %s5082_s21   ;;  %s5211_s2 = sadd.s32 1, %s5082_s21  }
  0x1b   : > { %s406_s23 = sadd.s32 1, %s5078_s20  ;;  %s403_s24 = ssub.s32 %s5082_s21, %s5211_s2 }
  0x1c   : > { %p416_p5 = scmp.ne.s32.totalorder %s5078_s20, %s5074_s1  ;;  %p404_p6 = scmp.eq.s32.totalorder %s403_s24, 0 }
  0x1d   : > { %p417_p7 = scmp.eq.s32.totalorder %s5207_s12, 1  ;;  %p422_p8 = scmp.ne.s32.totalorder %s5074_s1, %s5070_s19 }
  0x1e   : > { %p423_p9 = scmp.eq.s32.totalorder %s4035_s22, 1  ;;  %p4038_p12 = scmp.ge.s32.totalorder %s5082_s21, 1 }
  0x1f   : > { %s5222_s25 = scalar_select %p404_p6, %s5078_s20, %s406_s23  }
  0x20   : > { %p5224_p10 = por %p417_p7, %p416_p5  ;;  %p5228_p11 = por %p423_p9, %p422_p8 }
  0x21   : > { %6063 = sst [smem:[#allocation10_spill]] %s5222_s25  ;;  %p496_p13 = scmp.lt.s32.totalorder %s5082_s21, 3 }
  0x23   : > { %p497_p0 = pnand %p4038_p12, %p496_p13 }
  0x24   : > { %p546_p1 = scmp.lt.s32.totalorder (!%p497_p0), %s5207_s12, 1  ;;  %s6066_s22 = sld [smem:[#allocation13_spill]] (!%p497_p0)  ;;  %vm561_vm0 = vcmask (!%p497_p0), 261120   ;;  %v4886_v9 = vld [vmem:[%s6039_s5] sm:$0xff] (!%p497_p0)   ;;  %v5085_v11 = vmov (!%p497_p0), 0.0   ;;  %v4888_v12 = vld [vmem:[%s6039_s5 + $0x8] sm:$0xff] (!%p497_p0)  }
  0x25   : > { %500 = sbr.rel (%p497_p0) target bundleno = 5229 (0x146d), region = 88  ;;  %s6067_s25 = sld [smem:[#allocation12_spill]] (!%p497_p0)  ;;  %v4887_v10 = vld [vmem:[%s6039_s5 + $0x20] sm:$0xff] (!%p497_p0)   ;;  %4444 = vmatprep.subr.bf16.mxu1 (!%p497_p0), %v5085_v11  ;;  %4460 = vmatprep.subr.bf16.mxu0 (!%p497_p0), %v5085_v11  ;;  %v4889_v13 = vld [vmem:[%s6039_s5 + $0x28] sm:$0xff] (!%p497_p0)   ;;  %vm5086_vm1 = vmmov (!%p497_p0), 0   ;;  %v4890_v23 = vld [vmem:[%s6039_s5 + $0x10] sm:$0xff] (!%p497_p0)  }
  0x26   : > { %4445 = vmatpush3.bf16.msra.mxu1 (!%p497_p0), %v4886_v9  ;;  %4461 = vmatpush3.bf16.msra.mxu0 (!%p497_p0), %v4887_v10  ;;  %s6068_s3 = sld [smem:[#allocation14_spill]] (!%p497_p0)  ;;  %s6069_s4 = sld [smem:[#allocation15_spill]] (!%p497_p0)  ;;  %v4891_v24 = vld [vmem:[%s6039_s5 + $0x40] sm:$0xff] (!%p497_p0)   ;;  %v4892_v26 = vld [vmem:[%s6039_s5 + $0x18] sm:$0xff] (!%p497_p0)   ;;  %v4893_v27 = vld [vmem:[%s6039_s5 + $0x48] sm:$0xff] (!%p497_p0)   ;;  %vm1358_vm2 = vcmask (!%p497_p0), 64512  }
  0x27   : > { %4446 = vmatprep.subr.bf16.mxu1 (!%p497_p0), %v5085_v11  ;;  %4462 = vmatprep.subr.bf16.mxu0 (!%p497_p0), %v5085_v11  ;;  %v4894_v28 = vld [vmem:[%s6039_s5 + $0x30] sm:$0xff] (!%p497_p0)   ;;  %v4895_v29 = vld [vmem:[%s6039_s5 + $0x60] sm:$0xff] (!%p497_p0)   ;;  %v4896_v30 = vld [vmem:[%s6039_s5 + $0x38] sm:$0xff] (!%p497_p0)   ;;  %vm1604_vm3 = vcmask (!%p497_p0), 1043456   ;;  %vm3964_vm5 = vcmask (!%p497_p0), 253952  }
  0x28   : > { %4448 = vmatprep.mubr.msk.bf16.mxu1 (!%p497_p0), %vm5086_vm1, %v5085_v11  ;;  %4464 = vmatprep.mubr.msk.bf16.mxu0 (!%p497_p0), %vm5086_vm1, %v5085_v11  ;;  %v4897_v31 = vld [vmem:[%s6039_s5 + $0x68] sm:$0xff] (!%p497_p0)   ;;  %v4898_v32 = vld [vmem:[%s6039_s5 + $0x50] sm:$0xff] (!%p497_p0)   ;;  %v4899_v33 = vld [vmem:[%s6039_s5 + $0x80] sm:$0xff] (!%p497_p0)  }
  0x29   : > { %v4900_v34 = vld [vmem:[%s6039_s5 + $0x58] sm:$0xff] (!%p497_p0)   ;;  %v4901_v35 = vld [vmem:[%s6039_s5 + $0x88] sm:$0xff] (!%p497_p0)   ;;  %v4902_v36 = vld [vmem:[%s6039_s5 + $0x70] sm:$0xff] (!%p497_p0)  }
  0x2a   : > { %v552_v0 = vld [vmem:[%s6066_s22] sm:$0xff] (!%p497_p0)  ;;  %4447 = vmatpush3.bf16.msra.mxu1 (!%p497_p0), %v4888_v12  ;;  %4463 = vmatpush3.bf16.msra.mxu0 (!%p497_p0), %v4889_v13  ;;  %v4904_v38 = vld [vmem:[%s6039_s5 + $0x78] sm:$0xff] (!%p497_p0)   ;;  %v4905_v39 = vld [vmem:[%s6039_s5 + $0xa8] sm:$0xff] (!%p497_p0)  }
  0x2b   : > { %4452 = vmatprep.subr.bf16.mxu1 (!%p497_p0), %v5085_v11  ;;  %4476 = vmatprep.subr.bf16.mxu0 (!%p497_p0), %v5085_v11  ;;  %v4903_v37 = vld [vmem:[%s6039_s5 + $0xa0] sm:$0xff] (!%p497_p0)   ;;  %v4906_v40 = vld [vmem:[%s6039_s5 + $0x90] sm:$0xff] (!%p497_p0)   ;;  %v4907_v41 = vld [vmem:[%s6039_s5 + $0x98] sm:$0xff] (!%p497_p0)  }
  0x2c   : > { %s547_s28 = scalar_select %p546_p1, %s5207_s12, 1  ;;  %v4040_v18 = vld [vmem:[%s6068_s3] ss:$0 sm:$0xff]  ;;  %v4908_v42 = vld [vmem:[%s6039_s5 + $0xb0] sm:$0xff]   ;;  %v4909_v43 = vld [vmem:[%s6039_s5 + $0xb8] sm:$0xff]  }
  0x2d   : > { %v4041_v20 = vld [vmem:[%s6069_s4] ss:$0 sm:$0xff]  ;;  %v4046_v52 = vld [vmem:[%s6040_s6 + $0x4] ss:$0 sm:$0xff] }
  0x2e   : > { %s4039_s29 = sshll.u32 %s547_s28, 3  ;;  %v4042_v63 = vld [vmem:[%s6040_s6] ss:$0 sm:$0xff]  ;;  %s3901_s28 = sld [smem:[#allocation4 + %s5207_s12]] }
  0x2f   : > { %s549_s20 = scalar_lea.vmem %s6067_s25, %s4039_s29  ;;  %s6072_s29 = sld [smem:[#allocation16_spill]] }
  0x30   : > { %v551_v1 = vld [vmem:[%s549_s20] sm:$0xff]  ;;  %s544_s20 = sand.u32 1, %s5074_s1   ;;  %s4294_s25 = sshll.u32 %s5207_s12, 4 }
  0x31   : > { %v5242_v2 = vadd.f32 %v552_v0, %v551_v1  ;;  %v4048_v1 = vld [vmem:[%s6040_s6 + $0x6] ss:$0 sm:$0xff]  ;;  %s545_s0 = scalar_lea.vmem [#allocation5], %s544_s20  ;;  %s5992_s23 = scalar_lea.hbm %s6052_s18, %s4294_s25 }
  0x32   : > { %s3979_s22 = sshll.u32 %s545_s0, 4  ;;  %s3967_s24 = scalar_lea.sflag [#allocation6], %s544_s20  ;;  %s5994_s22 = int_to_ptr.vmem [resolvable:$true] %s3979_s22 }
  0x33   : > { %v562_v3 = vsel %vm561_vm0, %v5242_v2, 0.0  ;;  %s5087_s12 = smov [#allocation5]  }
  0x34   : > { %563 = vadd.xlane.f32.xlu0 %v562_v3  ;;  %s3902_s30 = scalar_lea.vmem [#allocation2], %s3901_s28  ;;  %s5018_s28 = scalar_lea.vmem %s5994_s22, 16 }
  0x35   : > { %p5019_p2 = scmp.ne.s32.totalorder %s5994_s22, %s5018_s28 }
  0x37   : > { %p5020_p3 = pnand %p5019_p2, %p5224_p10 }
  0x39   : > { %p5021_p4 = pneg %p5020_p3 }
  0xc1   : > { %v564_v4 = vpop.xlane.xlu0 %563 }
  0xc2   : > { %v566_v5 = vmul.f32 0.03125, %v564_v4 }
  0xc4   : > { %v567_v6 = vsub.f32 %v5242_v2, %v566_v5 }
  0xc6   : > { %v568_v7 = vmul.f32 %v567_v6, %v567_v6 }
  0xc8   : > { %v569_v8 = vsel %vm561_vm0, %v568_v7, 0.0 }
  0xc9   : > { %570 = vadd.xlane.f32.xlu0 %v569_v8 }
 0x156   : > { %v571_v14 = vpop.xlane.xlu0 %570 }
 0x157   : > { %v572_v15 = vmul.f32 0.03125, %v571_v14 }
 0x159   : > { %v573_v16 = vadd.f32 1e-05, %v572_v15 }
 0x15b   : > { %4956 = vrsqrt.f32 %v573_v16  ;;  %v4044_v16 = vld [vmem:[%s6040_s6 + $0x2] ss:$0 sm:$0xff] }
 0x165   : > { %v4957_v17 = vpop.eup %4956 }
 0x166   : > { %v575_v19 = vmul.f32 %v4957_v17, %v567_v6 }
 0x168   : > { %v582_v21 = vmul.f32 %v4040_v18, %v575_v19  ;;  %v4047_v18 = vld [vmem:[%s6040_s6 + $0x5] ss:$0 sm:$0xff]  ;;  %v4050_v19 = vld [vmem:[%s6040_s6 + $0x8] ss:$0 sm:$0xff] }
 0x16a   : > { %v589_v22 = vadd.f32 %v4041_v20, %v582_v21 }
 0x16c   : > { %v5282_v25 = vpack.c.bf16 %v589_v22, %v589_v22 }
 0x16e   : > { %4449 = vmatmul.mubr.msk.bf16.vlgmr.msra.gmra.mrb[0].mxu1 %vm561_vm0, %v5282_v25  ;;  %4465 = vmatmul.mubr.msk.bf16.vlgmr.msra.gmra.mrb[0].mxu0 %vm561_vm0, %v5282_v25 }
 0x16f   : > { %4453 = vmatpush3.bf16.msra.mxu1 %v4890_v23  ;;  %4477 = vmatpush3.bf16.msra.mxu0 %v4891_v24 }
 0x170   : > { %4454 = vmatprep.subr.bf16.mxu1 %v5085_v11  ;;  %4478 = vmatprep.subr.bf16.mxu0 %v5085_v11 }
 0x171   : > { %4456 = vmatprep.mubr.msk.bf16.mxu1 %vm5086_vm1, %v5085_v11  ;;  %4480 = vmatprep.mubr.msk.bf16.mxu0 %vm5086_vm1, %v5085_v11 }
 0x173   : > { %4455 = vmatpush3.bf16.msra.mxu1 %v4892_v26  ;;  %4479 = vmatpush3.bf16.msra.mxu0 %v4893_v27 }
 0x174   : > { %4468 = vmatprep.subr.bf16.mxu1 %v5085_v11  ;;  %4492 = vmatprep.subr.bf16.mxu0 %v5085_v11 }
 0x176   : > { %4457 = vmatmul.mubr.msk.bf16.vlgmr.msra.gmra.mrb[4].mxu1 %vm561_vm0, %v5282_v25  ;;  %4481 = vmatmul.mubr.msk.bf16.vlgmr.msra.gmra.mrb[4].mxu0 %vm561_vm0, %v5282_v25 }
 0x177   : > { %4469 = vmatpush3.bf16.msra.mxu1 %v4894_v28  ;;  %4493 = vmatpush3.bf16.msra.mxu0 %v4895_v29 }
 0x178   : > { %4470 = vmatprep.subr.bf16.mxu1 %v5085_v11  ;;  %4494 = vmatprep.subr.bf16.mxu0 %v5085_v11 }
 0x179   : > { %4472 = vmatprep.mubr.msk.bf16.mxu1 %vm5086_vm1, %v5085_v11  ;;  %4496 = vmatprep.mubr.msk.bf16.mxu0 %vm5086_vm1, %v5085_v11 }
 0x17b   : > { %4471 = vmatpush3.bf16.msra.mxu1 %v4896_v30  ;;  %4495 = vmatpush3.bf16.msra.mxu0 %v4897_v31 }
 0x17c   : > { %4484 = vmatprep.subr.bf16.mxu1 %v5085_v11  ;;  %4508 = vmatprep.subr.bf16.mxu0 %v5085_v11 }
 0x17e   : > { %4473 = vmatmul.mubr.msk.bf16.vlgmr.msra.gmra.mrb[8].mxu1 %vm561_vm0, %v5282_v25  ;;  %4497 = vmatmul.mubr.msk.bf16.vlgmr.msra.gmra.mrb[8].mxu0 %vm561_vm0, %v5282_v25 }
 0x17f   : > { %4485 = vmatpush3.bf16.msra.mxu1 %v4898_v32  ;;  %4509 = vmatpush3.bf16.msra.mxu0 %v4899_v33 }
 0x180   : > { %4486 = vmatprep.subr.bf16.mxu1 %v5085_v11  ;;  %4510 = vmatprep.subr.bf16.mxu0 %v5085_v11 }
 0x181   : > { %4488 = vmatprep.mubr.msk.bf16.mxu1 %vm5086_vm1, %v5085_v11  ;;  %4512 = vmatprep.mubr.msk.bf16.mxu0 %vm5086_vm1, %v5085_v11 }
 0x183   : > { %4487 = vmatpush3.bf16.msra.mxu1 %v4900_v34  ;;  %4511 = vmatpush3.bf16.msra.mxu0 %v4901_v35  ;;  %v4043_v34 = vld [vmem:[%s6040_s6 + $0x1] ss:$0 sm:$0xff] }
 0x184   : > { %4500 = vmatprep.subr.bf16.mxu1 %v5085_v11  ;;  %4524 = vmatprep.subr.bf16.mxu0 %v5085_v11 }
 0x186   : > { %4489 = vmatmul.mubr.msk.bf16.vlgmr.msra.gmra.mrb[12].mxu1 %vm561_vm0, %v5282_v25  ;;  %4513 = vmatmul.mubr.msk.bf16.vlgmr.msra.gmra.mrb[12].mxu0 %vm561_vm0, %v5282_v25 }
 0x187   : > { %4501 = vmatpush3.bf16.msra.mxu1 %v4902_v36  ;;  %4525 = vmatpush3.bf16.msra.mxu0 %v4903_v37  ;;  %v4049_v37 = vld [vmem:[%s6040_s6 + $0x7] ss:$0 sm:$0xff] }
 0x188   : > { %4502 = vmatprep.subr.bf16.mxu1 %v5085_v11  ;;  %4526 = vmatprep.subr.bf16.mxu0 %v5085_v11 }
 0x189   : > { %4504 = vmatprep.mubr.msk.bf16.mxu1 %vm5086_vm1, %v5085_v11  ;;  %4528 = vmatprep.mubr.msk.bf16.mxu0 %vm5086_vm1, %v5085_v11 }
 0x18b   : > { %4503 = vmatpush3.bf16.msra.mxu1 %v4904_v38  ;;  %4527 = vmatpush3.bf16.msra.mxu0 %v4905_v39 }
 0x18c   : > { %4516 = vmatprep.subr.bf16.mxu1 %v5085_v11  ;;  %4540 = vmatprep.subr.bf16.mxu0 %v5085_v11 }
 0x18e   : > { %4505 = vmatmul.mubr.msk.bf16.vlgmr.msra.gmra.mrb[16].mxu1 %vm561_vm0, %v5282_v25  ;;  %4529 = vmatmul.mubr.msk.bf16.vlgmr.msra.gmra.mrb[16].mxu0 %vm561_vm0, %v5282_v25 }
 0x18f   : > { %4517 = vmatpush3.bf16.msra.mxu1 %v4906_v40  ;;  %4520 = vmatprep.mubr.msk.bf16.mxu1 %vm5086_vm1, %v5085_v11 }
 0x190   : > { %4518 = vmatprep.subr.bf16.mxu1 %v5085_v11  ;;  %4542 = vmatprep.mubr.msk.bf16.mxu0 %vm5086_vm1, %v5085_v11 }
 0x193   : > { %4519 = vmatpush3.bf16.msra.mxu1 %v4907_v41 }
 0x194   : > { %4532 = vmatprep.subr.bf16.mxu1 %v5085_v11 }
 0x196   : > { %4521 = vmatmul.mubr.msk.bf16.vlgmr.msra.gmra.mrb[20].mxu1 %vm561_vm0, %v5282_v25 }
 0x197   : > { %4533 = vmatpush3.bf16.msra.mxu1 %v4908_v42  ;;  %4536 = vmatprep.mubr.msk.bf16.mxu1 %vm5086_vm1, %v5085_v11 }
 0x198   : > { %4534 = vmatprep.subr.bf16.mxu1 %v5085_v11 }
 0x19b   : > { %4535 = vmatpush3.bf16.msra.mxu1 %v4909_v43 }
 0x19c   : > { %4546 = vmatprep.subr.bf16.mxu1 %v5085_v11 }
 0x19e   : > { %4537 = vmatmul.mubr.msk.bf16.vlgmr.msra.gmra.mrb[24].mxu1 %vm561_vm0, %v5282_v25 }
 0x19f   : > { %4548 = vmatprep.mubr.msk.bf16.mxu1 %vm5086_vm1, %v5085_v11 }
 0x241   : > { %v772_v44 = vpop.f32.mrb[0].mxu1  ;;  %v876_v45 = vpop.f32.mrb[0].mxu0 }
 0x242   : > { %v4450_v46 = vpop.f32.mrb[1].mxu1  ;;  %v4466_v47 = vpop.f32.mrb[1].mxu0  ;;  %v773_v3 = vadd.f32 %v4042_v63, %v772_v44  ;;  %v877_v20 = vadd.f32 %v4044_v16, %v876_v45 }
 0x243   : > { %v775_v48 = vpop.f32.mrb[2].mxu1  ;;  %v879_v49 = vpop.f32.mrb[2].mxu0 }
 0x244   : > { %v4451_v50 = vpop.f32.mrb[3].mxu1  ;;  %v4467_v51 = vpop.f32.mrb[3].mxu0  ;;  %v1350_v12 = vpack.c.bf16 %v773_v3, %v773_v3  ;;  %v1352_v29 = vpack.c.bf16 %v877_v20, %v877_v20  ;;  %v554_v3 = vlaneseq }
 0x245   : > { %v4045_v50 = vld [vmem:[%s6040_s6 + $0x3] ss:$0 sm:$0xff] }
 0x249   : > { %v824_v53 = vpop.f32.mrb[4].mxu1  ;;  %v980_v54 = vpop.f32.mrb[4].mxu0 }
 0x24a   : > { %v981_v55 = vadd.f32 %v4046_v52, %v980_v54  ;;  %v4458_v56 = vpop.f32.mrb[5].mxu1  ;;  %v4482_v57 = vpop.f32.mrb[5].mxu0  ;;  %v825_v38 = vadd.f32 %v4043_v34, %v824_v53  ;;  %v4051_v52 = vld [vmem:[%s6040_s6 + $0x9] ss:$0 sm:$0xff] }
 0x24b   : > { %v827_v58 = vpop.f32.mrb[6].mxu1  ;;  %v983_v59 = vpop.f32.mrb[6].mxu0 }
 0x24c   : > { %v1354_v60 = vpack.c.bf16 %v981_v55, %v981_v55  ;;  %v4459_v61 = vpop.f32.mrb[7].mxu1  ;;  %v4483_v62 = vpop.f32.mrb[7].mxu0  ;;  %v1351_v46 = vpack.c.bf16 %v825_v38, %v825_v38 }
 0x24e   : > { %v1363_v0 = vsel %vm1358_vm2, %v1354_v60, 0 }
 0x24f   : > { %4541 = vmatpush3.bf16.xpose.msra.mxu0 %v1363_v0 }
 0x250   : > { %4552 = vmatprep.subr.bf16.mxu0 %v5085_v11 }
 0x251   : > { %v928_v4 = vpop.f32.mrb[8].mxu1  ;;  %v1084_v5 = vpop.f32.mrb[8].mxu0 }
 0x252   : > { %v1085_v6 = vadd.f32 %v4048_v1, %v1084_v5  ;;  %v4474_v7 = vpop.f32.mrb[9].mxu1  ;;  %v4498_v8 = vpop.f32.mrb[9].mxu0  ;;  %v929_v53 = vadd.f32 %v4045_v50, %v928_v4  ;;  %v555_v4 = vshrl.u32 %v554_v3, 7  ;;  %v557_v5 = vand.u32 127, %v554_v3 }
 0x253   : > { %v931_v9 = vpop.f32.mrb[10].mxu1  ;;  %v1087_v10 = vpop.f32.mrb[10].mxu0 }
 0x254   : > { %v1356_v13 = vpack.c.bf16 %v1085_v6, %v1085_v6  ;;  %v4475_v14 = vpop.f32.mrb[11].mxu1  ;;  %v4499_v15 = vpop.f32.mrb[11].mxu0  ;;  %v1353_v58 = vpack.c.bf16 %v929_v53, %v929_v53  ;;  %vm5464_vm4 = vcmp.gt.s32.totalorder %v557_v5, %v555_v4 }
 0x256   : > { %v1455_v17 = vsel %vm1358_vm2, %v1356_v13, 0  ;;  %4543 = vmatmul.mubr.msk.bf16.vlgmr.msra.gmra.mrb[20].mxu0 %vm1358_vm2, %v1350_v12 }
 0x257   : > { %4553 = vmatpush3.bf16.xpose.msra.mxu0 %v1455_v17  ;;  %4554 = vmatprep.mubr.msk.bf16.mxu0 %vm5086_vm1, %v5085_v11 }
 0x258   : > { %4564 = vmatprep.subr.bf16.mxu0 %v5085_v11 }
 0x259   : > { %v1032_v21 = vpop.f32.mrb[12].mxu1  ;;  %v1188_v22 = vpop.f32.mrb[12].mxu0 }
 0x25a   : > { %v1033_v23 = vadd.f32 %v4047_v18, %v1032_v21  ;;  %v1189_v24 = vadd.f32 %v4050_v19, %v1188_v22  ;;  %v4490_v25 = vpop.f32.mrb[13].mxu1  ;;  %v4514_v26 = vpop.f32.mrb[13].mxu0 }
 0x25b   : > { %v1035_v27 = vpop.f32.mrb[14].mxu1  ;;  %v1191_v28 = vpop.f32.mrb[14].mxu0 }
 0x25c   : > { %v1355_v30 = vpack.c.bf16 %v1033_v23, %v1033_v23  ;;  %v1597_v31 = vpack.c.bf16 %v1189_v24, %v1189_v24  ;;  %v4491_v32 = vpop.f32.mrb[15].mxu1  ;;  %v4515_v33 = vpop.f32.mrb[15].mxu0 }
 0x25e   : > { %v1409_v35 = vsel %vm1358_vm2, %v1355_v30, 0  ;;  %v1606_v36 = vsel %vm1604_vm3, %v1597_v31, 0  ;;  %4555 = vmatmul.mubr.msk.bf16.vlgmr.msra.gmra.mrb[24].mxu0 %vm1358_vm2, %v1352_v29 }
 0x25f   : > { %4547 = vmatpush3.bf16.xpose.msra.mxu1 %v1409_v35  ;;  %4565 = vmatpush3.bf16.msra.mxu0 %v1606_v36 }
 0x260   : > { %4558 = vmatprep.subr.bf16.mxu1 %v5085_v11  ;;  %4566 = vmatprep.mubr.msk.bf16.mxu0 %vm5086_vm1, %v5085_v11 }
 0x261   : > { %v1136_v39 = vpop.f32.mrb[16].mxu1  ;;  %v5443_v40 = vpop.f32.mrb[16].mxu0  ;;  %4576 = vmatprep.subr.bf16.mxu0 %v5085_v11 }
 0x262   : > { %v1137_v41 = vadd.f32 %v4049_v37, %v1136_v39  ;;  %v4506_v42 = vpop.f32.mrb[17].mxu1  ;;  %v4530_v43 = vpop.f32.mrb[17].mxu0 }
 0x263   : > { %v1139_v44 = vpop.f32.mrb[18].mxu1  ;;  %v1295_v45 = vpop.f32.mrb[18].mxu0 }
 0x264   : > { %v1357_v47 = vpack.c.bf16 %v1137_v41, %v1137_v41  ;;  %v4507_v48 = vpop.f32.mrb[19].mxu1  ;;  %v4531_v49 = vpop.f32.mrb[19].mxu0 }
 0x266   : > { %v1501_v51 = vsel %vm1358_vm2, %v1357_v47, 0  ;;  %4549 = vmatmul.mubr.msk.bf16.vlgmr.msra.gmra.mrb[28].mxu1 %vm1358_vm2, %v1351_v46 }
 0x267   : > { %4559 = vmatpush3.bf16.xpose.msra.mxu1 %v1501_v51  ;;  %4560 = vmatprep.mubr.msk.bf16.mxu1 %vm5086_vm1, %v5085_v11 }
 0x268   : > { %4570 = vmatprep.subr.bf16.mxu1 %v5085_v11 }
 0x269   : > { %v1240_v54 = vpop.f32.mrb[20].mxu1 }
 0x26a   : > { %v1241_v55 = vadd.f32 %v4051_v52, %v1240_v54  ;;  %v4522_v56 = vpop.f32.mrb[21].mxu1  ;;  %v4052_v54 = vld [vmem:[%s6040_s6 + $0xa] ss:$0 sm:$0xff] }
 0x26b   : > { %v1243_v57 = vpop.f32.mrb[22].mxu1 }
 0x26c   : > { %v1598_v59 = vpack.c.bf16 %v1241_v55, %v1241_v55  ;;  %v4523_v60 = vpop.f32.mrb[23].mxu1  ;;  %v1293_v55 = vadd.f32 %v4052_v54, %v5443_v40 }
 0x26e   : > { %v1652_v61 = vsel %vm1604_vm3, %v1598_v59, 0  ;;  %4561 = vmatmul.mubr.msk.bf16.vlgmr.msra.gmra.mrb[32].mxu1 %vm1358_vm2, %v1353_v58  ;;  %v1599_v58 = vpack.c.bf16 %v1293_v55, %v1293_v55 }
 0x26f   : > { %4571 = vmatpush3.bf16.msra.mxu1 %v1652_v61  ;;  %4572 = vmatprep.mubr.msk.bf16.mxu1 %vm5086_vm1, %v5085_v11 }
 0x270   : > { %4582 = vmatprep.subr.bf16.mxu1 %v5085_v11  ;;  %v1698_v61 = vsel %vm1604_vm3, %v1599_v58, 0 }
 0x271   : > { %v5462_v62 = vpop.f32.mrb[24].mxu1 }
 0x272   : > { %v4538_v63 = vpop.f32.mrb[25].mxu1 }
 0x273   : > { %v1347_v0 = vpop.f32.mrb[26].mxu1 }
 0x274   : > { %v4539_v1 = vpop.f32.mrb[27].mxu1 }
 0x275   : > { %v4053_v1 = vld [vmem:[%s6040_s6 + $0xb] ss:$0 sm:$0xff] }
 0x276   : > { %v1345_v4 = vadd.f32 %v4053_v1, %v5462_v62 }
 0x329   : > { %v1399_v7 = vpop.f32.mrb[20].mxu0 }
 0x32a   : > { %v1545_v8 = vsel %vm5464_vm4, -1e+30, %v1399_v7  ;;  %v4544_v9 = vpop.f32.mrb[21].mxu0 }
 0x32b   : > { %v1402_v10 = vpop.f32.mrb[22].mxu0  ;;  %v1549_v12 = vsel %vm1358_vm2, %v1545_v8, -inf }
 0x32c   : > { %1550 = vmax.xlane.f32.xlu1 %v1549_v12  ;;  %v4545_v13 = vpop.f32.mrb[23].mxu0 }
 0x331   : > { %v1491_v14 = vpop.f32.mrb[24].mxu0 }
 0x332   : > { %v1547_v15 = vsel %vm5464_vm4, -1e+30, %v1491_v14  ;;  %v4556_v16 = vpop.f32.mrb[25].mxu0 }
 0x333   : > { %v1494_v17 = vpop.f32.mrb[26].mxu0  ;;  %v1555_v18 = vsel %vm1358_vm2, %v1547_v15, -inf }
 0x334   : > { %1556 = vmax.xlane.f32.xlu0 %v1555_v18  ;;  %v4557_v19 = vpop.f32.mrb[27].mxu0  ;;  %v1791_v17 = vld [vmem:[%s6041_s7 + $0x4] sm:$0xf] }
 0x335   : > { %v1844_v18 = vsel %vm1604_vm3, %v1791_v17, 0  ;;  %v1792_v19 = vld [vmem:[%s6041_s7 + $0x8] sm:$0xf] }
 0x339   : > { %v1445_v20 = vpop.f32.mrb[28].mxu1 }
 0x33a   : > { %v1546_v21 = vsel %vm5464_vm4, -1e+30, %v1445_v20  ;;  %v4550_v22 = vpop.f32.mrb[29].mxu1 }
 0x33b   : > { %v1448_v23 = vpop.f32.mrb[30].mxu1  ;;  %v1552_v24 = vsel %vm1358_vm2, %v1546_v21, -inf }
 0x33c   : > { %1553 = vmax.xlane.f32.xlu1 %v1552_v24  ;;  %v4551_v25 = vpop.f32.mrb[31].mxu1  ;;  %v1890_v23 = vsel %vm1604_vm3, %v1792_v19, 0  ;;  %v4103_v19 = vld [vmem:[%s6043_s9] ss:$0 sm:$0xff] }
 0x341   : > { %v1537_v26 = vpop.f32.mrb[32].mxu1 }
 0x342   : > { %v1548_v27 = vsel %vm5464_vm4, -1e+30, %v1537_v26  ;;  %v4562_v28 = vpop.f32.mrb[33].mxu1 }
 0x343   : > { %v1540_v29 = vpop.f32.mrb[34].mxu1  ;;  %v1558_v30 = vsel %vm1358_vm2, %v1548_v27, -inf }
 0x344   : > { %1559 = vmax.xlane.f32.xlu1 %v1558_v30  ;;  %v4563_v31 = vpop.f32.mrb[35].mxu1 }
 0x345   : > { %v1793_v31 = vld [vmem:[%s6041_s7 + $0xc] sm:$0xf] }
 0x3b9   : > { %v1551_v32 = vpop.xlane.xlu1 %1550 }
 0x3ba   : > { %v1561_v33 = vsub.f32 %v1545_v8, %v1551_v32  ;;  %v1600_v8 = vpack.c.bf16 %v1345_v4, %v1345_v4  ;;  %v4102_v4 = vld [vmem:[%s6042_s8] ss:$0 sm:$0xff] }
 0x3bc   : > { %v1565_v34 = vmul.f32 1.442695, %v1561_v33  ;;  %v1744_v12 = vsel %vm1604_vm3, %v1600_v8, 0 }
 0x3be   : > { %4958 = vpow2.f32 %v1565_v34 }
 0x3c1   : > { %v1557_v35 = vpop.xlane.xlu0 %1556 }
 0x3c2   : > { %v1563_v36 = vsub.f32 %v1547_v15, %v1557_v35  ;;  %v1790_v15 = vld [vmem:[%s6041_s7] sm:$0xf]  ;;  %v1936_v35 = vsel %vm1604_vm3, %v1793_v31, 0  ;;  %v4918_v31 = vld [vmem:[%s6047_s13 + $0x30] sm:$0xff]  }
 0x3c3   : > { %v1798_v16 = vsel %vm1604_vm3, %v1790_v15, 0 }
 0x3c4   : > { %v1569_v37 = vmul.f32 1.442695, %v1563_v36 }
 0x3c6   : > { %4960 = vpow2.f32 %v1569_v37 }
 0x3c8   : > { %v4959_v38 = vpop.eup %4958 }
 0x3c9   : > { %v1554_v39 = vpop.xlane.xlu1 %1553  ;;  %v1573_v41 = vsel %vm1358_vm2, %v4959_v38, 0.0 }
 0x3ca   : > { %v1562_v42 = vsub.f32 %v1546_v21, %v1554_v39  ;;  %1574 = vadd.xlane.f32.xlu0 %v1573_v41 }
 0x3cc   : > { %v1567_v43 = vmul.f32 1.442695, %v1562_v42 }
 0x3ce   : > { %4962 = vpow2.f32 %v1567_v43 }
 0x3d0   : > { %v4961_v44 = vpop.eup %4960 }
 0x3d1   : > { %v1560_v45 = vpop.xlane.xlu1 %1559  ;;  %v1579_v46 = vsel %vm1358_vm2, %v4961_v44, 0.0 }
 0x3d2   : > { %v1564_v47 = vsub.f32 %v1548_v27, %v1560_v45  ;;  %1580 = vadd.xlane.f32.xlu0 %v1579_v46 }
 0x3d4   : > { %v1571_v48 = vmul.f32 1.442695, %v1564_v47 }
 0x3d6   : > { %4964 = vpow2.f32 %v1571_v48 }
 0x3d8   : > { %v4963_v49 = vpop.eup %4962 }
 0x3d9   : > { %v1576_v50 = vsel %vm1358_vm2, %v4963_v49, 0.0 }
 0x3da   : > { %1577 = vadd.xlane.f32.xlu1 %v1576_v50 }
 0x3e0   : > { %v4965_v51 = vpop.eup %4964 }
 0x3e1   : > { %v1582_v52 = vsel %vm1358_vm2, %v4965_v51, 0.0 }
 0x3e2   : > { %1583 = vadd.xlane.f32.xlu1 %v1582_v52 }
 0x457   : > { %v1575_v53 = vpop.xlane.xlu0 %1574 }
 0x458   : > { %4966 = vrcp.f32 %v1575_v53 }
 0x45f   : > { %v1581_v56 = vpop.xlane.xlu0 %1580 }
 0x460   : > { %4968 = vrcp.f32 %v1581_v56 }
 0x462   : > { %v4967_v57 = vpop.eup %4966 }
 0x463   : > { %v1586_v59 = vmul.f32 %v4967_v57, %v4959_v38 }
 0x465   : > { %v1593_v60 = vpack.c.bf16 %v1586_v59, %v1586_v59 }
 0x467   : > { %4567 = vmatmul.mubr.msk.bf16.vlgmr.msra.gmra.mrb[28].mxu0 %vm1358_vm2, %v1593_v60  ;;  %v1578_v63 = vpop.xlane.xlu1 %1577 }
 0x468   : > { %4577 = vmatpush3.bf16.msra.mxu0 %v1698_v61  ;;  %4970 = vrcp.f32 %v1578_v63  ;;  %4578 = vmatprep.mubr.msk.bf16.mxu0 %vm5086_vm1, %v5085_v11 }
 0x469   : > { %4588 = vmatprep.subr.bf16.mxu0 %v5085_v11 }
 0x46a   : > { %v4969_v0 = vpop.eup %4968 }
 0x46b   : > { %v1590_v40 = vmul.f32 %v4969_v0, %v4961_v44 }
 0x46d   : > { %v1595_v3 = vpack.c.bf16 %v1590_v40, %v1590_v40 }
 0x46f   : > { %4579 = vmatmul.mubr.msk.bf16.vlgmr.msra.gmra.mrb[32].mxu0 %vm1358_vm2, %v1595_v3  ;;  %v1584_v5 = vpop.xlane.xlu1 %1583 }
 0x470   : > { %4972 = vrcp.f32 %v1584_v5  ;;  %4590 = vmatprep.mubr.msk.bf16.mxu0 %vm5086_vm1, %v5085_v11  ;;  %4589 = vmatpush3.bf16.msra.mxu0 %v1798_v16 }
 0x471   : > { %4600 = vmatprep.subr.bf16.mxu0 %v5085_v11 }
 0x472   : > { %v4971_v7 = vpop.eup %4970 }
 0x473   : > { %v1588_v9 = vmul.f32 %v4971_v7, %v4963_v49 }
 0x475   : > { %v1594_v10 = vpack.c.bf16 %v1588_v9, %v1588_v9 }
 0x477   : > { %4573 = vmatmul.mubr.msk.bf16.vlgmr.msra.gmra.mrb[36].mxu1 %vm1358_vm2, %v1594_v10 }
 0x478   : > { %4583 = vmatpush3.bf16.msra.mxu1 %v1744_v12  ;;  %4584 = vmatprep.mubr.msk.bf16.mxu1 %vm5086_vm1, %v5085_v11 }
 0x479   : > { %4594 = vmatprep.subr.bf16.mxu1 %v5085_v11 }
 0x47a   : > { %v4973_v62 = vpop.eup %4972 }
 0x47b   : > { %v1592_v13 = vmul.f32 %v4973_v62, %v4965_v51 }
 0x47d   : > { %v1596_v14 = vpack.c.bf16 %v1592_v13, %v1592_v13 }
 0x47f   : > { %4585 = vmatmul.mubr.msk.bf16.vlgmr.msra.gmra.mrb[40].mxu1 %vm1358_vm2, %v1596_v14  ;;  %v4910_v14 = vld [vmem:[%s6045_s11] sm:$0xff]  }
 0x480   : > { %4596 = vmatprep.mubr.msk.bf16.mxu1 %vm5086_vm1, %v5085_v11  ;;  %4595 = vmatpush3.bf16.msra.mxu1 %v1844_v18 }
 0x481   : > { %4606 = vmatprep.subr.bf16.mxu1 %v5085_v11 }
 0x53a   : > { %v1642_v20 = vpop.f32.mrb[28].mxu0 }
 0x53b   : > { %v1786_v21 = vpack.c.bf16 %v1642_v20, %v1642_v20  ;;  %v4568_v22 = vpop.f32.mrb[29].mxu0 }
 0x53c   : > { %v1645_v24 = vpop.f32.mrb[30].mxu0 }
 0x53d   : > { %v4569_v25 = vpop.f32.mrb[31].mxu0  ;;  %4591 = vmatmul.mubr.msk.bf16.vlgmr.msra.gmra.mrb[36].mxu0 %vm1358_vm2, %v1786_v21  ;;  %v4104_v21 = vld [vmem:[%s6044_s10] ss:$0 sm:$0xff] }
 0x53e   : > { %4601 = vmatpush3.bf16.msra.mxu0 %v1890_v23  ;;  %4602 = vmatprep.mubr.msk.bf16.mxu0 %vm5086_vm1, %v5085_v11  ;;  %v4912_v25 = vld [vmem:[%s6047_s13] sm:$0xff]  }
 0x53f   : > { %4612 = vmatprep.subr.bf16.mxu0 %v5085_v11 }
 0x542   : > { %v1734_v26 = vpop.f32.mrb[32].mxu0 }
 0x543   : > { %v1788_v27 = vpack.c.bf16 %v1734_v26, %v1734_v26  ;;  %v4580_v28 = vpop.f32.mrb[33].mxu0  ;;  %v4913_v26 = vld [vmem:[%s6047_s13 + $0x8] sm:$0xff]  }
 0x544   : > { %v1737_v29 = vpop.f32.mrb[34].mxu0  ;;  %v4915_v28 = vld [vmem:[%s6047_s13 + $0x18] sm:$0xff]  }
 0x545   : > { %v4581_v30 = vpop.f32.mrb[35].mxu0  ;;  %4603 = vmatmul.mubr.msk.bf16.vlgmr.msra.gmra.mrb[40].mxu0 %vm1358_vm2, %v1788_v27  ;;  %v4914_v27 = vld [vmem:[%s6047_s13 + $0x10] sm:$0xff]   ;;  %v4916_v29 = vld [vmem:[%s6047_s13 + $0x20] sm:$0xff]  }
 0x546   : > { %4616 = vmatprep.mubr.msk.bf16.mxu0 %vm5086_vm1, %v5085_v11  ;;  %4613 = vmatpush3.bf16.msra.mxu0 %v4910_v14  ;;  %v4917_v30 = vld [vmem:[%s6047_s13 + $0x28] sm:$0xff]   ;;  %v4926_v14 = vld [vmem:[%s6039_s5 + $0xd8] sm:$0xff]  }
 0x547   : > { %4614 = vmatprep.subr.bf16.mxu0 %v5085_v11 }
 0x54a   : > { %v1688_v32 = vpop.f32.mrb[36].mxu1 }
 0x54b   : > { %v1787_v33 = vpack.c.bf16 %v1688_v32, %v1688_v32  ;;  %v4574_v34 = vpop.f32.mrb[37].mxu1  ;;  %v4919_v32 = vld [vmem:[%s6047_s13 + $0x38] sm:$0xff]  }
 0x54c   : > { %v1691_v36 = vpop.f32.mrb[38].mxu1 }
 0x54d   : > { %v4575_v37 = vpop.f32.mrb[39].mxu1  ;;  %4597 = vmatmul.mubr.msk.bf16.vlgmr.msra.gmra.mrb[44].mxu1 %vm1358_vm2, %v1787_v33  ;;  %v4105_v33 = vld [vmem:[%s6072_s29] ss:$0 sm:$0xff] }
 0x54e   : > { %4607 = vmatpush3.bf16.msra.mxu1 %v1936_v35  ;;  %4608 = vmatprep.mubr.msk.bf16.mxu1 %vm5086_vm1, %v5085_v11 }
 0x54f   : > { %4620 = vmatprep.subr.bf16.mxu1 %v5085_v11 }
 0x552   : > { %v1780_v38 = vpop.f32.mrb[40].mxu1 }
 0x553   : > { %v1789_v39 = vpack.c.bf16 %v1780_v38, %v1780_v38  ;;  %v4586_v41 = vpop.f32.mrb[41].mxu1 }
 0x554   : > { %v1783_v42 = vpop.f32.mrb[42].mxu1 }
 0x555   : > { %v4587_v43 = vpop.f32.mrb[43].mxu1  ;;  %4609 = vmatmul.mubr.msk.bf16.vlgmr.msra.gmra.mrb[48].mxu1 %vm1358_vm2, %v1789_v39 }
 0x556   : > { %4636 = vmatprep.mubr.msk.bf16.mxu1 %vm5086_vm1, %v5085_v11  ;;  %4621 = vmatpush3.bf16.msra.mxu1 %v4912_v25  ;;  %v4938_v25 = vld [vmem:[%s6039_s5 + $0x130] sm:$0xff]  }
 0x557   : > { %4622 = vmatprep.subr.bf16.mxu1 %v5085_v11 }
 0x55a   : > { %4623 = vmatpush3.bf16.msra.mxu1 %v4913_v26  ;;  %v4939_v26 = vld [vmem:[%s6039_s5 + $0x138] sm:$0xff]  }
 0x55b   : > { %4624 = vmatprep.subr.bf16.mxu1 %v5085_v11 }
 0x55e   : > { %4625 = vmatpush3.bf16.msra.mxu1 %v4914_v27  ;;  %v4940_v27 = vld [vmem:[%s6039_s5 + $0x150] sm:$0xff]  }
 0x55f   : > { %4626 = vmatprep.subr.bf16.mxu1 %v5085_v11 }
 0x562   : > { %4627 = vmatpush3.bf16.msra.mxu1 %v4915_v28  ;;  %v4941_v28 = vld [vmem:[%s6039_s5 + $0x158] sm:$0xff]  }
 0x563   : > { %4628 = vmatprep.subr.bf16.mxu1 %v5085_v11 }
 0x566   : > { %4629 = vmatpush3.bf16.msra.mxu1 %v4916_v29  ;;  %v4942_v29 = vld [vmem:[%s6039_s5 + $0x170] sm:$0xff]  }
 0x567   : > { %4630 = vmatprep.subr.bf16.mxu1 %v5085_v11 }
 0x56a   : > { %4631 = vmatpush3.bf16.msra.mxu1 %v4917_v30  ;;  %v4943_v30 = vld [vmem:[%s6039_s5 + $0x178] sm:$0xff]  }
 0x56b   : > { %4632 = vmatprep.subr.bf16.mxu1 %v5085_v11 }
 0x56e   : > { %4633 = vmatpush3.bf16.msra.mxu1 %v4918_v31  ;;  %v4187_v31 = vld [vmem:[%s6040_s6 + $0x10] ss:$0 sm:$0xff] }
 0x56f   : > { %4634 = vmatprep.subr.bf16.mxu1 %v5085_v11 }
 0x572   : > { %4635 = vmatpush3.bf16.msra.mxu1 %v4919_v32 }
 0x573   : > { %4672 = vmatprep.subr.bf16.mxu1 %v5085_v11 }
 0x610   : > { %v1834_v44 = vpop.f32.mrb[36].mxu0 }
 0x611   : > { %v4592_v45 = vpop.f32.mrb[37].mxu0  ;;  %v1978_v53 = vsel %vm561_vm0, %v1834_v44, 0.0 }
 0x612   : > { %v1837_v46 = vpop.f32.mrb[38].mxu0 }
 0x613   : > { %v4593_v47 = vpop.f32.mrb[39].mxu0 }
 0x618   : > { %v1926_v48 = vpop.f32.mrb[40].mxu0 }
 0x619   : > { %v4604_v49 = vpop.f32.mrb[41].mxu0  ;;  %v1981_v58 = vsel %vm561_vm0, %v1926_v48, 0.0  ;;  %v4118_v48 = vld [vmem:[%s6048_s14] ss:$0 sm:$0xff] }
 0x61a   : > { %v1929_v50 = vpop.f32.mrb[42].mxu0 }
 0x61b   : > { %v4605_v51 = vpop.f32.mrb[43].mxu0 }
 0x620   : > { %v1880_v52 = vpop.f32.mrb[44].mxu1 }
 0x621   : > { %v1979_v54 = vsel %vm561_vm0, %v1880_v52, 0.0  ;;  %v4598_v55 = vpop.f32.mrb[45].mxu1 }
 0x622   : > { %v1980_v56 = vadd.f32 %v1979_v54, %v1978_v53  ;;  %v1883_v57 = vpop.f32.mrb[46].mxu1 }
 0x623   : > { %v4599_v59 = vpop.f32.mrb[47].mxu1 }
 0x624   : > { %v1982_v60 = vadd.f32 %v1981_v58, %v1980_v56 }
 0x628   : > { %v1972_v61 = vpop.f32.mrb[48].mxu1 }
 0x629   : > { %v1983_v63 = vsel %vm561_vm0, %v1972_v61, 0.0  ;;  %v4610_v0 = vpop.f32.mrb[49].mxu1  ;;  %v4921_v61 = vld [vmem:[%s6039_s5 + $0x100] sm:$0xff]  }
 0x62a   : > { %v1984_v40 = vadd.f32 %v1983_v63, %v1982_v60  ;;  %v1975_v1 = vpop.f32.mrb[50].mxu1  ;;  %v4920_v60 = vld [vmem:[%s6039_s5 + $0xc0] sm:$0xff]   ;;  %v4922_v63 = vld [vmem:[%s6039_s5 + $0xc8] sm:$0xff]  }
 0x62b   : > { %v4611_v3 = vpop.f32.mrb[51].mxu1  ;;  %v4923_v0 = vld [vmem:[%s6039_s5 + $0x108] sm:$0xff]  }
 0x62c   : > { %v1985_v5 = vadd.f32 %v1984_v40, %v5242_v2  ;;  %v4911_v2 = vld [vmem:[%s6045_s11 + $0x8] sm:$0xff]  }
 0x62d   : > { %4615 = vmatpush3.bf16.msra.mxu0 %v4911_v2  ;;  %v4927_v2 = vld [vmem:[%s6039_s5 + $0x128] sm:$0xff]  }
 0x62e   : > { %v5548_v7 = vadd.f32 %v4102_v4, %v1985_v5  ;;  %4640 = vmatprep.subr.bf16.mxu0 %v5085_v11  ;;  %v4121_v5 = vld [vmem:[%s6068_s3 + $0x1] ss:$0 sm:$0xff] }
 0x630   : > { %v1996_v8 = vsel %vm561_vm0, %v5548_v7, 0.0 }
 0x631   : > { %1997 = vadd.xlane.f32.xlu0 %v1996_v8  ;;  %v4122_v8 = vld [vmem:[%s6069_s4 + $0x1] ss:$0 sm:$0xff] }
 0x6be   : > { %v1998_v9 = vpop.xlane.xlu0 %1997 }
 0x6bf   : > { %v1999_v10 = vmul.f32 0.03125, %v1998_v9 }
 0x6c1   : > { %v2000_v12 = vsub.f32 %v5548_v7, %v1999_v10 }
 0x6c3   : > { %v2001_v62 = vmul.f32 %v2000_v12, %v2000_v12 }
 0x6c5   : > { %v2002_v13 = vsel %vm561_vm0, %v2001_v62, 0.0  ;;  %v4925_v62 = vld [vmem:[%s6039_s5 + $0x120] sm:$0xff]  }
 0x6c6   : > { %2003 = vadd.xlane.f32.xlu1 %v2002_v13 }
 0x753   : > { %v2004_v15 = vpop.xlane.xlu1 %2003 }
 0x754   : > { %v2005_v16 = vmul.f32 0.03125, %v2004_v15  ;;  %v4928_v15 = vld [vmem:[%s6039_s5 + $0xe0] sm:$0xff]  }
 0x756   : > { %v2006_v17 = vadd.f32 1e-05, %v2005_v16  ;;  %v4929_v16 = vld [vmem:[%s6039_s5 + $0x140] sm:$0xff]  }
 0x758   : > { %4974 = vrsqrt.f32 %v2006_v17  ;;  %v4930_v17 = vld [vmem:[%s6039_s5 + $0xe8] sm:$0xff]  }
 0x762   : > { %v4975_v18 = vpop.eup %4974 }
 0x763   : > { %v2008_v20 = vmul.f32 %v4975_v18, %v2000_v12  ;;  %v4924_v12 = vld [vmem:[%s6039_s5 + $0xd0] sm:$0xff]   ;;  %v4931_v18 = vld [vmem:[%s6039_s5 + $0x148] sm:$0xff]  }
 0x765   : > { %v2015_v22 = vmul.f32 %v4103_v19, %v2008_v20  ;;  %v4932_v19 = vld [vmem:[%s6039_s5 + $0xf0] sm:$0xff]   ;;  %v4933_v20 = vld [vmem:[%s6039_s5 + $0x160] sm:$0xff]  }
 0x767   : > { %v2022_v23 = vadd.f32 %v4104_v21, %v2015_v22  ;;  %v4934_v21 = vld [vmem:[%s6039_s5 + $0xf8] sm:$0xff]   ;;  %v4935_v22 = vld [vmem:[%s6039_s5 + $0x168] sm:$0xff]  }
 0x769   : > { %v2027_v24 = vpack.c.bf16 %v2022_v23, %v2022_v23  ;;  %v4936_v23 = vld [vmem:[%s6039_s5 + $0x110] sm:$0xff]  }
 0x76b   : > { %4617 = vmatmul.mubr.msk.bf16.vlgmr.msra.gmra.mrb[44].mxu0 %vm561_vm0, %v2027_v24  ;;  %v4937_v24 = vld [vmem:[%s6039_s5 + $0x118] sm:$0xff]  }
 0x76c   : > { %4644 = vmatprep.mubr.msk.bf16.mxu0 %vm5086_vm1, %v5085_v11  ;;  %4641 = vmatpush3.bf16.msra.mxu0 %v4920_v60  ;;  %v4185_v60 = vld [vmem:[%s6040_s6 + $0xe] ss:$0 sm:$0xff] }
 0x76d   : > { %4642 = vmatprep.subr.bf16.mxu0 %v5085_v11 }
 0x770   : > { %4643 = vmatpush3.bf16.msra.mxu0 %v4922_v63 }
 0x771   : > { %4648 = vmatprep.subr.bf16.mxu0 %v5085_v11 }
 0x83e   : > { %v2084_v34 = vpop.f32.mrb[44].mxu0 }
 0x83f   : > { %v2085_v35 = vadd.f32 %v4105_v33, %v2084_v34  ;;  %v4618_v36 = vpop.f32.mrb[45].mxu0 }
 0x840   : > { %v2087_v37 = vpop.f32.mrb[46].mxu0 }
 0x841   : > { %v4109_v38 = vmul.f32 -1.702, %v2085_v35  ;;  %v4619_v39 = vpop.f32.mrb[47].mxu0 }
 0x843   : > { %v2092_v41 = vmul.f32 1.442695, %v4109_v38 }
 0x845   : > { %4976 = vpow2.f32 %v2092_v41 }
 0x84f   : > { %v4977_v42 = vpop.eup %4976 }
 0x850   : > { %v2094_v43 = vadd.f32 1.0, %v4977_v42 }
 0x852   : > { %4978 = vrcp.f32 %v2094_v43  ;;  %v4183_v43 = vld [vmem:[%s6040_s6 + $0xc] ss:$0 sm:$0xff] }
 0x85c   : > { %v4979_v44 = vpop.eup %4978 }
 0x85d   : > { %v2097_v45 = vmul.f32 %v4979_v44, %v2085_v35 }
 0x85f   : > { %v2114_v46 = vpack.c.bf16 %v2097_v45, %v2097_v45  ;;  %v4189_v45 = vld [vmem:[%s6040_s6 + $0x12] ss:$0 sm:$0xff] }
 0x861   : > { %4637 = vmatmul.mubr.bf16.vlgmr.msra.gmra.mrb[52].mxu1 %v2114_v46 }
 0x862   : > { %4676 = vmatprep.mubr.msk.bf16.mxu1 %vm5086_vm1, %v5085_v11  ;;  %4673 = vmatpush3.bf16.msra.mxu1 %v4921_v61  ;;  %v4191_v61 = vld [vmem:[%s6040_s6 + $0x14] ss:$0 sm:$0xff] }
 0x863   : > { %4674 = vmatprep.subr.bf16.mxu1 %v5085_v11 }
 0x866   : > { %4675 = vmatpush3.bf16.msra.mxu1 %v4923_v0 }
 0x867   : > { %4688 = vmatprep.subr.bf16.mxu1 %v5085_v11 }
 0x934   : > { %v2197_v47 = vpop.f32.mrb[52].mxu1 }
 0x935   : > { %v2203_v49 = vadd.f32 %v2197_v47, %v5548_v7  ;;  %v4638_v50 = vpop.f32.mrb[53].mxu1 }
 0x936   : > { %v2200_v51 = vpop.f32.mrb[54].mxu1 }
 0x937   : > { %v5612_v52 = vadd.f32 %v4118_v48, %v2203_v49  ;;  %v4639_v53 = vpop.f32.mrb[55].mxu1 }
 0x939   : > { %v2216_v54 = vsel %vm561_vm0, %v5612_v52, 0.0 }
 0x93a   : > { %2217 = vadd.xlane.f32.xlu0 %v2216_v54 }
 0x9c7   : > { %v2218_v55 = vpop.xlane.xlu0 %2217 }
 0x9c8   : > { %v2219_v56 = vmul.f32 0.03125, %v2218_v55 }
 0x9ca   : > { %v2220_v57 = vsub.f32 %v5612_v52, %v2219_v56 }
 0x9cc   : > { %v2221_v58 = vmul.f32 %v2220_v57, %v2220_v57 }
 0x9ce   : > { %v2222_v59 = vsel %vm561_vm0, %v2221_v58, 0.0 }
 0x9cf   : > { %2223 = vadd.xlane.f32.xlu1 %v2222_v59 }
 0xa5c   : > { %v2224_v40 = vpop.xlane.xlu1 %2223 }
 0xa5d   : > { %v2225_v1 = vmul.f32 0.03125, %v2224_v40 }
 0xa5f   : > { %v2226_v3 = vadd.f32 1e-05, %v2225_v1 }
 0xa61   : > { %4980 = vrsqrt.f32 %v2226_v3 }
 0xa6b   : > { %v4981_v4 = vpop.eup %4980 }
 0xa6c   : > { %v2228_v7 = vmul.f32 %v4981_v4, %v2220_v57 }
 0xa6e   : > { %v2235_v9 = vmul.f32 %v4121_v5, %v2228_v7 }
 0xa70   : > { %v2242_v10 = vadd.f32 %v4122_v8, %v2235_v9 }
 0xa72   : > { %v5646_v13 = vpack.c.bf16 %v2242_v10, %v2242_v10 }
 0xa74   : > { %4645 = vmatmul.mubr.msk.bf16.vlgmr.msra.gmra.mrb[48].mxu0 %vm561_vm0, %v5646_v13  ;;  %4677 = vmatmul.mubr.msk.bf16.vlgmr.msra.gmra.mrb[56].mxu1 %vm561_vm0, %v5646_v13 }
 0xa75   : > { %4649 = vmatpush3.bf16.msra.mxu0 %v4924_v12  ;;  %4689 = vmatpush3.bf16.msra.mxu1 %v4925_v62 }
 0xa76   : > { %4650 = vmatprep.subr.bf16.mxu0 %v5085_v11  ;;  %4690 = vmatprep.subr.bf16.mxu1 %v5085_v11 }
 0xa77   : > { %4652 = vmatprep.mubr.msk.bf16.mxu0 %vm5086_vm1, %v5085_v11  ;;  %4692 = vmatprep.mubr.msk.bf16.mxu1 %vm5086_vm1, %v5085_v11 }
 0xa79   : > { %4651 = vmatpush3.bf16.msra.mxu0 %v4926_v14  ;;  %4691 = vmatpush3.bf16.msra.mxu1 %v4927_v2 }
 0xa7a   : > { %4656 = vmatprep.subr.bf16.mxu0 %v5085_v11  ;;  %4704 = vmatprep.subr.bf16.mxu1 %v5085_v11 }
 0xa7c   : > { %4653 = vmatmul.mubr.msk.bf16.vlgmr.msra.gmra.mrb[52].mxu0 %vm561_vm0, %v5646_v13  ;;  %4693 = vmatmul.mubr.msk.bf16.vlgmr.msra.gmra.mrb[60].mxu1 %vm561_vm0, %v5646_v13 }
 0xa7d   : > { %4657 = vmatpush3.bf16.msra.mxu0 %v4928_v15  ;;  %4705 = vmatpush3.bf16.msra.mxu1 %v4929_v16 }
 0xa7e   : > { %4658 = vmatprep.subr.bf16.mxu0 %v5085_v11  ;;  %4706 = vmatprep.subr.bf16.mxu1 %v5085_v11 }
 0xa7f   : > { %4660 = vmatprep.mubr.msk.bf16.mxu0 %vm5086_vm1, %v5085_v11  ;;  %4708 = vmatprep.mubr.msk.bf16.mxu1 %vm5086_vm1, %v5085_v11 }
 0xa81   : > { %4659 = vmatpush3.bf16.msra.mxu0 %v4930_v17  ;;  %4707 = vmatpush3.bf16.msra.mxu1 %v4931_v18 }
 0xa82   : > { %4664 = vmatprep.subr.bf16.mxu0 %v5085_v11  ;;  %4720 = vmatprep.subr.bf16.mxu1 %v5085_v11 }
 0xa84   : > { %4661 = vmatmul.mubr.msk.bf16.vlgmr.msra.gmra.mrb[56].mxu0 %vm561_vm0, %v5646_v13  ;;  %4709 = vmatmul.mubr.msk.bf16.vlgmr.msra.gmra.mrb[64].mxu1 %vm561_vm0, %v5646_v13 }
 0xa85   : > { %4665 = vmatpush3.bf16.msra.mxu0 %v4932_v19  ;;  %4721 = vmatpush3.bf16.msra.mxu1 %v4933_v20  ;;  %v4188_v20 = vld [vmem:[%s6040_s6 + $0x11] ss:$0 sm:$0xff] }
 0xa86   : > { %4666 = vmatprep.subr.bf16.mxu0 %v5085_v11  ;;  %4722 = vmatprep.subr.bf16.mxu1 %v5085_v11 }
 0xa87   : > { %4668 = vmatprep.mubr.msk.bf16.mxu0 %vm5086_vm1, %v5085_v11  ;;  %4724 = vmatprep.mubr.msk.bf16.mxu1 %vm5086_vm1, %v5085_v11 }
 0xa89   : > { %4667 = vmatpush3.bf16.msra.mxu0 %v4934_v21  ;;  %4723 = vmatpush3.bf16.msra.mxu1 %v4935_v22 }
 0xa8a   : > { %4680 = vmatprep.subr.bf16.mxu0 %v5085_v11  ;;  %4736 = vmatprep.subr.bf16.mxu1 %v5085_v11 }
 0xa8c   : > { %4669 = vmatmul.mubr.msk.bf16.vlgmr.msra.gmra.mrb[60].mxu0 %vm561_vm0, %v5646_v13  ;;  %4725 = vmatmul.mubr.msk.bf16.vlgmr.msra.gmra.mrb[68].mxu1 %vm561_vm0, %v5646_v13 }
 0xa8d   : > { %4681 = vmatpush3.bf16.msra.mxu0 %v4936_v23  ;;  %4684 = vmatprep.mubr.msk.bf16.mxu0 %vm5086_vm1, %v5085_v11 }
 0xa8e   : > { %4682 = vmatprep.subr.bf16.mxu0 %v5085_v11  ;;  %4738 = vmatprep.mubr.msk.bf16.mxu1 %vm5086_vm1, %v5085_v11 }
 0xa91   : > { %4683 = vmatpush3.bf16.msra.mxu0 %v4937_v24 }
 0xa92   : > { %4696 = vmatprep.subr.bf16.mxu0 %v5085_v11 }
 0xa94   : > { %4685 = vmatmul.mubr.msk.bf16.vlgmr.msra.gmra.mrb[64].mxu0 %vm561_vm0, %v5646_v13 }
 0xa95   : > { %4697 = vmatpush3.bf16.msra.mxu0 %v4938_v25  ;;  %4700 = vmatprep.mubr.msk.bf16.mxu0 %vm5086_vm1, %v5085_v11 }
 0xa96   : > { %4698 = vmatprep.subr.bf16.mxu0 %v5085_v11 }
 0xa99   : > { %4699 = vmatpush3.bf16.msra.mxu0 %v4939_v26 }
 0xa9a   : > { %4712 = vmatprep.subr.bf16.mxu0 %v5085_v11 }
 0xa9c   : > { %4701 = vmatmul.mubr.msk.bf16.vlgmr.msra.gmra.mrb[68].mxu0 %vm561_vm0, %v5646_v13 }
 0xa9d   : > { %4713 = vmatpush3.bf16.msra.mxu0 %v4940_v27  ;;  %4716 = vmatprep.mubr.msk.bf16.mxu0 %vm5086_vm1, %v5085_v11  ;;  %v4184_v27 = vld [vmem:[%s6040_s6 + $0xd] ss:$0 sm:$0xff] }
 0xa9e   : > { %4714 = vmatprep.subr.bf16.mxu0 %v5085_v11 }
 0xaa1   : > { %4715 = vmatpush3.bf16.msra.mxu0 %v4941_v28 }
 0xaa2   : > { %4728 = vmatprep.subr.bf16.mxu0 %v5085_v11 }
 0xaa4   : > { %4717 = vmatmul.mubr.msk.bf16.vlgmr.msra.gmra.mrb[72].mxu0 %vm561_vm0, %v5646_v13 }
 0xaa5   : > { %4729 = vmatpush3.bf16.msra.mxu0 %v4942_v29  ;;  %4732 = vmatprep.mubr.msk.bf16.mxu0 %vm5086_vm1, %v5085_v11  ;;  %v4190_v29 = vld [vmem:[%s6040_s6 + $0x13] ss:$0 sm:$0xff] }
 0xaa6   : > { %4730 = vmatprep.subr.bf16.mxu0 %v5085_v11 }
 0xaa9   : > { %4731 = vmatpush3.bf16.msra.mxu0 %v4943_v30 }
 0xaaa   : > { %4742 = vmatprep.subr.bf16.mxu0 %v5085_v11 }
 0xaac   : > { %4733 = vmatmul.mubr.msk.bf16.vlgmr.msra.gmra.mrb[76].mxu0 %vm561_vm0, %v5646_v13 }
 0xaad   : > { %4744 = vmatprep.mubr.msk.bf16.mxu0 %vm5086_vm1, %v5085_v11 }
 0xb47   : > { %v2427_v32 = vpop.f32.mrb[48].mxu0  ;;  %v2635_v33 = vpop.f32.mrb[56].mxu1 }
 0xb48   : > { %v2636_v34 = vadd.f32 %v4187_v31, %v2635_v33  ;;  %v4646_v35 = vpop.f32.mrb[49].mxu0  ;;  %v4678_v36 = vpop.f32.mrb[57].mxu1  ;;  %v2428_v46 = vadd.f32 %v4183_v43, %v2427_v32 }
 0xb49   : > { %v2430_v37 = vpop.f32.mrb[50].mxu0  ;;  %v2638_v38 = vpop.f32.mrb[58].mxu1 }
 0xb4a   : > { %v3009_v39 = vpack.c.bf16 %v2636_v34, %v2636_v34  ;;  %v4647_v41 = vpop.f32.mrb[51].mxu0  ;;  %v4679_v42 = vpop.f32.mrb[59].mxu1  ;;  %v3005_v55 = vpack.c.bf16 %v2428_v46, %v2428_v46  ;;  %v4186_v38 = vld [vmem:[%s6040_s6 + $0xf] ss:$0 sm:$0xff] }
 0xb4b   : > { %v4192_v41 = vld [vmem:[%s6040_s6 + $0x15] ss:$0 sm:$0xff] }
 0xb4c   : > { %v3017_v44 = vsel %vm1358_vm2, %v3009_v39, 0 }
 0xb4d   : > { %4737 = vmatpush3.bf16.xpose.msra.mxu1 %v3017_v44 }
 0xb4e   : > { %4748 = vmatprep.subr.bf16.mxu1 %v5085_v11 }
 0xb4f   : > { %v2479_v47 = vpop.f32.mrb[52].mxu0  ;;  %v2739_v48 = vpop.f32.mrb[60].mxu1 }
 0xb50   : > { %v2740_v49 = vadd.f32 %v4189_v45, %v2739_v48  ;;  %v4654_v50 = vpop.f32.mrb[53].mxu0  ;;  %v4694_v51 = vpop.f32.mrb[61].mxu1  ;;  %v2480_v30 = vadd.f32 %v4184_v27, %v2479_v47 }
 0xb51   : > { %v2482_v53 = vpop.f32.mrb[54].mxu0  ;;  %v2742_v54 = vpop.f32.mrb[62].mxu1 }
 0xb52   : > { %v3011_v56 = vpack.c.bf16 %v2740_v49, %v2740_v49  ;;  %v4655_v57 = vpop.f32.mrb[55].mxu0  ;;  %v4695_v58 = vpop.f32.mrb[63].mxu1  ;;  %v3006_v35 = vpack.c.bf16 %v2480_v30, %v2480_v30 }
 0xb54   : > { %v3109_v59 = vsel %vm1358_vm2, %v3011_v56, 0  ;;  %4739 = vmatmul.mubr.msk.bf16.vlgmr.msra.gmra.mrb[72].mxu1 %vm1358_vm2, %v3005_v55 }
 0xb55   : > { %4749 = vmatpush3.bf16.xpose.msra.mxu1 %v3109_v59  ;;  %4750 = vmatprep.mubr.msk.bf16.mxu1 %vm5086_vm1, %v5085_v11 }
 0xb56   : > { %4760 = vmatprep.subr.bf16.mxu1 %v5085_v11 }
 0xb57   : > { %v2531_v63 = vpop.f32.mrb[56].mxu0  ;;  %v2843_v0 = vpop.f32.mrb[64].mxu1 }
 0xb58   : > { %v2532_v40 = vadd.f32 %v4185_v60, %v2531_v63  ;;  %v2844_v1 = vadd.f32 %v4191_v61, %v2843_v0  ;;  %v4662_v3 = vpop.f32.mrb[57].mxu0  ;;  %v4710_v4 = vpop.f32.mrb[65].mxu1 }
 0xb59   : > { %v2534_v5 = vpop.f32.mrb[58].mxu0  ;;  %v2846_v7 = vpop.f32.mrb[66].mxu1 }
 0xb5a   : > { %v3007_v8 = vpack.c.bf16 %v2532_v40, %v2532_v40  ;;  %v3249_v9 = vpack.c.bf16 %v2844_v1, %v2844_v1  ;;  %v4663_v10 = vpop.f32.mrb[59].mxu0  ;;  %v4711_v12 = vpop.f32.mrb[67].mxu1 }
 0xb5c   : > { %v3257_v62 = vsel %vm1604_vm3, %v3249_v9, 0  ;;  %4751 = vmatmul.mubr.msk.bf16.vlgmr.msra.gmra.mrb[76].mxu1 %vm1358_vm2, %v3007_v8 }
 0xb5d   : > { %4761 = vmatpush3.bf16.msra.mxu1 %v3257_v62  ;;  %4762 = vmatprep.mubr.msk.bf16.mxu1 %vm5086_vm1, %v5085_v11 }
 0xb5e   : > { %4772 = vmatprep.subr.bf16.mxu1 %v5085_v11 }
 0xb5f   : > { %v2583_v13 = vpop.f32.mrb[60].mxu0  ;;  %v5797_v14 = vpop.f32.mrb[68].mxu1 }
 0xb60   : > { %v4670_v2 = vpop.f32.mrb[61].mxu0  ;;  %v4726_v15 = vpop.f32.mrb[69].mxu1  ;;  %v2584_v42 = vadd.f32 %v4186_v38, %v2583_v13  ;;  %v4193_v38 = vld [vmem:[%s6040_s6 + $0x16] ss:$0 sm:$0xff] }
 0xb61   : > { %v2586_v16 = vpop.f32.mrb[62].mxu0  ;;  %v2950_v17 = vpop.f32.mrb[70].mxu1 }
 0xb62   : > { %v4671_v18 = vpop.f32.mrb[63].mxu0  ;;  %v4727_v19 = vpop.f32.mrb[71].mxu1  ;;  %v3008_v47 = vpack.c.bf16 %v2584_v42, %v2584_v42 }
 0xb67   : > { %v2687_v21 = vpop.f32.mrb[64].mxu0 }
 0xb68   : > { %v2688_v22 = vadd.f32 %v4188_v20, %v2687_v21  ;;  %v4686_v23 = vpop.f32.mrb[65].mxu0 }
 0xb69   : > { %v2690_v24 = vpop.f32.mrb[66].mxu0 }
 0xb6a   : > { %v3010_v25 = vpack.c.bf16 %v2688_v22, %v2688_v22  ;;  %v4687_v26 = vpop.f32.mrb[67].mxu0 }
 0xb6c   : > { %v3063_v28 = vsel %vm1358_vm2, %v3010_v25, 0 }
 0xb6d   : > { %4743 = vmatpush3.bf16.xpose.msra.mxu0 %v3063_v28 }
 0xb6e   : > { %4754 = vmatprep.subr.bf16.mxu0 %v5085_v11 }
 0xb6f   : > { %v2791_v31 = vpop.f32.mrb[68].mxu0 }
 0xb70   : > { %v2792_v32 = vadd.f32 %v4190_v29, %v2791_v31  ;;  %v4702_v33 = vpop.f32.mrb[69].mxu0 }
 0xb71   : > { %v2794_v34 = vpop.f32.mrb[70].mxu0 }
 0xb72   : > { %v3012_v36 = vpack.c.bf16 %v2792_v32, %v2792_v32  ;;  %v4703_v37 = vpop.f32.mrb[71].mxu0 }
 0xb74   : > { %v3155_v39 = vsel %vm1358_vm2, %v3012_v36, 0  ;;  %4745 = vmatmul.mubr.msk.bf16.vlgmr.msra.gmra.mrb[80].mxu0 %vm1358_vm2, %v3006_v35 }
 0xb75   : > { %4755 = vmatpush3.bf16.xpose.msra.mxu0 %v3155_v39  ;;  %4756 = vmatprep.mubr.msk.bf16.mxu0 %vm5086_vm1, %v5085_v11  ;;  %v2948_v39 = vadd.f32 %v4193_v38, %v5797_v14 }
 0xb76   : > { %4766 = vmatprep.subr.bf16.mxu0 %v5085_v11 }
 0xb77   : > { %v2895_v43 = vpop.f32.mrb[72].mxu0 }
 0xb78   : > { %v2896_v44 = vadd.f32 %v4192_v41, %v2895_v43  ;;  %v4718_v45 = vpop.f32.mrb[73].mxu0  ;;  %v3251_v43 = vpack.c.bf16 %v2948_v39, %v2948_v39 }
 0xb79   : > { %v2898_v46 = vpop.f32.mrb[74].mxu0 }
 0xb7a   : > { %v3250_v48 = vpack.c.bf16 %v2896_v44, %v2896_v44  ;;  %v4719_v49 = vpop.f32.mrb[75].mxu0  ;;  %v3349_v46 = vsel %vm1604_vm3, %v3251_v43, 0 }
 0xb7c   : > { %v3303_v50 = vsel %vm1604_vm3, %v3250_v48, 0  ;;  %4757 = vmatmul.mubr.msk.bf16.vlgmr.msra.gmra.mrb[84].mxu0 %vm1358_vm2, %v3008_v47 }
 0xb7d   : > { %4767 = vmatpush3.bf16.msra.mxu0 %v3303_v50  ;;  %4768 = vmatprep.mubr.msk.bf16.mxu0 %vm5086_vm1, %v5085_v11  ;;  %v4194_v50 = vld [vmem:[%s6040_s6 + $0x17] ss:$0 sm:$0xff] }
 0xb7e   : > { %4778 = vmatprep.subr.bf16.mxu0 %v5085_v11 }
 0xb7f   : > { %v5826_v51 = vpop.f32.mrb[76].mxu0 }
 0xb80   : > { %v4734_v53 = vpop.f32.mrb[77].mxu0 }
 0xb81   : > { %v3002_v54 = vpop.f32.mrb[78].mxu0  ;;  %v3000_v53 = vadd.f32 %v4194_v50, %v5826_v51  ;;  %v4239_v51 = vld [vmem:[%s6041_s7 + $0x10] sm:$0xf]  ;;  %v4248_v50 = vld [vmem:[%s6042_s8 + $0x1] ss:$0 sm:$0xff] }
 0xb82   : > { %v4735_v55 = vpop.f32.mrb[79].mxu0 }
 0xc27   : > { %v3053_v56 = vpop.f32.mrb[72].mxu1 }
 0xc28   : > { %v3197_v57 = vsel %vm5464_vm4, -1e+30, %v3053_v56  ;;  %v4740_v58 = vpop.f32.mrb[73].mxu1  ;;  %v3252_v56 = vpack.c.bf16 %v3000_v53, %v3000_v53 }
 0xc29   : > { %v3056_v59 = vpop.f32.mrb[74].mxu1  ;;  %v3201_v60 = vsel %vm1358_vm2, %v3197_v57, -inf }
 0xc2a   : > { %3202 = vmax.xlane.f32.xlu0 %v3201_v60  ;;  %v4741_v61 = vpop.f32.mrb[75].mxu1  ;;  %v3395_v59 = vsel %vm1604_vm3, %v3252_v56, 0 }
 0xc2f   : > { %v3145_v63 = vpop.f32.mrb[76].mxu1 }
 0xc30   : > { %v3199_v0 = vsel %vm5464_vm4, -1e+30, %v3145_v63  ;;  %v4752_v40 = vpop.f32.mrb[77].mxu1 }
 0xc31   : > { %v3148_v1 = vpop.f32.mrb[78].mxu1  ;;  %v3207_v3 = vsel %vm1358_vm2, %v3199_v0, -inf  ;;  %v4240_v40 = vld [vmem:[%s6041_s7 + $0x14] sm:$0xf] }
 0xc32   : > { %3208 = vmax.xlane.f32.xlu0 %v3207_v3  ;;  %v4753_v4 = vpop.f32.mrb[79].mxu1  ;;  %v3496_v1 = vsel %vm1604_vm3, %v4240_v40, 0  ;;  %v4241_v3 = vld [vmem:[%s6041_s7 + $0x18] sm:$0xf] }
 0xc47   : > { %v3099_v5 = vpop.f32.mrb[80].mxu0 }
 0xc48   : > { %v3198_v7 = vsel %vm5464_vm4, -1e+30, %v3099_v5  ;;  %v4746_v8 = vpop.f32.mrb[81].mxu0 }
 0xc49   : > { %v3102_v9 = vpop.f32.mrb[82].mxu0  ;;  %v3204_v10 = vsel %vm1358_vm2, %v3198_v7, -inf  ;;  %v3542_v8 = vsel %vm1604_vm3, %v4241_v3, 0 }
 0xc4a   : > { %3205 = vmax.xlane.f32.xlu1 %v3204_v10  ;;  %v4747_v12 = vpop.f32.mrb[83].mxu0 }
 0xc4f   : > { %v3191_v62 = vpop.f32.mrb[84].mxu0 }
 0xc50   : > { %v3200_v13 = vsel %vm5464_vm4, -1e+30, %v3191_v62  ;;  %v4758_v2 = vpop.f32.mrb[85].mxu0 }
 0xc51   : > { %v3194_v15 = vpop.f32.mrb[86].mxu0  ;;  %v3210_v16 = vsel %vm1358_vm2, %v3200_v13, -inf }
 0xc52   : > { %3211 = vmax.xlane.f32.xlu1 %v3210_v16  ;;  %v4759_v17 = vpop.f32.mrb[87].mxu0  ;;  %v4242_v16 = vld [vmem:[%s6041_s7 + $0x1c] sm:$0xf] }
 0xcb7   : > { %v3203_v18 = vpop.xlane.xlu0 %3202 }
 0xcb8   : > { %v3213_v19 = vsub.f32 %v3197_v57, %v3203_v18 }
 0xcba   : > { %v3217_v20 = vmul.f32 1.442695, %v3213_v19 }
 0xcbc   : > { %4982 = vpow2.f32 %v3217_v20  ;;  %v3588_v20 = vsel %vm1604_vm3, %v4242_v16, 0  ;;  %v4953_v16 = vld [vmem:[%s6047_s13 + $0x78] sm:$0xff]  }
 0xcbf   : > { %v3209_v21 = vpop.xlane.xlu0 %3208 }
 0xcc0   : > { %v3215_v22 = vsub.f32 %v3199_v0, %v3209_v21  ;;  %v3450_v0 = vsel %vm1604_vm3, %v4239_v51, 0 }
 0xcc2   : > { %v3221_v23 = vmul.f32 1.442695, %v3215_v22 }
 0xcc4   : > { %4984 = vpow2.f32 %v3221_v23 }
 0xcc6   : > { %v4983_v24 = vpop.eup %4982 }
 0xcc7   : > { %v3225_v25 = vsel %vm1358_vm2, %v4983_v24, 0.0 }
 0xcc8   : > { %3226 = vadd.xlane.f32.xlu0 %v3225_v25 }
 0xcce   : > { %v4985_v6 = vpop.eup %4984 }
 0xccf   : > { %v3231_v26 = vsel %vm1358_vm2, %v4985_v6, 0.0 }
 0xcd0   : > { %3232 = vadd.xlane.f32.xlu0 %v3231_v26 }
 0xcd7   : > { %v3206_v27 = vpop.xlane.xlu1 %3205 }
 0xcd8   : > { %v3214_v28 = vsub.f32 %v3198_v7, %v3206_v27 }
 0xcda   : > { %v3219_v29 = vmul.f32 1.442695, %v3214_v28 }
 0xcdc   : > { %4986 = vpow2.f32 %v3219_v29 }
 0xcdf   : > { %v3212_v30 = vpop.xlane.xlu1 %3211 }
 0xce0   : > { %v3216_v31 = vsub.f32 %v3200_v13, %v3212_v30 }
 0xce2   : > { %v3223_v32 = vmul.f32 1.442695, %v3216_v31 }
 0xce4   : > { %4988 = vpow2.f32 %v3223_v32 }
 0xce6   : > { %v4987_v33 = vpop.eup %4986 }
 0xce7   : > { %v3228_v34 = vsel %vm1358_vm2, %v4987_v33, 0.0 }
 0xce8   : > { %3229 = vadd.xlane.f32.xlu1 %v3228_v34 }
 0xcee   : > { %v4989_v35 = vpop.eup %4988 }
 0xcef   : > { %v3234_v36 = vsel %vm1358_vm2, %v4989_v35, 0.0 }
 0xcf0   : > { %3235 = vadd.xlane.f32.xlu1 %v3234_v36 }
 0xd55   : > { %v3227_v37 = vpop.xlane.xlu0 %3226 }
 0xd56   : > { %4990 = vrcp.f32 %v3227_v37 }
 0xd5d   : > { %v3233_v41 = vpop.xlane.xlu0 %3232 }
 0xd5e   : > { %4992 = vrcp.f32 %v3233_v41 }
 0xd60   : > { %v4991_v42 = vpop.eup %4990 }
 0xd61   : > { %v3238_v44 = vmul.f32 %v4991_v42, %v4983_v24 }
 0xd63   : > { %v3245_v45 = vpack.c.bf16 %v3238_v44, %v3238_v44 }
 0xd65   : > { %4763 = vmatmul.mubr.msk.bf16.vlgmr.msra.gmra.mrb[80].mxu1 %vm1358_vm2, %v3245_v45 }
 0xd66   : > { %4773 = vmatpush3.bf16.msra.mxu1 %v3349_v46  ;;  %4774 = vmatprep.mubr.msk.bf16.mxu1 %vm5086_vm1, %v5085_v11 }
 0xd67   : > { %4784 = vmatprep.subr.bf16.mxu1 %v5085_v11 }
 0xd68   : > { %v4993_v47 = vpop.eup %4992 }
 0xd69   : > { %v3242_v48 = vmul.f32 %v4993_v47, %v4985_v6 }
 0xd6b   : > { %v3247_v49 = vpack.c.bf16 %v3242_v48, %v3242_v48 }
 0xd6d   : > { %4775 = vmatmul.mubr.msk.bf16.vlgmr.msra.gmra.mrb[84].mxu1 %vm1358_vm2, %v3247_v49 }
 0xd6e   : > { %4786 = vmatprep.mubr.msk.bf16.mxu1 %vm5086_vm1, %v5085_v11  ;;  %4785 = vmatpush3.bf16.msra.mxu1 %v3450_v0 }
 0xd6f   : > { %4796 = vmatprep.subr.bf16.mxu1 %v5085_v11 }
 0xd75   : > { %v3230_v14 = vpop.xlane.xlu1 %3229 }
 0xd76   : > { %4994 = vrcp.f32 %v3230_v14 }
 0xd7d   : > { %v3236_v54 = vpop.xlane.xlu1 %3235 }
 0xd7e   : > { %4996 = vrcp.f32 %v3236_v54 }
 0xd80   : > { %v4995_v55 = vpop.eup %4994 }
 0xd81   : > { %v3240_v57 = vmul.f32 %v4995_v55, %v4987_v33 }
 0xd83   : > { %v3246_v58 = vpack.c.bf16 %v3240_v57, %v3240_v57 }
 0xd85   : > { %4769 = vmatmul.mubr.msk.bf16.vlgmr.msra.gmra.mrb[88].mxu0 %vm1358_vm2, %v3246_v58 }
 0xd86   : > { %4779 = vmatpush3.bf16.msra.mxu0 %v3395_v59  ;;  %4780 = vmatprep.mubr.msk.bf16.mxu0 %vm5086_vm1, %v5085_v11 }
 0xd87   : > { %4790 = vmatprep.subr.bf16.mxu0 %v5085_v11 }
 0xd88   : > { %v4997_v60 = vpop.eup %4996 }
 0xd89   : > { %v3244_v61 = vmul.f32 %v4997_v60, %v4989_v35 }
 0xd8b   : > { %v3248_v63 = vpack.c.bf16 %v3244_v61, %v3244_v61  ;;  %v4944_v61 = vld [vmem:[%s6045_s11 + $0x10] sm:$0xff]  }
 0xd8d   : > { %4781 = vmatmul.mubr.msk.bf16.vlgmr.msra.gmra.mrb[92].mxu0 %vm1358_vm2, %v3248_v63 }
 0xd8e   : > { %4792 = vmatprep.mubr.msk.bf16.mxu0 %vm5086_vm1, %v5085_v11  ;;  %4791 = vmatpush3.bf16.msra.mxu0 %v3496_v1  ;;  %v4251_v1 = vld [vmem:[%s6043_s9 + $0x1] ss:$0 sm:$0xff] }
 0xd8f   : > { %4802 = vmatprep.subr.bf16.mxu0 %v5085_v11 }
 0xe38   : > { %v3293_v4 = vpop.f32.mrb[80].mxu1 }
 0xe39   : > { %v3437_v5 = vpack.c.bf16 %v3293_v4, %v3293_v4  ;;  %v4764_v7 = vpop.f32.mrb[81].mxu1  ;;  %v4252_v4 = vld [vmem:[%s6044_s10 + $0x1] ss:$0 sm:$0xff] }
 0xe3a   : > { %v3296_v9 = vpop.f32.mrb[82].mxu1 }
 0xe3b   : > { %v4765_v10 = vpop.f32.mrb[83].mxu1  ;;  %4787 = vmatmul.mubr.msk.bf16.vlgmr.msra.gmra.mrb[88].mxu1 %vm1358_vm2, %v3437_v5  ;;  %v4946_v9 = vld [vmem:[%s6047_s13 + $0x40] sm:$0xff]  }
 0xe3c   : > { %4797 = vmatpush3.bf16.msra.mxu1 %v3542_v8  ;;  %4798 = vmatprep.mubr.msk.bf16.mxu1 %vm5086_vm1, %v5085_v11  ;;  %v4947_v10 = vld [vmem:[%s6047_s13 + $0x48] sm:$0xff]  }
 0xe3d   : > { %4808 = vmatprep.subr.bf16.mxu1 %v5085_v11 }
 0xe40   : > { %v3385_v12 = vpop.f32.mrb[84].mxu1 }
 0xe41   : > { %v3439_v62 = vpack.c.bf16 %v3385_v12, %v3385_v12  ;;  %v4776_v13 = vpop.f32.mrb[85].mxu1  ;;  %v4948_v12 = vld [vmem:[%s6047_s13 + $0x50] sm:$0xff]  }
 0xe42   : > { %v3388_v2 = vpop.f32.mrb[86].mxu1  ;;  %v4950_v13 = vld [vmem:[%s6047_s13 + $0x60] sm:$0xff]  }
 0xe43   : > { %v4777_v15 = vpop.f32.mrb[87].mxu1  ;;  %4799 = vmatmul.mubr.msk.bf16.vlgmr.msra.gmra.mrb[92].mxu1 %vm1358_vm2, %v3439_v62  ;;  %v4949_v62 = vld [vmem:[%s6047_s13 + $0x58] sm:$0xff]   ;;  %v4951_v2 = vld [vmem:[%s6047_s13 + $0x68] sm:$0xff]  }
 0xe44   : > { %4812 = vmatprep.mubr.msk.bf16.mxu1 %vm5086_vm1, %v5085_v11  ;;  %4809 = vmatpush3.bf16.msra.mxu1 %v4944_v61  ;;  %v4952_v15 = vld [vmem:[%s6047_s13 + $0x70] sm:$0xff]  }
 0xe45   : > { %4810 = vmatprep.subr.bf16.mxu1 %v5085_v11 }
 0xe58   : > { %v3339_v17 = vpop.f32.mrb[88].mxu0 }
 0xe59   : > { %v3438_v18 = vpack.c.bf16 %v3339_v17, %v3339_v17  ;;  %v4770_v19 = vpop.f32.mrb[89].mxu0  ;;  %v4258_v17 = vld [vmem:[%s6072_s29 + $0x1] ss:$0 sm:$0xff] }
 0xe5a   : > { %v3342_v21 = vpop.f32.mrb[90].mxu0 }
 0xe5b   : > { %v4771_v22 = vpop.f32.mrb[91].mxu0  ;;  %4793 = vmatmul.mubr.msk.bf16.vlgmr.msra.gmra.mrb[96].mxu0 %vm1358_vm2, %v3438_v18 }
 0xe5c   : > { %4803 = vmatpush3.bf16.msra.mxu0 %v3588_v20  ;;  %4804 = vmatprep.mubr.msk.bf16.mxu0 %vm5086_vm1, %v5085_v11 }
 0xe5d   : > { %4816 = vmatprep.subr.bf16.mxu0 %v5085_v11 }
 0xe60   : > { %v3431_v23 = vpop.f32.mrb[92].mxu0 }
 0xe61   : > { %v3440_v24 = vpack.c.bf16 %v3431_v23, %v3431_v23  ;;  %v4782_v25 = vpop.f32.mrb[93].mxu0 }
 0xe62   : > { %v3434_v6 = vpop.f32.mrb[94].mxu0 }
 0xe63   : > { %v4783_v26 = vpop.f32.mrb[95].mxu0  ;;  %4805 = vmatmul.mubr.msk.bf16.vlgmr.msra.gmra.mrb[100].mxu0 %vm1358_vm2, %v3440_v24 }
 0xe64   : > { %4832 = vmatprep.mubr.msk.bf16.mxu0 %vm5086_vm1, %v5085_v11  ;;  %4817 = vmatpush3.bf16.msra.mxu0 %v4946_v9 }
 0xe65   : > { %4818 = vmatprep.subr.bf16.mxu0 %v5085_v11 }
 0xe68   : > { %4819 = vmatpush3.bf16.msra.mxu0 %v4947_v10 }
 0xe69   : > { %4820 = vmatprep.subr.bf16.mxu0 %v5085_v11 }
 0xe6c   : > { %4821 = vmatpush3.bf16.msra.mxu0 %v4948_v12 }
 0xe6d   : > { %4822 = vmatprep.subr.bf16.mxu0 %v5085_v11 }
 0xe70   : > { %4823 = vmatpush3.bf16.msra.mxu0 %v4949_v62 }
 0xe71   : > { %4824 = vmatprep.subr.bf16.mxu0 %v5085_v11 }
 0xe74   : > { %4825 = vmatpush3.bf16.msra.mxu0 %v4950_v13 }
 0xe75   : > { %4826 = vmatprep.subr.bf16.mxu0 %v5085_v11 }
 0xe78   : > { %4827 = vmatpush3.bf16.msra.mxu0 %v4951_v2 }
 0xe79   : > { %4828 = vmatprep.subr.bf16.mxu0 %v5085_v11 }
 0xe7c   : > { %4829 = vmatpush3.bf16.msra.mxu0 %v4952_v15 }
 0xe7d   : > { %4830 = vmatprep.subr.bf16.mxu0 %v5085_v11 }
 0xe80   : > { %4831 = vmatpush3.bf16.msra.mxu0 %v4953_v16 }
 0xf0e   : > { %v3486_v27 = vpop.f32.mrb[88].mxu1 }
 0xf0f   : > { %v4788_v28 = vpop.f32.mrb[89].mxu1  ;;  %v3630_v36 = vsel %vm561_vm0, %v3486_v27, 0.0 }
 0xf10   : > { %v3489_v29 = vpop.f32.mrb[90].mxu1 }
 0xf11   : > { %v4789_v30 = vpop.f32.mrb[91].mxu1 }
 0xf12   : > { %v4288_v30 = vld [vmem:[%s6048_s14 + $0x1] ss:$0 sm:$0xff] }
 0xf16   : > { %v3578_v31 = vpop.f32.mrb[92].mxu1 }
 0xf17   : > { %v4800_v32 = vpop.f32.mrb[93].mxu1  ;;  %v3633_v42 = vsel %vm561_vm0, %v3578_v31, 0.0 }
 0xf18   : > { %v3581_v33 = vpop.f32.mrb[94].mxu1 }
 0xf19   : > { %v4801_v34 = vpop.f32.mrb[95].mxu1 }
 0xf2e   : > { %v3532_v35 = vpop.f32.mrb[96].mxu0 }
 0xf2f   : > { %v3631_v37 = vsel %vm561_vm0, %v3532_v35, 0.0  ;;  %v4794_v38 = vpop.f32.mrb[97].mxu0 }
 0xf30   : > { %v3632_v39 = vadd.f32 %v3631_v37, %v3630_v36  ;;  %v3535_v41 = vpop.f32.mrb[98].mxu0 }
 0xf31   : > { %v4795_v43 = vpop.f32.mrb[99].mxu0 }
 0xf32   : > { %v3634_v44 = vadd.f32 %v3633_v42, %v3632_v39  ;;  %v4954_v43 = vld [vmem:[%s6051_s17] sm:$0xff]  }
 0xf36   : > { %v3624_v45 = vpop.f32.mrb[100].mxu0 }
 0xf37   : > { %v3635_v46 = vsel %vm561_vm0, %v3624_v45, 0.0  ;;  %v4806_v47 = vpop.f32.mrb[101].mxu0 }
 0xf38   : > { %v3636_v48 = vadd.f32 %v3635_v46, %v3634_v44  ;;  %v3627_v49 = vpop.f32.mrb[102].mxu0  ;;  %v4955_v44 = vld [vmem:[%s6051_s17 + $0x8] sm:$0xff]  }
 0xf39   : > { %v4807_v14 = vpop.f32.mrb[103].mxu0  ;;  %v4289_v49 = vld [vmem:[%s6049_s15] ss:$0 sm:$0xff] }
 0xf3a   : > { %v3637_v53 = vadd.f32 %v3636_v48, %v5612_v52  ;;  %v4945_v52 = vld [vmem:[%s6045_s11 + $0x18] sm:$0xff]  }
 0xf3b   : > { %4811 = vmatpush3.bf16.msra.mxu1 %v4945_v52 }
 0xf3c   : > { %v5908_v54 = vadd.f32 %v4248_v50, %v3637_v53  ;;  %4836 = vmatprep.subr.bf16.mxu1 %v5085_v11  ;;  %v4290_v50 = vld [vmem:[%s6050_s16] ss:$0 sm:$0xff] }
 0xf3e   : > { %v3651_v55 = vsel %vm561_vm0, %v5908_v54, 0.0 }
 0xf3f   : > { %3652 = vadd.xlane.f32.xlu0 %v3651_v55 }
 0xfcc   : > { %v3653_v56 = vpop.xlane.xlu0 %3652 }
 0xfcd   : > { %v3654_v57 = vmul.f32 0.03125, %v3653_v56 }
 0xfcf   : > { %v3655_v58 = vsub.f32 %v5908_v54, %v3654_v57 }
 0xfd1   : > { %v3656_v59 = vmul.f32 %v3655_v58, %v3655_v58 }
 0xfd3   : > { %v3657_v60 = vsel %vm561_vm0, %v3656_v59, 0.0 }
 0xfd4   : > { %3658 = vadd.xlane.f32.xlu1 %v3657_v60 }
0x1061   : > { %v3659_v63 = vpop.xlane.xlu1 %3658 }
0x1062   : > { %v3660_v51 = vmul.f32 0.03125, %v3659_v63 }
0x1064   : > { %v3661_v0 = vadd.f32 1e-05, %v3660_v51 }
0x1066   : > { %4998 = vrsqrt.f32 %v3661_v0 }
0x1070   : > { %v4999_v40 = vpop.eup %4998 }
0x1071   : > { %v3663_v3 = vmul.f32 %v4999_v40, %v3655_v58 }
0x1073   : > { %v3670_v5 = vmul.f32 %v4251_v1, %v3663_v3 }
0x1075   : > { %v3677_v7 = vadd.f32 %v4252_v4, %v3670_v5 }
0x1077   : > { %v3683_v8 = vpack.c.bf16 %v3677_v7, %v3677_v7 }
0x1079   : > { %4813 = vmatmul.mubr.msk.bf16.vlgmr.msra.gmra.mrb[96].mxu1 %vm561_vm0, %v3683_v8 }
0x107a   : > { %4840 = vmatprep.mubr.msk.bf16.mxu1 %vm5086_vm1, %v5085_v11  ;;  %4837 = vmatpush3.bf16.msra.mxu1 %v4954_v43 }
0x107b   : > { %4838 = vmatprep.subr.bf16.mxu1 %v5085_v11 }
0x107e   : > { %4839 = vmatpush3.bf16.msra.mxu1 %v4955_v44 }
0x114c   : > { %v3741_v18 = vpop.f32.mrb[96].mxu1 }
0x114d   : > { %v3742_v19 = vadd.f32 %v4258_v17, %v3741_v18  ;;  %v4814_v20 = vpop.f32.mrb[97].mxu1 }
0x114e   : > { %v3744_v21 = vpop.f32.mrb[98].mxu1 }
0x114f   : > { %v4262_v22 = vmul.f32 -1.702, %v3742_v19  ;;  %v4815_v23 = vpop.f32.mrb[99].mxu1 }
0x1151   : > { %v3749_v24 = vmul.f32 1.442695, %v4262_v22 }
0x1153   : > { %5000 = vpow2.f32 %v3749_v24 }
0x115d   : > { %v5001_v25 = vpop.eup %5000 }
0x115e   : > { %v3751_v6 = vadd.f32 1.0, %v5001_v25 }
0x1160   : > { %5002 = vrcp.f32 %v3751_v6 }
0x116a   : > { %v5003_v26 = vpop.eup %5002 }
0x116b   : > { %v3754_v27 = vmul.f32 %v5003_v26, %v3742_v19 }
0x116d   : > { %v3772_v28 = vpack.c.bf16 %v3754_v27, %v3754_v27 }
0x116f   : > { %4833 = vmatmul.mubr.bf16.vlgmr.msra.gmra.mrb[104].mxu0 %v3772_v28 }
0x1242   : > { %v3855_v29 = vpop.f32.mrb[104].mxu0 }
0x1243   : > { %v3861_v31 = vadd.f32 %v3855_v29, %v5908_v54  ;;  %v4834_v32 = vpop.f32.mrb[105].mxu0 }
0x1244   : > { %v3858_v33 = vpop.f32.mrb[106].mxu0 }
0x1245   : > { %v4835_v34 = vpop.f32.mrb[107].mxu0  ;;  %v3870_v35 = vadd.f32 %v4288_v30, %v3861_v31 }
0x1247   : > { %v3873_v36 = vsel %vm561_vm0, %v3870_v35, 0.0 }
0x1248   : > { %3874 = vadd.xlane.f32.xlu0 %v3873_v36 }
0x12d5   : > { %v3875_v37 = vpop.xlane.xlu0 %3874 }
0x12d6   : > { %v3876_v38 = vmul.f32 0.03125, %v3875_v37 }
0x12d8   : > { %v3877_v39 = vsub.f32 %v3870_v35, %v3876_v38 }
0x12da   : > { %v3878_v41 = vmul.f32 %v3877_v39, %v3877_v39 }
0x12dc   : > { %v3879_v42 = vsel %vm561_vm0, %v3878_v41, 0.0 }
0x12dd   : > { %3880 = vadd.xlane.f32.xlu1 %v3879_v42 }
0x136a   : > { %v3881_v45 = vpop.xlane.xlu1 %3880 }
0x136b   : > { %v3882_v46 = vmul.f32 0.03125, %v3881_v45 }
0x136d   : > { %v3883_v47 = vadd.f32 1e-05, %v3882_v46 }
0x136f   : > { %5004 = vrsqrt.f32 %v3883_v47 }
0x1379   : > { %v5005_v48 = vpop.eup %5004 }
0x137a   : > { %v3885_v14 = vmul.f32 %v5005_v48, %v3877_v39 }
0x137c   : > { %v3892_v53 = vmul.f32 %v4289_v49, %v3885_v14 }
0x137e   : > { %v3899_v11 = vadd.f32 %v4290_v50, %v3892_v53 }
0x1380   : > { %3900 = vst.msk [vmem:[#allocation2] sm:$0xff] %vm561_vm0, %v3899_v11 }
0x1387   : > { %v3903_v54 = vld [vmem:[%s3902_s30] sm:$0x1]  ;;  %s5022_s30 = sshll.u32 %s5087_s12, 4  ;;  %s5023_s30 = int_to_ptr.vmem [resolvable:$false] %s5022_s30 }
0x1388   : > { %v3908_v55 = vpack.c.bf16 %v3903_v54, %v3903_v54  ;;  %s5024_s3 = scalar_lea.vmem %s5023_s30, 32  ;;  %p5025_p5 = scmp.lt.s32.totalorder %s5994_s22, %s5023_s30 }
0x1389   : > { %p5026_p6 = scmp.lt.s32.totalorder %s5024_s3, %s5018_s28 }
0x138a   : > { %4841 = vmatmul.mubr.msk.bf16.vlgmr.msra.gmra.mrb[100].mxu1 %vm561_vm0, %v3908_v55 }
0x138b   : > { %p5027_p7 = por %p5026_p6, %p5025_p5 }
0x138d   : > { %p5028_p8 = pnand %p5027_p7, %p5021_p4 }
0x145d   : > { %v3958_v56 = vpop.f32.mrb[100].mxu1 }
0x145e   : > { %3965 = vst.msk [vmem:[%s545_s0] sm:$0x1] %vm3964_vm5, %v3958_v56  ;;  %v4842_v57 = vpop.f32.mrb[101].mxu1 }
0x145f   : > { %v3961_v58 = vpop.f32.mrb[102].mxu1 }
0x1460   : > { %5031 = shalt.err (!%p5028_p8)
}
0x1461   : > { %s5032_s4 = scalar_lea.hbm %s5992_s23, 16  ;;  %s5036_s0 = scalar_lea.hbm %s6052_s18, 32 }
0x1462   : > { %p5033_p9 = scmp.ne.s32.totalorder %s5992_s23, %s5032_s4  ;;  %p5037_p0 = scmp.lt.u32.totalorder %s5992_s23, %s6052_s18 }
0x1463   : > { %p5038_p1 = scmp.lt.u32.totalorder %s5036_s0, %s5032_s4  ;;  %p5040_p3 = scmp.lt.u32.totalorder %s5032_s4, %s5992_s23 }
0x1464   : > { %p5034_p12 = pnand %p5033_p9, %p5224_p10 }
0x1465   : > { %p5039_p2 = por %p5038_p1, %p5037_p0 }
0x1466   : > { %p5035_p13 = pneg %p5034_p12 }
0x1467   : > { %p5041_p4 = por %p5040_p3, %p5039_p2 }
0x1469   : > { %p5042_p5 = pnand %p5041_p4, %p5035_p13 }
0x146b   : > { %5045 = shalt.err (!%p5042_p5)
}
0x146c   : > { %4844 = dma.vmem_to_hbm [thread:$0]  (%p5224_p10), %s5994_s22, 16, %s5992_s23, %s3967_s24   ;;  %v4843_v59 = vpop.f32.mrb[103].mxu1 }
0x146d PF: > { %p4850_p6 = scmp.ge.s32.totalorder %s5082_s21, 2  ;;  %s3991_s28 = sand.u32 1, %s5070_s19  }
0x146e   : > { %s3992_s3 = scalar_lea.sflag [#allocation6], %s3991_s28 }
0x146f   : > { %p4847_p7 = pnand %p4850_p6, %p5228_p11 }
0x1471   : > { %5065 = dma.done.wait (!%p4847_p7), %s3992_s3, 16  }
0x1472   : > { %5067 = vsyncadd (!%p4847_p7), %s3992_s3, 4294967280  ;;  %s6073_s4 = sld [smem:[#allocation9_spill]]  ;;  %s6074_s20 = sld [smem:[#allocation10_spill]] }
0x1473   : > { %p34_p8 = scmp.ge.s32.totalorder %s5211_s2, 4   ;;  %s6075_s19 = smov %s5074_s1 }
0x1474   : > { %s6077_s21 = smov %s5211_s2 }
0x1475   :  { %36 = sbr.rel (!%p34_p8) target bundleno = 25 (0x19), region = 136 }
0x1478   : > { %s6076_s1 = smov %s6073_s4 }
0x147c   :  { %3996 = vsyncpa [#allocation6], 1 }
0x147d   :  { %3998 = vsyncpa [#allocation6 + $0x1], 1 }

// kernel: tpu_custom_call.1
= control target key start
LH: loop header
LB: loop body
LE: loop exit
PB: predicated region body
PF: predicated region fallthrough
CT: control target
= control target key end

     0   :  { %s6034_s0 = inlined_call_operand.vmem [shape: s32[2], index: 0, kind: input, shape index: {}]   ;;  %s6035_s1 = inlined_call_operand.vmem [shape: f32[16,32], index: 1, kind: input, shape index: {}]   ;;  %s6036_s2 = inlined_call_operand.vmem [shape: f32[8,32], index: 2, kind: input, shape index: {}]   ;;  %s6037_s3 = inlined_call_operand.vmem [shape: f32[2,1,32], index: 3, kind: input, shape index: {}]   ;;  %s6038_s4 = inlined_call_operand.vmem [shape: f32[2,1,32], index: 4, kind: input, shape index: {}]   ;;  %s6039_s5 = inlined_call_operand.vmem [shape: bf16[2,12,32,8], index: 5, kind: input, shape index: {}]   ;;  %s6040_s6 = inlined_call_operand.vmem [shape: f32[2,12,1,8], index: 6, kind: input, shape index: {}]   ;;  %s6041_s7 = inlined_call_operand.vmem [shape: bf16[2,4,8,32], index: 7, kind: input, shape index: {}]   ;;  %s6042_s8 = inlined_call_operand.vmem [shape: f32[2,1,32], index: 8, kind: input, shape index: {}]   ;;  %s6043_s9 = inlined_call_operand.vmem [shape: f32[2,1,32], index: 9, kind: input, shape index: {}]   ;;  %s6044_s10 = inlined_call_operand.vmem [shape: f32[2,1,32], index: 10, kind: input, shape index: {}]   ;;  %s6045_s11 = inlined_call_operand.vmem [shape: bf16[2,32,128], index: 11, kind: input, shape index: {}]   ;;  %s6046_s12 = inlined_call_operand.vmem [shape: f32[2,1,128], index: 12, kind: input, shape index: {}]   ;;  %s6047_s13 = inlined_call_operand.vmem [shape: bf16[2,128,32], index: 13, kind: input, shape index: {}]   ;;  %s6048_s14 = inlined_call_operand.vmem [shape: f32[2,1,32], index: 14, kind: input, shape index: {}]   ;;  %s6049_s15 = inlined_call_operand.vmem [shape: f32[1,32], index: 15, kind: input, shape index: {}]   ;;  %s6050_s16 = inlined_call_operand.vmem [shape: f32[1,32], index: 16, kind: input, shape index: {}]   ;;  %s6051_s17 = inlined_call_operand.vmem [shape: bf16[32,32], index: 17, kind: input, shape index: {}]   ;;  %s6052_s18 = inlined_call_operand.hbm [shape: f32[2,1,32], index: 18, kind: output, shape index: {}]  }
   0x1   :  { %6055 = sst [smem:[#allocation11_spill]] %s6034_s0 }
   0x2   :  { %6056 = sst [smem:[#allocation12_spill]] %s6035_s1  ;;  %s6061_s29 = sld [smem:[#allocation11_spill]] }
   0x3   :  { %6057 = sst [smem:[#allocation13_spill]] %s6036_s2 }
   0x4   :  { %6058 = sst [smem:[#allocation14_spill]] %s6037_s3 }
   0x5   :  { %6059 = sst [smem:[#allocation15_spill]] %s6038_s4 }
   0x6   :  { %6060 = sst [smem:[#allocation16_spill]] %s6046_s12 }
   0x8   :  { %s23_s12 = sshll.u32 %s6061_s29, 4  ;;  %s24_s12 = int_to_ptr.vmem [resolvable:$true] %s23_s12 }
   0x9   :  { %s5006_s30 = scalar_lea.vmem %s24_s12, 16  ;;  %p5011_p1 = scmp.lt.s32.totalorder %s24_s12, %s24_s12 }
   0xa   :  { %p5007_p0 = scmp.ne.s32.totalorder %s24_s12, %s5006_s30  ;;  %p5012_p2 = scmp.lt.s32.totalorder %s5006_s30, %s5006_s30 }
   0xc   :  { %p5013_p3 = por %p5012_p2, %p5011_p1 }
   0xe   :  { %p5014_p4 = pnand %p5013_p3, %p5007_p0 }
  0x10   :  { %5017 = shalt.err (!%p5014_p4)  }
  0x11   :  { %s5084_s0 = smov [#allocation4]  }
  0x12   :  { %26 = dma.vmem_to_smem %s24_s12, 16, %s5084_s0, [#allocation3] }
  0x13   :  { %5062 = dma.done.wait [#allocation3], 16 }
  0x14   :  { %5063 = vsyncadd [#allocation3], 4294967280 }
  0x15   :  { %28 = sfence }
  0x16   :  { %29 = vsyncpa [#allocation6], 0 }
  0x17   :  { %31 = vsyncpa [#allocation6 + $0x1], 0  ;;  %s5186_s19 = smov 0   ;;  %s5188_s1 = smov 0  }
  0x18   :  { %s5190_s20 = smov 0   ;;  %s5192_s21 = smov 0  }
  0x19 LB: > { %6062 = sst [smem:[#allocation9_spill]] %s5078_s20  ;;  %s5207_s12 = sadd.s32 4294967295, %s5082_s21   ;;  %s5082_s21 = sphi %s5192_s21, %s6077_s21   ;;  %s5078_s20 = sphi %s5190_s20, %s6074_s20   ;;  %s5074_s1 = sphi %s5188_s1, %s6076_s1   ;;  %s5070_s19 = sphi %s5186_s19, %s6075_s19  }
  0x1a   : > { %s4035_s22 = sadd.s32 4294967294, %s5082_s21   ;;  %s5211_s2 = sadd.s32 1, %s5082_s21  }
  0x1b   : > { %s406_s23 = sadd.s32 1, %s5078_s20  ;;  %s403_s24 = ssub.s32 %s5082_s21, %s5211_s2 }
  0x1c   : > { %p416_p5 = scmp.ne.s32.totalorder %s5078_s20, %s5074_s1  ;;  %p404_p6 = scmp.eq.s32.totalorder %s403_s24, 0 }
  0x1d   : > { %p417_p7 = scmp.eq.s32.totalorder %s5207_s12, 1  ;;  %p422_p8 = scmp.ne.s32.totalorder %s5074_s1, %s5070_s19 }
  0x1e   : > { %p423_p9 = scmp.eq.s32.totalorder %s4035_s22, 1  ;;  %p4038_p12 = scmp.ge.s32.totalorder %s5082_s21, 1 }
  0x1f   : > { %s5222_s25 = scalar_select %p404_p6, %s5078_s20, %s406_s23  }
  0x20   : > { %p5224_p10 = por %p417_p7, %p416_p5  ;;  %p5228_p11 = por %p423_p9, %p422_p8 }
  0x21   : > { %6063 = sst [smem:[#allocation10_spill]] %s5222_s25  ;;  %p496_p13 = scmp.lt.s32.totalorder %s5082_s21, 3 }
  0x23   : > { %p497_p0 = pnand %p4038_p12, %p496_p13 }
  0x24   : > { %p546_p1 = scmp.lt.s32.totalorder (!%p497_p0), %s5207_s12, 1  ;;  %s6066_s22 = sld [smem:[#allocation13_spill]] (!%p497_p0)  ;;  %vm561_vm0 = vcmask (!%p497_p0), 261120   ;;  %v4886_v9 = vld [vmem:[%s6039_s5] sm:$0xff] (!%p497_p0)   ;;  %v5085_v11 = vmov (!%p497_p0), 0.0   ;;  %v4888_v12 = vld [vmem:[%s6039_s5 + $0x8] sm:$0xff] (!%p497_p0)  }
  0x25   : > { %500 = sbr.rel (%p497_p0) target bundleno = 5229 (0x146d), region = 88  ;;  %s6067_s25 = sld [smem:[#allocation12_spill]] (!%p497_p0)  ;;  %v4887_v10 = vld [vmem:[%s6039_s5 + $0x20] sm:$0xff] (!%p497_p0)   ;;  %4444 = vmatprep.subr.bf16.mxu1 (!%p497_p0), %v5085_v11  ;;  %4460 = vmatprep.subr.bf16.mxu0 (!%p497_p0), %v5085_v11  ;;  %v4889_v13 = vld [vmem:[%s6039_s5 + $0x28] sm:$0xff] (!%p497_p0)   ;;  %vm5086_vm1 = vmmov (!%p497_p0), 0   ;;  %v4890_v23 = vld [vmem:[%s6039_s5 + $0x10] sm:$0xff] (!%p497_p0)  }
  0x26   : > { %4445 = vmatpush3.bf16.msra.mxu1 (!%p497_p0), %v4886_v9  ;;  %4461 = vmatpush3.bf16.msra.mxu0 (!%p497_p0), %v4887_v10  ;;  %s6068_s3 = sld [smem:[#allocation14_spill]] (!%p497_p0)  ;;  %s6069_s4 = sld [smem:[#allocation15_spill]] (!%p497_p0)  ;;  %v4891_v24 = vld [vmem:[%s6039_s5 + $0x40] sm:$0xff] (!%p497_p0)   ;;  %v4892_v26 = vld [vmem:[%s6039_s5 + $0x18] sm:$0xff] (!%p497_p0)   ;;  %v4893_v27 = vld [vmem:[%s6039_s5 + $0x48] sm:$0xff] (!%p497_p0)   ;;  %vm1358_vm2 = vcmask (!%p497_p0), 64512  }
  0x27   : > { %4446 = vmatprep.subr.bf16.mxu1 (!%p497_p0), %v5085_v11  ;;  %4462 = vmatprep.subr.bf16.mxu0 (!%p497_p0), %v5085_v11  ;;  %v4894_v28 = vld [vmem:[%s6039_s5 + $0x30] sm:$0xff] (!%p497_p0)   ;;  %v4895_v29 = vld [vmem:[%s6039_s5 + $0x60] sm:$0xff] (!%p497_p0)   ;;  %v4896_v30 = vld [vmem:[%s6039_s5 + $0x38] sm:$0xff] (!%p497_p0)   ;;  %vm1604_vm3 = vcmask (!%p497_p0), 1043456   ;;  %vm3964_vm5 = vcmask (!%p497_p0), 253952  }
  0x28   : > { %4448 = vmatprep.mubr.msk.bf16.mxu1 (!%p497_p0), %vm5086_vm1, %v5085_v11  ;;  %4464 = vmatprep.mubr.msk.bf16.mxu0 (!%p497_p0), %vm5086_vm1, %v5085_v11  ;;  %v4897_v31 = vld [vmem:[%s6039_s5 + $0x68] sm:$0xff] (!%p497_p0)   ;;  %v4898_v32 = vld [vmem:[%s6039_s5 + $0x50] sm:$0xff] (!%p497_p0)   ;;  %v4899_v33 = vld [vmem:[%s6039_s5 + $0x80] sm:$0xff] (!%p497_p0)  }
  0x29   : > { %v4900_v34 = vld [vmem:[%s6039_s5 + $0x58] sm:$0xff] (!%p497_p0)   ;;  %v4901_v35 = vld [vmem:[%s6039_s5 + $0x88] sm:$0xff] (!%p497_p0)   ;;  %v4902_v36 = vld [vmem:[%s6039_s5 + $0x70] sm:$0xff] (!%p497_p0)  }
  0x2a   : > { %v552_v0 = vld [vmem:[%s6066_s22] sm:$0xff] (!%p497_p0)  ;;  %4447 = vmatpush3.bf16.msra.mxu1 (!%p497_p0), %v4888_v12  ;;  %4463 = vmatpush3.bf16.msra.mxu0 (!%p497_p0), %v4889_v13  ;;  %v4904_v38 = vld [vmem:[%s6039_s5 + $0x78] sm:$0xff] (!%p497_p0)   ;;  %v4905_v39 = vld [vmem:[%s6039_s5 + $0xa8] sm:$0xff] (!%p497_p0)  }
  0x2b   : > { %4452 = vmatprep.subr.bf16.mxu1 (!%p497_p0), %v5085_v11  ;;  %4476 = vmatprep.subr.bf16.mxu0 (!%p497_p0), %v5085_v11  ;;  %v4903_v37 = vld [vmem:[%s6039_s5 + $0xa0] sm:$0xff] (!%p497_p0)   ;;  %v4906_v40 = vld [vmem:[%s6039_s5 + $0x90] sm:$0xff] (!%p497_p0)   ;;  %v4907_v41 = vld [vmem:[%s6039_s5 + $0x98] sm:$0xff] (!%p497_p0)  }
  0x2c   : > { %s547_s28 = scalar_select %p546_p1, %s5207_s12, 1  ;;  %v4040_v18 = vld [vmem:[%s6068_s3] ss:$0 sm:$0xff]  ;;  %v4908_v42 = vld [vmem:[%s6039_s5 + $0xb0] sm:$0xff]   ;;  %v4909_v43 = vld [vmem:[%s6039_s5 + $0xb8] sm:$0xff]  }
  0x2d   : > { %v4041_v20 = vld [vmem:[%s6069_s4] ss:$0 sm:$0xff]  ;;  %v4046_v52 = vld [vmem:[%s6040_s6 + $0x4] ss:$0 sm:$0xff] }
  0x2e   : > { %s4039_s29 = sshll.u32 %s547_s28, 3  ;;  %v4042_v63 = vld [vmem:[%s6040_s6] ss:$0 sm:$0xff]  ;;  %s3901_s28 = sld [smem:[#allocation4 + %s5207_s12]] }
  0x2f   : > { %s549_s20 = scalar_lea.vmem %s6067_s25, %s4039_s29  ;;  %s6072_s29 = sld [smem:[#allocation16_spill]] }
  0x30   : > { %v551_v1 = vld [vmem:[%s549_s20] sm:$0xff]  ;;  %s544_s20 = sand.u32 1, %s5074_s1   ;;  %s4294_s25 = sshll.u32 %s5207_s12, 4 }
  0x31   : > { %v5242_v2 = vadd.f32 %v552_v0, %v551_v1  ;;  %v4048_v1 = vld [vmem:[%s6040_s6 + $0x6] ss:$0 sm:$0xff]  ;;  %s545_s0 = scalar_lea.vmem [#allocation5], %s544_s20  ;;  %s5992_s23 = scalar_lea.hbm %s6052_s18, %s4294_s25 }
  0x32   : > { %s3979_s22 = sshll.u32 %s545_s0, 4  ;;  %s3967_s24 = scalar_lea.sflag [#allocation6], %s544_s20  ;;  %s5994_s22 = int_to_ptr.vmem [resolvable:$true] %s3979_s22 }
  0x33   : > { %v562_v3 = vsel %vm561_vm0, %v5242_v2, 0.0  ;;  %s5087_s12 = smov [#allocation5]  }
  0x34   : > { %563 = vadd.xlane.f32.xlu0 %v562_v3  ;;  %s3902_s30 = scalar_lea.vmem [#allocation2], %s3901_s28  ;;  %s5018_s28 = scalar_lea.vmem %s5994_s22, 16 }
  0x35   : > { %p5019_p2 = scmp.ne.s32.totalorder %s5994_s22, %s5018_s28 }
  0x37   : > { %p5020_p3 = pnand %p5019_p2, %p5224_p10 }
  0x39   : > { %p5021_p4 = pneg %p5020_p3 }
  0xc1   : > { %v564_v4 = vpop.xlane.xlu0 %563 }
  0xc2   : > { %v566_v5 = vmul.f32 0.03125, %v564_v4 }
  0xc4   : > { %v567_v6 = vsub.f32 %v5242_v2, %v566_v5 }
  0xc6   : > { %v568_v7 = vmul.f32 %v567_v6, %v567_v6 }
  0xc8   : > { %v569_v8 = vsel %vm561_vm0, %v568_v7, 0.0 }
  0xc9   : > { %570 = vadd.xlane.f32.xlu0 %v569_v8 }
 0x156   : > { %v571_v14 = vpop.xlane.xlu0 %570 }
 0x157   : > { %v572_v15 = vmul.f32 0.03125, %v571_v14 }
 0x159   : > { %v573_v16 = vadd.f32 1e-05, %v572_v15 }
 0x15b   : > { %4956 = vrsqrt.f32 %v573_v16  ;;  %v4044_v16 = vld [vmem:[%s6040_s6 + $0x2] ss:$0 sm:$0xff] }
 0x165   : > { %v4957_v17 = vpop.eup %4956 }
 0x166   : > { %v575_v19 = vmul.f32 %v4957_v17, %v567_v6 }
 0x168   : > { %v582_v21 = vmul.f32 %v4040_v18, %v575_v19  ;;  %v4047_v18 = vld [vmem:[%s6040_s6 + $0x5] ss:$0 sm:$0xff]  ;;  %v4050_v19 = vld [vmem:[%s6040_s6 + $0x8] ss:$0 sm:$0xff] }
 0x16a   : > { %v589_v22 = vadd.f32 %v4041_v20, %v582_v21 }
 0x16c   : > { %v5282_v25 = vpack.c.bf16 %v589_v22, %v589_v22 }
 0x16e   : > { %4449 = vmatmul.mubr.msk.bf16.vlgmr.msra.gmra.mrb[0].mxu1 %vm561_vm0, %v5282_v25  ;;  %4465 = vmatmul.mubr.msk.bf16.vlgmr.msra.gmra.mrb[0].mxu0 %vm561_vm0, %v5282_v25 }
 0x16f   : > { %4453 = vmatpush3.bf16.msra.mxu1 %v4890_v23  ;;  %4477 = vmatpush3.bf16.msra.mxu0 %v4891_v24 }
 0x170   : > { %4454 = vmatprep.subr.bf16.mxu1 %v5085_v11  ;;  %4478 = vmatprep.subr.bf16.mxu0 %v5085_v11 }
 0x171   : > { %4456 = vmatprep.mubr.msk.bf16.mxu1 %vm5086_vm1, %v5085_v11  ;;  %4480 = vmatprep.mubr.msk.bf16.mxu0 %vm5086_vm1, %v5085_v11 }
 0x173   : > { %4455 = vmatpush3.bf16.msra.mxu1 %v4892_v26  ;;  %4479 = vmatpush3.bf16.msra.mxu0 %v4893_v27 }
 0x174   : > { %4468 = vmatprep.subr.bf16.mxu1 %v5085_v11  ;;  %4492 = vmatprep.subr.bf16.mxu0 %v5085_v11 }
 0x176   : > { %4457 = vmatmul.mubr.msk.bf16.vlgmr.msra.gmra.mrb[4].mxu1 %vm561_vm0, %v5282_v25  ;;  %4481 = vmatmul.mubr.msk.bf16.vlgmr.msra.gmra.mrb[4].mxu0 %vm561_vm0, %v5282_v25 }
 0x177   : > { %4469 = vmatpush3.bf16.msra.mxu1 %v4894_v28  ;;  %4493 = vmatpush3.bf16.msra.mxu0 %v4895_v29 }
 0x178   : > { %4470 = vmatprep.subr.bf16.mxu1 %v5085_v11  ;;  %4494 = vmatprep.subr.bf16.mxu0 %v5085_v11 }
 0x179   : > { %4472 = vmatprep.mubr.msk.bf16.mxu1 %vm5086_vm1, %v5085_v11  ;;  %4496 = vmatprep.mubr.msk.bf16.mxu0 %vm5086_vm1, %v5085_v11 }
 0x17b   : > { %4471 = vmatpush3.bf16.msra.mxu1 %v4896_v30  ;;  %4495 = vmatpush3.bf16.msra.mxu0 %v4897_v31 }
 0x17c   : > { %4484 = vmatprep.subr.bf16.mxu1 %v5085_v11  ;;  %4508 = vmatprep.subr.bf16.mxu0 %v5085_v11 }
 0x17e   : > { %4473 = vmatmul.mubr.msk.bf16.vlgmr.msra.gmra.mrb[8].mxu1 %vm561_vm0, %v5282_v25  ;;  %4497 = vmatmul.mubr.msk.bf16.vlgmr.msra.gmra.mrb[8].mxu0 %vm561_vm0, %v5282_v25 }
 0x17f   : > { %4485 = vmatpush3.bf16.msra.mxu1 %v4898_v32  ;;  %4509 = vmatpush3.bf16.msra.mxu0 %v4899_v33 }
 0x180   : > { %4486 = vmatprep.subr.bf16.mxu1 %v5085_v11  ;;  %4510 = vmatprep.subr.bf16.mxu0 %v5085_v11 }
 0x181   : > { %4488 = vmatprep.mubr.msk.bf16.mxu1 %vm5086_vm1, %v5085_v11  ;;  %4512 = vmatprep.mubr.msk.bf16.mxu0 %vm5086_vm1, %v5085_v11 }
 0x183   : > { %4487 = vmatpush3.bf16.msra.mxu1 %v4900_v34  ;;  %4511 = vmatpush3.bf16.msra.mxu0 %v4901_v35  ;;  %v4043_v34 = vld [vmem:[%s6040_s6 + $0x1] ss:$0 sm:$0xff] }
 0x184   : > { %4500 = vmatprep.subr.bf16.mxu1 %v5085_v11  ;;  %4524 = vmatprep.subr.bf16.mxu0 %v5085_v11 }
 0x186   : > { %4489 = vmatmul.mubr.msk.bf16.vlgmr.msra.gmra.mrb[12].mxu1 %vm561_vm0, %v5282_v25  ;;  %4513 = vmatmul.mubr.msk.bf16.vlgmr.msra.gmra.mrb[12].mxu0 %vm561_vm0, %v5282_v25 }
 0x187   : > { %4501 = vmatpush3.bf16.msra.mxu1 %v4902_v36  ;;  %4525 = vmatpush3.bf16.msra.mxu0 %v4903_v37  ;;  %v4049_v37 = vld [vmem:[%s6040_s6 + $0x7] ss:$0 sm:$0xff] }
 0x188   : > { %4502 = vmatprep.subr.bf16.mxu1 %v5085_v11  ;;  %4526 = vmatprep.subr.bf16.mxu0 %v5085_v11 }
 0x189   : > { %4504 = vmatprep.mubr.msk.bf16.mxu1 %vm5086_vm1, %v5085_v11  ;;  %4528 = vmatprep.mubr.msk.bf16.mxu0 %vm5086_vm1, %v5085_v11 }
 0x18b   : > { %4503 = vmatpush3.bf16.msra.mxu1 %v4904_v38  ;;  %4527 = vmatpush3.bf16.msra.mxu0 %v4905_v39 }
 0x18c   : > { %4516 = vmatprep.subr.bf16.mxu1 %v5085_v11  ;;  %4540 = vmatprep.subr.bf16.mxu0 %v5085_v11 }
 0x18e   : > { %4505 = vmatmul.mubr.msk.bf16.vlgmr.msra.gmra.mrb[16].mxu1 %vm561_vm0, %v5282_v25  ;;  %4529 = vmatmul.mubr.msk.bf16.vlgmr.msra.gmra.mrb[16].mxu0 %vm561_vm0, %v5282_v25 }
 0x18f   : > { %4517 = vmatpush3.bf16.msra.mxu1 %v4906_v40  ;;  %4520 = vmatprep.mubr.msk.bf16.mxu1 %vm5086_vm1, %v5085_v11 }
 0x190   : > { %4518 = vmatprep.subr.bf16.mxu1 %v5085_v11  ;;  %4542 = vmatprep.mubr.msk.bf16.mxu0 %vm5086_vm1, %v5085_v11 }
 0x193   : > { %4519 = vmatpush3.bf16.msra.mxu1 %v4907_v41 }
 0x194   : > { %4532 = vmatprep.subr.bf16.mxu1 %v5085_v11 }
 0x196   : > { %4521 = vmatmul.mubr.msk.bf16.vlgmr.msra.gmra.mrb[20].mxu1 %vm561_vm0, %v5282_v25 }
 0x197   : > { %4533 = vmatpush3.bf16.msra.mxu1 %v4908_v42  ;;  %4536 = vmatprep.mubr.msk.bf16.mxu1 %vm5086_vm1, %v5085_v11 }
 0x198   : > { %4534 = vmatprep.subr.bf16.mxu1 %v5085_v11 }
 0x19b   : > { %4535 = vmatpush3.bf16.msra.mxu1 %v4909_v43 }
 0x19c   : > { %4546 = vmatprep.subr.bf16.mxu1 %v5085_v11 }
 0x19e   : > { %4537 = vmatmul.mubr.msk.bf16.vlgmr.msra.gmra.mrb[24].mxu1 %vm561_vm0, %v5282_v25 }
 0x19f   : > { %4548 = vmatprep.mubr.msk.bf16.mxu1 %vm5086_vm1, %v5085_v11 }
 0x241   : > { %v772_v44 = vpop.f32.mrb[0].mxu1  ;;  %v876_v45 = vpop.f32.mrb[0].mxu0 }
 0x242   : > { %v4450_v46 = vpop.f32.mrb[1].mxu1  ;;  %v4466_v47 = vpop.f32.mrb[1].mxu0  ;;  %v773_v3 = vadd.f32 %v4042_v63, %v772_v44  ;;  %v877_v20 = vadd.f32 %v4044_v16, %v876_v45 }
 0x243   : > { %v775_v48 = vpop.f32.mrb[2].mxu1  ;;  %v879_v49 = vpop.f32.mrb[2].mxu0 }
 0x244   : > { %v4451_v50 = vpop.f32.mrb[3].mxu1  ;;  %v4467_v51 = vpop.f32.mrb[3].mxu0  ;;  %v1350_v12 = vpack.c.bf16 %v773_v3, %v773_v3  ;;  %v1352_v29 = vpack.c.bf16 %v877_v20, %v877_v20  ;;  %v554_v3 = vlaneseq }
 0x245   : > { %v4045_v50 = vld [vmem:[%s6040_s6 + $0x3] ss:$0 sm:$0xff] }
 0x249   : > { %v824_v53 = vpop.f32.mrb[4].mxu1  ;;  %v980_v54 = vpop.f32.mrb[4].mxu0 }
 0x24a   : > { %v981_v55 = vadd.f32 %v4046_v52, %v980_v54  ;;  %v4458_v56 = vpop.f32.mrb[5].mxu1  ;;  %v4482_v57 = vpop.f32.mrb[5].mxu0  ;;  %v825_v38 = vadd.f32 %v4043_v34, %v824_v53  ;;  %v4051_v52 = vld [vmem:[%s6040_s6 + $0x9] ss:$0 sm:$0xff] }
 0x24b   : > { %v827_v58 = vpop.f32.mrb[6].mxu1  ;;  %v983_v59 = vpop.f32.mrb[6].mxu0 }
 0x24c   : > { %v1354_v60 = vpack.c.bf16 %v981_v55, %v981_v55  ;;  %v4459_v61 = vpop.f32.mrb[7].mxu1  ;;  %v4483_v62 = vpop.f32.mrb[7].mxu0  ;;  %v1351_v46 = vpack.c.bf16 %v825_v38, %v825_v38 }
 0x24e   : > { %v1363_v0 = vsel %vm1358_vm2, %v1354_v60, 0 }
 0x24f   : > { %4541 = vmatpush3.bf16.xpose.msra.mxu0 %v1363_v0 }
 0x250   : > { %4552 = vmatprep.subr.bf16.mxu0 %v5085_v11 }
 0x251   : > { %v928_v4 = vpop.f32.mrb[8].mxu1  ;;  %v1084_v5 = vpop.f32.mrb[8].mxu0 }
 0x252   : > { %v1085_v6 = vadd.f32 %v4048_v1, %v1084_v5  ;;  %v4474_v7 = vpop.f32.mrb[9].mxu1  ;;  %v4498_v8 = vpop.f32.mrb[9].mxu0  ;;  %v929_v53 = vadd.f32 %v4045_v50, %v928_v4  ;;  %v555_v4 = vshrl.u32 %v554_v3, 7  ;;  %v557_v5 = vand.u32 127, %v554_v3 }
 0x253   : > { %v931_v9 = vpop.f32.mrb[10].mxu1  ;;  %v1087_v10 = vpop.f32.mrb[10].mxu0 }
 0x254   : > { %v1356_v13 = vpack.c.bf16 %v1085_v6, %v1085_v6  ;;  %v4475_v14 = vpop.f32.mrb[11].mxu1  ;;  %v4499_v15 = vpop.f32.mrb[11].mxu0  ;;  %v1353_v58 = vpack.c.bf16 %v929_v53, %v929_v53  ;;  %vm5464_vm4 = vcmp.gt.s32.totalorder %v557_v5, %v555_v4 }
 0x256   : > { %v1455_v17 = vsel %vm1358_vm2, %v1356_v13, 0  ;;  %4543 = vmatmul.mubr.msk.bf16.vlgmr.msra.gmra.mrb[20].mxu0 %vm1358_vm2, %v1350_v12 }
 0x257   : > { %4553 = vmatpush3.bf16.xpose.msra.mxu0 %v1455_v17  ;;  %4554 = vmatprep.mubr.msk.bf16.mxu0 %vm5086_vm1, %v5085_v11 }
 0x258   : > { %4564 = vmatprep.subr.bf16.mxu0 %v5085_v11 }
 0x259   : > { %v1032_v21 = vpop.f32.mrb[12].mxu1  ;;  %v1188_v22 = vpop.f32.mrb[12].mxu0 }
 0x25a   : > { %v1033_v23 = vadd.f32 %v4047_v18, %v1032_v21  ;;  %v1189_v24 = vadd.f32 %v4050_v19, %v1188_v22  ;;  %v4490_v25 = vpop.f32.mrb[13].mxu1  ;;  %v4514_v26 = vpop.f32.mrb[13].mxu0 }
 0x25b   : > { %v1035_v27 = vpop.f32.mrb[14].mxu1  ;;  %v1191_v28 = vpop.f32.mrb[14].mxu0 }
 0x25c   : > { %v1355_v30 = vpack.c.bf16 %v1033_v23, %v1033_v23  ;;  %v1597_v31 = vpack.c.bf16 %v1189_v24, %v1189_v24  ;;  %v4491_v32 = vpop.f32.mrb[15].mxu1  ;;  %v4515_v33 = vpop.f32.mrb[15].mxu0 }
 0x25e   : > { %v1409_v35 = vsel %vm1358_vm2, %v1355_v30, 0  ;;  %v1606_v36 = vsel %vm1604_vm3, %v1597_v31, 0  ;;  %4555 = vmatmul.mubr.msk.bf16.vlgmr.msra.gmra.mrb[24].mxu0 %vm1358_vm2, %v1352_v29 }
 0x25f   : > { %4547 = vmatpush3.bf16.xpose.msra.mxu1 %v1409_v35  ;;  %4565 = vmatpush3.bf16.msra.mxu0 %v1606_v36 }
 0x260   : > { %4558 = vmatprep.subr.bf16.mxu1 %v5085_v11  ;;  %4566 = vmatprep.mubr.msk.bf16.mxu0 %vm5086_vm1, %v5085_v11 }
 0x261   : > { %v1136_v39 = vpop.f32.mrb[16].mxu1  ;;  %v5443_v40 = vpop.f32.mrb[16].mxu0  ;;  %4576 = vmatprep.subr.bf16.mxu0 %v5085_v11 }
 0x262   : > { %v1137_v41 = vadd.f32 %v4049_v37, %v1136_v39  ;;  %v4506_v42 = vpop.f32.mrb[17].mxu1  ;;  %v4530_v43 = vpop.f32.mrb[17].mxu0 }
 0x263   : > { %v1139_v44 = vpop.f32.mrb[18].mxu1  ;;  %v1295_v45 = vpop.f32.mrb[18].mxu0 }
 0x264   : > { %v1357_v47 = vpack.c.bf16 %v1137_v41, %v1137_v41  ;;  %v4507_v48 = vpop.f32.mrb[19].mxu1  ;;  %v4531_v49 = vpop.f32.mrb[19].mxu0 }
 0x266   : > { %v1501_v51 = vsel %vm1358_vm2, %v1357_v47, 0  ;;  %4549 = vmatmul.mubr.msk.bf16.vlgmr.msra.gmra.mrb[28].mxu1 %vm1358_vm2, %v1351_v46 }
 0x267   : > { %4559 = vmatpush3.bf16.xpose.msra.mxu1 %v1501_v51  ;;  %4560 = vmatprep.mubr.msk.bf16.mxu1 %vm5086_vm1, %v5085_v11 }
 0x268   : > { %4570 = vmatprep.subr.bf16.mxu1 %v5085_v11 }
 0x269   : > { %v1240_v54 = vpop.f32.mrb[20].mxu1 }
 0x26a   : > { %v1241_v55 = vadd.f32 %v4051_v52, %v1240_v54  ;;  %v4522_v56 = vpop.f32.mrb[21].mxu1  ;;  %v4052_v54 = vld [vmem:[%s6040_s6 + $0xa] ss:$0 sm:$0xff] }
 0x26b   : > { %v1243_v57 = vpop.f32.mrb[22].mxu1 }
 0x26c   : > { %v1598_v59 = vpack.c.bf16 %v1241_v55, %v1241_v55  ;;  %v4523_v60 = vpop.f32.mrb[23].mxu1  ;;  %v1293_v55 = vadd.f32 %v4052_v54, %v5443_v40 }
 0x26e   : > { %v1652_v61 = vsel %vm1604_vm3, %v1598_v59, 0  ;;  %4561 = vmatmul.mubr.msk.bf16.vlgmr.msra.gmra.mrb[32].mxu1 %vm1358_vm2, %v1353_v58  ;;  %v1599_v58 = vpack.c.bf16 %v1293_v55, %v1293_v55 }
 0x26f   : > { %4571 = vmatpush3.bf16.msra.mxu1 %v1652_v61  ;;  %4572 = vmatprep.mubr.msk.bf16.mxu1 %vm5086_vm1, %v5085_v11 }
 0x270   : > { %4582 = vmatprep.subr.bf16.mxu1 %v5085_v11  ;;  %v1698_v61 = vsel %vm1604_vm3, %v1599_v58, 0 }
 0x271   : > { %v5462_v62 = vpop.f32.mrb[24].mxu1 }
 0x272   : > { %v4538_v63 = vpop.f32.mrb[25].mxu1 }
 0x273   : > { %v1347_v0 = vpop.f32.mrb[26].mxu1 }
 0x274   : > { %v4539_v1 = vpop.f32.mrb[27].mxu1 }
 0x275   : > { %v4053_v1 = vld [vmem:[%s6040_s6 + $0xb] ss:$0 sm:$0xff] }
 0x276   : > { %v1345_v4 = vadd.f32 %v4053_v1, %v5462_v62 }
 0x329   : > { %v1399_v7 = vpop.f32.mrb[20].mxu0 }
 0x32a   : > { %v1545_v8 = vsel %vm5464_vm4, -1e+30, %v1399_v7  ;;  %v4544_v9 = vpop.f32.mrb[21].mxu0 }
 0x32b   : > { %v1402_v10 = vpop.f32.mrb[22].mxu0  ;;  %v1549_v12 = vsel %vm1358_vm2, %v1545_v8, -inf }
 0x32c   : > { %1550 = vmax.xlane.f32.xlu1 %v1549_v12  ;;  %v4545_v13 = vpop.f32.mrb[23].mxu0 }
 0x331   : > { %v1491_v14 = vpop.f32.mrb[24].mxu0 }
 0x332   : > { %v1547_v15 = vsel %vm5464_vm4, -1e+30, %v1491_v14  ;;  %v4556_v16 = vpop.f32.mrb[25].mxu0 }
 0x333   : > { %v1494_v17 = vpop.f32.mrb[26].mxu0  ;;  %v1555_v18 = vsel %vm1358_vm2, %v1547_v15, -inf }
 0x334   : > { %1556 = vmax.xlane.f32.xlu0 %v1555_v18  ;;  %v4557_v19 = vpop.f32.mrb[27].mxu0  ;;  %v1791_v17 = vld [vmem:[%s6041_s7 + $0x4] sm:$0xf] }
 0x335   : > { %v1844_v18 = vsel %vm1604_vm3, %v1791_v17, 0  ;;  %v1792_v19 = vld [vmem:[%s6041_s7 + $0x8] sm:$0xf] }
 0x339   : > { %v1445_v20 = vpop.f32.mrb[28].mxu1 }
 0x33a   : > { %v1546_v21 = vsel %vm5464_vm4, -1e+30, %v1445_v20  ;;  %v4550_v22 = vpop.f32.mrb[29].mxu1 }
 0x33b   : > { %v1448_v23 = vpop.f32.mrb[30].mxu1  ;;  %v1552_v24 = vsel %vm1358_vm2, %v1546_v21, -inf }
 0x33c   : > { %1553 = vmax.xlane.f32.xlu1 %v1552_v24  ;;  %v4551_v25 = vpop.f32.mrb[31].mxu1  ;;  %v1890_v23 = vsel %vm1604_vm3, %v1792_v19, 0  ;;  %v4103_v19 = vld [vmem:[%s6043_s9] ss:$0 sm:$0xff] }
 0x341   : > { %v1537_v26 = vpop.f32.mrb[32].mxu1 }
 0x342   : > { %v1548_v27 = vsel %vm5464_vm4, -1e+30, %v1537_v26  ;;  %v4562_v28 = vpop.f32.mrb[33].mxu1 }
 0x343   : > { %v1540_v29 = vpop.f32.mrb[34].mxu1  ;;  %v1558_v30 = vsel %vm1358_vm2, %v1548_v27, -inf }
 0x344   : > { %1559 = vmax.xlane.f32.xlu1 %v1558_v30  ;;  %v4563_v31 = vpop.f32.mrb[35].mxu1 }
 0x345   : > { %v1793_v31 = vld [vmem:[%s6041_s7 + $0xc] sm:$0xf] }
 0x3b9   : > { %v1551_v32 = vpop.xlane.xlu1 %1550 }
 0x3ba   : > { %v1561_v33 = vsub.f32 %v1545_v8, %v1551_v32  ;;  %v1600_v8 = vpack.c.bf16 %v1345_v4, %v1345_v4  ;;  %v4102_v4 = vld [vmem:[%s6042_s8] ss:$0 sm:$0xff] }
 0x3bc   : > { %v1565_v34 = vmul.f32 1.442695, %v1561_v33  ;;  %v1744_v12 = vsel %vm1604_vm3, %v1600_v8, 0 }
 0x3be   : > { %4958 = vpow2.f32 %v1565_v34 }
 0x3c1   : > { %v1557_v35 = vpop.xlane.xlu0 %1556 }
 0x3c2   : > { %v1563_v36 = vsub.f32 %v1547_v15, %v1557_v35  ;;  %v1790_v15 = vld [vmem:[%s6041_s7] sm:$0xf]  ;;  %v1936_v35 = vsel %vm1604_vm3, %v1793_v31, 0  ;;  %v4918_v31 = vld [vmem:[%s6047_s13 + $0x30] sm:$0xff]  }
 0x3c3   : > { %v1798_v16 = vsel %vm1604_vm3, %v1790_v15, 0 }
 0x3c4   : > { %v1569_v37 = vmul.f32 1.442695, %v1563_v36 }
 0x3c6   : > { %4960 = vpow2.f32 %v1569_v37 }
 0x3c8   : > { %v4959_v38 = vpop.eup %4958 }
 0x3c9   : > { %v1554_v39 = vpop.xlane.xlu1 %1553  ;;  %v1573_v41 = vsel %vm1358_vm2, %v4959_v38, 0.0 }
 0x3ca   : > { %v1562_v42 = vsub.f32 %v1546_v21, %v1554_v39  ;;  %1574 = vadd.xlane.f32.xlu0 %v1573_v41 }
 0x3cc   : > { %v1567_v43 = vmul.f32 1.442695, %v1562_v42 }
 0x3ce   : > { %4962 = vpow2.f32 %v1567_v43 }
 0x3d0   : > { %v4961_v44 = vpop.eup %4960 }
 0x3d1   : > { %v1560_v45 = vpop.xlane.xlu1 %1559  ;;  %v1579_v46 = vsel %vm1358_vm2, %v4961_v44, 0.0 }
 0x3d2   : > { %v1564_v47 = vsub.f32 %v1548_v27, %v1560_v45  ;;  %1580 = vadd.xlane.f32.xlu0 %v1579_v46 }
 0x3d4   : > { %v1571_v48 = vmul.f32 1.442695, %v1564_v47 }
 0x3d6   : > { %4964 = vpow2.f32 %v1571_v48 }
 0x3d8   : > { %v4963_v49 = vpop.eup %4962 }
 0x3d9   : > { %v1576_v50 = vsel %vm1358_vm2, %v4963_v49, 0.0 }
 0x3da   : > { %1577 = vadd.xlane.f32.xlu1 %v1576_v50 }
 0x3e0   : > { %v4965_v51 = vpop.eup %4964 }
 0x3e1   : > { %v1582_v52 = vsel %vm1358_vm2, %v4965_v51, 0.0 }
 0x3e2   : > { %1583 = vadd.xlane.f32.xlu1 %v1582_v52 }
 0x457   : > { %v1575_v53 = vpop.xlane.xlu0 %1574 }
 0x458   : > { %4966 = vrcp.f32 %v1575_v53 }
 0x45f   : > { %v1581_v56 = vpop.xlane.xlu0 %1580 }
 0x460   : > { %4968 = vrcp.f32 %v1581_v56 }
 0x462   : > { %v4967_v57 = vpop.eup %4966 }
 0x463   : > { %v1586_v59 = vmul.f32 %v4967_v57, %v4959_v38 }
 0x465   : > { %v1593_v60 = vpack.c.bf16 %v1586_v59, %v1586_v59 }
 0x467   : > { %4567 = vmatmul.mubr.msk.bf16.vlgmr.msra.gmra.mrb[28].mxu0 %vm1358_vm2, %v1593_v60  ;;  %v1578_v63 = vpop.xlane.xlu1 %1577 }
 0x468   : > { %4577 = vmatpush3.bf16.msra.mxu0 %v1698_v61  ;;  %4970 = vrcp.f32 %v1578_v63  ;;  %4578 = vmatprep.mubr.msk.bf16.mxu0 %vm5086_vm1, %v5085_v11 }
 0x469   : > { %4588 = vmatprep.subr.bf16.mxu0 %v5085_v11 }
 0x46a   : > { %v4969_v0 = vpop.eup %4968 }
 0x46b   : > { %v1590_v40 = vmul.f32 %v4969_v0, %v4961_v44 }
 0x46d   : > { %v1595_v3 = vpack.c.bf16 %v1590_v40, %v1590_v40 }
 0x46f   : > { %4579 = vmatmul.mubr.msk.bf16.vlgmr.msra.gmra.mrb[32].mxu0 %vm1358_vm2, %v1595_v3  ;;  %v1584_v5 = vpop.xlane.xlu1 %1583 }
 0x470   : > { %4972 = vrcp.f32 %v1584_v5  ;;  %4590 = vmatprep.mubr.msk.bf16.mxu0 %vm5086_vm1, %v5085_v11  ;;  %4589 = vmatpush3.bf16.msra.mxu0 %v1798_v16 }
 0x471   : > { %4600 = vmatprep.subr.bf16.mxu0 %v5085_v11 }
 0x472   : > { %v4971_v7 = vpop.eup %4970 }
 0x473   : > { %v1588_v9 = vmul.f32 %v4971_v7, %v4963_v49 }
 0x475   : > { %v1594_v10 = vpack.c.bf16 %v1588_v9, %v1588_v9 }
 0x477   : > { %4573 = vmatmul.mubr.msk.bf16.vlgmr.msra.gmra.mrb[36].mxu1 %vm1358_vm2, %v1594_v10 }
 0x478   : > { %4583 = vmatpush3.bf16.msra.mxu1 %v1744_v12  ;;  %4584 = vmatprep.mubr.msk.bf16.mxu1 %vm5086_vm1, %v5085_v11 }
 0x479   : > { %4594 = vmatprep.subr.bf16.mxu1 %v5085_v11 }
 0x47a   : > { %v4973_v62 = vpop.eup %4972 }
 0x47b   : > { %v1592_v13 = vmul.f32 %v4973_v62, %v4965_v51 }
 0x47d   : > { %v1596_v14 = vpack.c.bf16 %v1592_v13, %v1592_v13 }
 0x47f   : > { %4585 = vmatmul.mubr.msk.bf16.vlgmr.msra.gmra.mrb[40].mxu1 %vm1358_vm2, %v1596_v14  ;;  %v4910_v14 = vld [vmem:[%s6045_s11] sm:$0xff]  }
 0x480   : > { %4596 = vmatprep.mubr.msk.bf16.mxu1 %vm5086_vm1, %v5085_v11  ;;  %4595 = vmatpush3.bf16.msra.mxu1 %v1844_v18 }
 0x481   : > { %4606 = vmatprep.subr.bf16.mxu1 %v5085_v11 }
 0x53a   : > { %v1642_v20 = vpop.f32.mrb[28].mxu0 }
 0x53b   : > { %v1786_v21 = vpack.c.bf16 %v1642_v20, %v1642_v20  ;;  %v4568_v22 = vpop.f32.mrb[29].mxu0 }
 0x53c   : > { %v1645_v24 = vpop.f32.mrb[30].mxu0 }
 0x53d   : > { %v4569_v25 = vpop.f32.mrb[31].mxu0  ;;  %4591 = vmatmul.mubr.msk.bf16.vlgmr.msra.gmra.mrb[36].mxu0 %vm1358_vm2, %v1786_v21  ;;  %v4104_v21 = vld [vmem:[%s6044_s10] ss:$0 sm:$0xff] }
 0x53e   : > { %4601 = vmatpush3.bf16.msra.mxu0 %v1890_v23  ;;  %4602 = vmatprep.mubr.msk.bf16.mxu0 %vm5086_vm1, %v5085_v11  ;;  %v4912_v25 = vld [vmem:[%s6047_s13] sm:$0xff]  }
 0x53f   : > { %4612 = vmatprep.subr.bf16.mxu0 %v5085_v11 }
 0x542   : > { %v1734_v26 = vpop.f32.mrb[32].mxu0 }
 0x543   : > { %v1788_v27 = vpack.c.bf16 %v1734_v26, %v1734_v26  ;;  %v4580_v28 = vpop.f32.mrb[33].mxu0  ;;  %v4913_v26 = vld [vmem:[%s6047_s13 + $0x8] sm:$0xff]  }
 0x544   : > { %v1737_v29 = vpop.f32.mrb[34].mxu0  ;;  %v4915_v28 = vld [vmem:[%s6047_s13 + $0x18] sm:$0xff]  }
 0x545   : > { %v4581_v30 = vpop.f32.mrb[35].mxu0  ;;  %4603 = vmatmul.mubr.msk.bf16.vlgmr.msra.gmra.mrb[40].mxu0 %vm1358_vm2, %v1788_v27  ;;  %v4914_v27 = vld [vmem:[%s6047_s13 + $0x10] sm:$0xff]   ;;  %v4916_v29 = vld [vmem:[%s6047_s13 + $0x20] sm:$0xff]  }
 0x546   : > { %4616 = vmatprep.mubr.msk.bf16.mxu0 %vm5086_vm1, %v5085_v11  ;;  %4613 = vmatpush3.bf16.msra.mxu0 %v4910_v14  ;;  %v4917_v30 = vld [vmem:[%s6047_s13 + $0x28] sm:$0xff]   ;;  %v4926_v14 = vld [vmem:[%s6039_s5 + $0xd8] sm:$0xff]  }
 0x547   : > { %4614 = vmatprep.subr.bf16.mxu0 %v5085_v11 }
 0x54a   : > { %v1688_v32 = vpop.f32.mrb[36].mxu1 }
 0x54b   : > { %v1787_v33 = vpack.c.bf16 %v1688_v32, %v1688_v32  ;;  %v4574_v34 = vpop.f32.mrb[37].mxu1  ;;  %v4919_v32 = vld [vmem:[%s6047_s13 + $0x38] sm:$0xff]  }
 0x54c   : > { %v1691_v36 = vpop.f32.mrb[38].mxu1 }
 0x54d   : > { %v4575_v37 = vpop.f32.mrb[39].mxu1  ;;  %4597 = vmatmul.mubr.msk.bf16.vlgmr.msra.gmra.mrb[44].mxu1 %vm1358_vm2, %v1787_v33  ;;  %v4105_v33 = vld [vmem:[%s6072_s29] ss:$0 sm:$0xff] }
 0x54e   : > { %4607 = vmatpush3.bf16.msra.mxu1 %v1936_v35  ;;  %4608 = vmatprep.mubr.msk.bf16.mxu1 %vm5086_vm1, %v5085_v11 }
 0x54f   : > { %4620 = vmatprep.subr.bf16.mxu1 %v5085_v11 }
 0x552   : > { %v1780_v38 = vpop.f32.mrb[40].mxu1 }
 0x553   : > { %v1789_v39 = vpack.c.bf16 %v1780_v38, %v1780_v38  ;;  %v4586_v41 = vpop.f32.mrb[41].mxu1 }
 0x554   : > { %v1783_v42 = vpop.f32.mrb[42].mxu1 }
 0x555   : > { %v4587_v43 = vpop.f32.mrb[43].mxu1  ;;  %4609 = vmatmul.mubr.msk.bf16.vlgmr.msra.gmra.mrb[48].mxu1 %vm1358_vm2, %v1789_v39 }
 0x556   : > { %4636 = vmatprep.mubr.msk.bf16.mxu1 %vm5086_vm1, %v5085_v11  ;;  %4621 = vmatpush3.bf16.msra.mxu1 %v4912_v25  ;;  %v4938_v25 = vld [vmem:[%s6039_s5 + $0x130] sm:$0xff]  }
 0x557   : > { %4622 = vmatprep.subr.bf16.mxu1 %v5085_v11 }
 0x55a   : > { %4623 = vmatpush3.bf16.msra.mxu1 %v4913_v26  ;;  %v4939_v26 = vld [vmem:[%s6039_s5 + $0x138] sm:$0xff]  }
 0x55b   : > { %4624 = vmatprep.subr.bf16.mxu1 %v5085_v11 }
 0x55e   : > { %4625 = vmatpush3.bf16.msra.mxu1 %v4914_v27  ;;  %v4940_v27 = vld [vmem:[%s6039_s5 + $0x150] sm:$0xff]  }
 0x55f   : > { %4626 = vmatprep.subr.bf16.mxu1 %v5085_v11 }
 0x562   : > { %4627 = vmatpush3.bf16.msra.mxu1 %v4915_v28  ;;  %v4941_v28 = vld [vmem:[%s6039_s5 + $0x158] sm:$0xff]  }
 0x563   : > { %4628 = vmatprep.subr.bf16.mxu1 %v5085_v11 }
 0x566   : > { %4629 = vmatpush3.bf16.msra.mxu1 %v4916_v29  ;;  %v4942_v29 = vld [vmem:[%s6039_s5 + $0x170] sm:$0xff]  }
 0x567   : > { %4630 = vmatprep.subr.bf16.mxu1 %v5085_v11 }
 0x56a   : > { %4631 = vmatpush3.bf16.msra.mxu1 %v4917_v30  ;;  %v4943_v30 = vld [vmem:[%s6039_s5 + $0x178] sm:$0xff]  }
 0x56b   : > { %4632 = vmatprep.subr.bf16.mxu1 %v5085_v11 }
 0x56e   : > { %4633 = vmatpush3.bf16.msra.mxu1 %v4918_v31  ;;  %v4187_v31 = vld [vmem:[%s6040_s6 + $0x10] ss:$0 sm:$0xff] }
 0x56f   : > { %4634 = vmatprep.subr.bf16.mxu1 %v5085_v11 }
 0x572   : > { %4635 = vmatpush3.bf16.msra.mxu1 %v4919_v32 }
 0x573   : > { %4672 = vmatprep.subr.bf16.mxu1 %v5085_v11 }
 0x610   : > { %v1834_v44 = vpop.f32.mrb[36].mxu0 }
 0x611   : > { %v4592_v45 = vpop.f32.mrb[37].mxu0  ;;  %v1978_v53 = vsel %vm561_vm0, %v1834_v44, 0.0 }
 0x612   : > { %v1837_v46 = vpop.f32.mrb[38].mxu0 }
 0x613   : > { %v4593_v47 = vpop.f32.mrb[39].mxu0 }
 0x618   : > { %v1926_v48 = vpop.f32.mrb[40].mxu0 }
 0x619   : > { %v4604_v49 = vpop.f32.mrb[41].mxu0  ;;  %v1981_v58 = vsel %vm561_vm0, %v1926_v48, 0.0  ;;  %v4118_v48 = vld [vmem:[%s6048_s14] ss:$0 sm:$0xff] }
 0x61a   : > { %v1929_v50 = vpop.f32.mrb[42].mxu0 }
 0x61b   : > { %v4605_v51 = vpop.f32.mrb[43].mxu0 }
 0x620   : > { %v1880_v52 = vpop.f32.mrb[44].mxu1 }
 0x621   : > { %v1979_v54 = vsel %vm561_vm0, %v1880_v52, 0.0  ;;  %v4598_v55 = vpop.f32.mrb[45].mxu1 }
 0x622   : > { %v1980_v56 = vadd.f32 %v1979_v54, %v1978_v53  ;;  %v1883_v57 = vpop.f32.mrb[46].mxu1 }
 0x623   : > { %v4599_v59 = vpop.f32.mrb[47].mxu1 }
 0x624   : > { %v1982_v60 = vadd.f32 %v1981_v58, %v1980_v56 }
 0x628   : > { %v1972_v61 = vpop.f32.mrb[48].mxu1 }
 0x629   : > { %v1983_v63 = vsel %vm561_vm0, %v1972_v61, 0.0  ;;  %v4610_v0 = vpop.f32.mrb[49].mxu1  ;;  %v4921_v61 = vld [vmem:[%s6039_s5 + $0x100] sm:$0xff]  }
 0x62a   : > { %v1984_v40 = vadd.f32 %v1983_v63, %v1982_v60  ;;  %v1975_v1 = vpop.f32.mrb[50].mxu1  ;;  %v4920_v60 = vld [vmem:[%s6039_s5 + $0xc0] sm:$0xff]   ;;  %v4922_v63 = vld [vmem:[%s6039_s5 + $0xc8] sm:$0xff]  }
 0x62b   : > { %v4611_v3 = vpop.f32.mrb[51].mxu1  ;;  %v4923_v0 = vld [vmem:[%s6039_s5 + $0x108] sm:$0xff]  }
 0x62c   : > { %v1985_v5 = vadd.f32 %v1984_v40, %v5242_v2  ;;  %v4911_v2 = vld [vmem:[%s6045_s11 + $0x8] sm:$0xff]  }
 0x62d   : > { %4615 = vmatpush3.bf16.msra.mxu0 %v4911_v2  ;;  %v4927_v2 = vld [vmem:[%s6039_s5 + $0x128] sm:$0xff]  }
 0x62e   : > { %v5548_v7 = vadd.f32 %v4102_v4, %v1985_v5  ;;  %4640 = vmatprep.subr.bf16.mxu0 %v5085_v11  ;;  %v4121_v5 = vld [vmem:[%s6068_s3 + $0x1] ss:$0 sm:$0xff] }
 0x630   : > { %v1996_v8 = vsel %vm561_vm0, %v5548_v7, 0.0 }
 0x631   : > { %1997 = vadd.xlane.f32.xlu0 %v1996_v8  ;;  %v4122_v8 = vld [vmem:[%s6069_s4 + $0x1] ss:$0 sm:$0xff] }
 0x6be   : > { %v1998_v9 = vpop.xlane.xlu0 %1997 }
 0x6bf   : > { %v1999_v10 = vmul.f32 0.03125, %v1998_v9 }
 0x6c1   : > { %v2000_v12 = vsub.f32 %v5548_v7, %v1999_v10 }
 0x6c3   : > { %v2001_v62 = vmul.f32 %v2000_v12, %v2000_v12 }
 0x6c5   : > { %v2002_v13 = vsel %vm561_vm0, %v2001_v62, 0.0  ;;  %v4925_v62 = vld [vmem:[%s6039_s5 + $0x120] sm:$0xff]  }
 0x6c6   : > { %2003 = vadd.xlane.f32.xlu1 %v2002_v13 }
 0x753   : > { %v2004_v15 = vpop.xlane.xlu1 %2003 }
 0x754   : > { %v2005_v16 = vmul.f32 0.03125, %v2004_v15  ;;  %v4928_v15 = vld [vmem:[%s6039_s5 + $0xe0] sm:$0xff]  }
 0x756   : > { %v2006_v17 = vadd.f32 1e-05, %v2005_v16  ;;  %v4929_v16 = vld [vmem:[%s6039_s5 + $0x140] sm:$0xff]  }
 0x758   : > { %4974 = vrsqrt.f32 %v2006_v17  ;;  %v4930_v17 = vld [vmem:[%s6039_s5 + $0xe8] sm:$0xff]  }
 0x762   : > { %v4975_v18 = vpop.eup %4974 }
 0x763   : > { %v2008_v20 = vmul.f32 %v4975_v18, %v2000_v12  ;;  %v4924_v12 = vld [vmem:[%s6039_s5 + $0xd0] sm:$0xff]   ;;  %v4931_v18 = vld [vmem:[%s6039_s5 + $0x148] sm:$0xff]  }
 0x765   : > { %v2015_v22 = vmul.f32 %v4103_v19, %v2008_v20  ;;  %v4932_v19 = vld [vmem:[%s6039_s5 + $0xf0] sm:$0xff]   ;;  %v4933_v20 = vld [vmem:[%s6039_s5 + $0x160] sm:$0xff]  }
 0x767   : > { %v2022_v23 = vadd.f32 %v4104_v21, %v2015_v22  ;;  %v4934_v21 = vld [vmem:[%s6039_s5 + $0xf8] sm:$0xff]   ;;  %v4935_v22 = vld [vmem:[%s6039_s5 + $0x168] sm:$0xff]  }
 0x769   : > { %v2027_v24 = vpack.c.bf16 %v2022_v23, %v2022_v23  ;;  %v4936_v23 = vld [vmem:[%s6039_s5 + $0x110] sm:$0xff]  }
 0x76b   : > { %4617 = vmatmul.mubr.msk.bf16.vlgmr.msra.gmra.mrb[44].mxu0 %vm561_vm0, %v2027_v24  ;;  %v4937_v24 = vld [vmem:[%s6039_s5 + $0x118] sm:$0xff]  }
 0x76c   : > { %4644 = vmatprep.mubr.msk.bf16.mxu0 %vm5086_vm1, %v5085_v11  ;;  %4641 = vmatpush3.bf16.msra.mxu0 %v4920_v60  ;;  %v4185_v60 = vld [vmem:[%s6040_s6 + $0xe] ss:$0 sm:$0xff] }
 0x76d   : > { %4642 = vmatprep.subr.bf16.mxu0 %v5085_v11 }
 0x770   : > { %4643 = vmatpush3.bf16.msra.mxu0 %v4922_v63 }
 0x771   : > { %4648 = vmatprep.subr.bf16.mxu0 %v5085_v11 }
 0x83e   : > { %v2084_v34 = vpop.f32.mrb[44].mxu0 }
 0x83f   : > { %v2085_v35 = vadd.f32 %v4105_v33, %v2084_v34  ;;  %v4618_v36 = vpop.f32.mrb[45].mxu0 }
 0x840   : > { %v2087_v37 = vpop.f32.mrb[46].mxu0 }
 0x841   : > { %v4109_v38 = vmul.f32 -1.702, %v2085_v35  ;;  %v4619_v39 = vpop.f32.mrb[47].mxu0 }
 0x843   : > { %v2092_v41 = vmul.f32 1.442695, %v4109_v38 }
 0x845   : > { %4976 = vpow2.f32 %v2092_v41 }
 0x84f   : > { %v4977_v42 = vpop.eup %4976 }
 0x850   : > { %v2094_v43 = vadd.f32 1.0, %v4977_v42 }
 0x852   : > { %4978 = vrcp.f32 %v2094_v43  ;;  %v4183_v43 = vld [vmem:[%s6040_s6 + $0xc] ss:$0 sm:$0xff] }
 0x85c   : > { %v4979_v44 = vpop.eup %4978 }
 0x85d   : > { %v2097_v45 = vmul.f32 %v4979_v44, %v2085_v35 }
 0x85f   : > { %v2114_v46 = vpack.c.bf16 %v2097_v45, %v2097_v45  ;;  %v4189_v45 = vld [vmem:[%s6040_s6 + $0x12] ss:$0 sm:$0xff] }
 0x861   : > { %4637 = vmatmul.mubr.bf16.vlgmr.msra.gmra.mrb[52].mxu1 %v2114_v46 }
 0x862   : > { %4676 = vmatprep.mubr.msk.bf16.mxu1 %vm5086_vm1, %v5085_v11  ;;  %4673 = vmatpush3.bf16.msra.mxu1 %v4921_v61  ;;  %v4191_v61 = vld [vmem:[%s6040_s6 + $0x14] ss:$0 sm:$0xff] }
 0x863   : > { %4674 = vmatprep.subr.bf16.mxu1 %v5085_v11 }
 0x866   : > { %4675 = vmatpush3.bf16.msra.mxu1 %v4923_v0 }
 0x867   : > { %4688 = vmatprep.subr.bf16.mxu1 %v5085_v11 }
 0x934   : > { %v2197_v47 = vpop.f32.mrb[52].mxu1 }
 0x935   : > { %v2203_v49 = vadd.f32 %v2197_v47, %v5548_v7  ;;  %v4638_v50 = vpop.f32.mrb[53].mxu1 }
 0x936   : > { %v2200_v51 = vpop.f32.mrb[54].mxu1 }
 0x937   : > { %v5612_v52 = vadd.f32 %v4118_v48, %v2203_v49  ;;  %v4639_v53 = vpop.f32.mrb[55].mxu1 }
 0x939   : > { %v2216_v54 = vsel %vm561_vm0, %v5612_v52, 0.0 }
 0x93a   : > { %2217 = vadd.xlane.f32.xlu0 %v2216_v54 }
 0x9c7   : > { %v2218_v55 = vpop.xlane.xlu0 %2217 }
 0x9c8   : > { %v2219_v56 = vmul.f32 0.03125, %v2218_v55 }
 0x9ca   : > { %v2220_v57 = vsub.f32 %v5612_v52, %v2219_v56 }
 0x9cc   : > { %v2221_v58 = vmul.f32 %v2220_v57, %v2220_v57 }
 0x9ce   : > { %v2222_v59 = vsel %vm561_vm0, %v2221_v58, 0.0 }
 0x9cf   : > { %2223 = vadd.xlane.f32.xlu1 %v2222_v59 }
 0xa5c   : > { %v2224_v40 = vpop.xlane.xlu1 %2223 }
 0xa5d   : > { %v2225_v1 = vmul.f32 0.03125, %v2224_v40 }
 0xa5f   : > { %v2226_v3 = vadd.f32 1e-05, %v2225_v1 }
 0xa61   : > { %4980 = vrsqrt.f32 %v2226_v3 }
 0xa6b   : > { %v4981_v4 = vpop.eup %4980 }
 0xa6c   : > { %v2228_v7 = vmul.f32 %v4981_v4, %v2220_v57 }
 0xa6e   : > { %v2235_v9 = vmul.f32 %v4121_v5, %v2228_v7 }
 0xa70   : > { %v2242_v10 = vadd.f32 %v4122_v8, %v2235_v9 }
 0xa72   : > { %v5646_v13 = vpack.c.bf16 %v2242_v10, %v2242_v10 }
 0xa74   : > { %4645 = vmatmul.mubr.msk.bf16.vlgmr.msra.gmra.mrb[48].mxu0 %vm561_vm0, %v5646_v13  ;;  %4677 = vmatmul.mubr.msk.bf16.vlgmr.msra.gmra.mrb[56].mxu1 %vm561_vm0, %v5646_v13 }
 0xa75   : > { %4649 = vmatpush3.bf16.msra.mxu0 %v4924_v12  ;;  %4689 = vmatpush3.bf16.msra.mxu1 %v4925_v62 }
 0xa76   : > { %4650 = vmatprep.subr.bf16.mxu0 %v5085_v11  ;;  %4690 = vmatprep.subr.bf16.mxu1 %v5085_v11 }
 0xa77   : > { %4652 = vmatprep.mubr.msk.bf16.mxu0 %vm5086_vm1, %v5085_v11  ;;  %4692 = vmatprep.mubr.msk.bf16.mxu1 %vm5086_vm1, %v5085_v11 }
 0xa79   : > { %4651 = vmatpush3.bf16.msra.mxu0 %v4926_v14  ;;  %4691 = vmatpush3.bf16.msra.mxu1 %v4927_v2 }
 0xa7a   : > { %4656 = vmatprep.subr.bf16.mxu0 %v5085_v11  ;;  %4704 = vmatprep.subr.bf16.mxu1 %v5085_v11 }
 0xa7c   : > { %4653 = vmatmul.mubr.msk.bf16.vlgmr.msra.gmra.mrb[52].mxu0 %vm561_vm0, %v5646_v13  ;;  %4693 = vmatmul.mubr.msk.bf16.vlgmr.msra.gmra.mrb[60].mxu1 %vm561_vm0, %v5646_v13 }
 0xa7d   : > { %4657 = vmatpush3.bf16.msra.mxu0 %v4928_v15  ;;  %4705 = vmatpush3.bf16.msra.mxu1 %v4929_v16 }
 0xa7e   : > { %4658 = vmatprep.subr.bf16.mxu0 %v5085_v11  ;;  %4706 = vmatprep.subr.bf16.mxu1 %v5085_v11 }
 0xa7f   : > { %4660 = vmatprep.mubr.msk.bf16.mxu0 %vm5086_vm1, %v5085_v11  ;;  %4708 = vmatprep.mubr.msk.bf16.mxu1 %vm5086_vm1, %v5085_v11 }
 0xa81   : > { %4659 = vmatpush3.bf16.msra.mxu0 %v4930_v17  ;;  %4707 = vmatpush3.bf16.msra.mxu1 %v4931_v18 }
 0xa82   : > { %4664 = vmatprep.subr.bf16.mxu0 %v5085_v11  ;;  %4720 = vmatprep.subr.bf16.mxu1 %v5085_v11 }
 0xa84   : > { %4661 = vmatmul.mubr.msk.bf16.vlgmr.msra.gmra.mrb[56].mxu0 %vm561_vm0, %v5646_v13  ;;  %4709 = vmatmul.mubr.msk.bf16.vlgmr.msra.gmra.mrb[64].mxu1 %vm561_vm0, %v5646_v13 }
 0xa85   : > { %4665 = vmatpush3.bf16.msra.mxu0 %v4932_v19  ;;  %4721 = vmatpush3.bf16.msra.mxu1 %v4933_v20  ;;  %v4188_v20 = vld [vmem:[%s6040_s6 + $0x11] ss:$0 sm:$0xff] }
 0xa86   : > { %4666 = vmatprep.subr.bf16.mxu0 %v5085_v11  ;;  %4722 = vmatprep.subr.bf16.mxu1 %v5085_v11 }
 0xa87   : > { %4668 = vmatprep.mubr.msk.bf16.mxu0 %vm5086_vm1, %v5085_v11  ;;  %4724 = vmatprep.mubr.msk.bf16.mxu1 %vm5086_vm1, %v5085_v11 }
 0xa89   : > { %4667 = vmatpush3.bf16.msra.mxu0 %v4934_v21  ;;  %4723 = vmatpush3.bf16.msra.mxu1 %v4935_v22 }
 0xa8a   : > { %4680 = vmatprep.subr.bf16.mxu0 %v5085_v11  ;;  %4736 = vmatprep.subr.bf16.mxu1 %v5085_v11 }
 0xa8c   : > { %4669 = vmatmul.mubr.msk.bf16.vlgmr.msra.gmra.mrb[60].mxu0 %vm561_vm0, %v5646_v13  ;;  %4725 = vmatmul.mubr.msk.bf16.vlgmr.msra.gmra.mrb[68].mxu1 %vm561_vm0, %v5646_v13 }
 0xa8d   : > { %4681 = vmatpush3.bf16.msra.mxu0 %v4936_v23  ;;  %4684 = vmatprep.mubr.msk.bf16.mxu0 %vm5086_vm1, %v5085_v11 }
 0xa8e   : > { %4682 = vmatprep.subr.bf16.mxu0 %v5085_v11  ;;  %4738 = vmatprep.mubr.msk.bf16.mxu1 %vm5086_vm1, %v5085_v11 }
 0xa91   : > { %4683 = vmatpush3.bf16.msra.mxu0 %v4937_v24 }
 0xa92   : > { %4696 = vmatprep.subr.bf16.mxu0 %v5085_v11 }
 0xa94   : > { %4685 = vmatmul.mubr.msk.bf16.vlgmr.msra.gmra.mrb[64].mxu0 %vm561_vm0, %v5646_v13 }
 0xa95   : > { %4697 = vmatpush3.bf16.msra.mxu0 %v4938_v25  ;;  %4700 = vmatprep.mubr.msk.bf16.mxu0 %vm5086_vm1, %v5085_v11 }
 0xa96   : > { %4698 = vmatprep.subr.bf16.mxu0 %v5085_v11 }
 0xa99   : > { %4699 = vmatpush3.bf16.msra.mxu0 %v4939_v26 }
 0xa9a   : > { %4712 = vmatprep.subr.bf16.mxu0 %v5085_v11 }
 0xa9c   : > { %4701 = vmatmul.mubr.msk.bf16.vlgmr.msra.gmra.mrb[68].mxu0 %vm561_vm0, %v5646_v13 }
 0xa9d   : > { %4713 = vmatpush3.bf16.msra.mxu0 %v4940_v27  ;;  %4716 = vmatprep.mubr.msk.bf16.mxu0 %vm5086_vm1, %v5085_v11  ;;  %v4184_v27 = vld [vmem:[%s6040_s6 + $0xd] ss:$0 sm:$0xff] }
 0xa9e   : > { %4714 = vmatprep.subr.bf16.mxu0 %v5085_v11 }
 0xaa1   : > { %4715 = vmatpush3.bf16.msra.mxu0 %v4941_v28 }
 0xaa2   : > { %4728 = vmatprep.subr.bf16.mxu0 %v5085_v11 }
 0xaa4   : > { %4717 = vmatmul.mubr.msk.bf16.vlgmr.msra.gmra.mrb[72].mxu0 %vm561_vm0, %v5646_v13 }
 0xaa5   : > { %4729 = vmatpush3.bf16.msra.mxu0 %v4942_v29  ;;  %4732 = vmatprep.mubr.msk.bf16.mxu0 %vm5086_vm1, %v5085_v11  ;;  %v4190_v29 = vld [vmem:[%s6040_s6 + $0x13] ss:$0 sm:$0xff] }
 0xaa6   : > { %4730 = vmatprep.subr.bf16.mxu0 %v5085_v11 }
 0xaa9   : > { %4731 = vmatpush3.bf16.msra.mxu0 %v4943_v30 }
 0xaaa   : > { %4742 = vmatprep.subr.bf16.mxu0 %v5085_v11 }
 0xaac   : > { %4733 = vmatmul.mubr.msk.bf16.vlgmr.msra.gmra.mrb[76].mxu0 %vm561_vm0, %v5646_v13 }
 0xaad   : > { %4744 = vmatprep.mubr.msk.bf16.mxu0 %vm5086_vm1, %v5085_v11 }
 0xb47   : > { %v2427_v32 = vpop.f32.mrb[48].mxu0  ;;  %v2635_v33 = vpop.f32.mrb[56].mxu1 }
 0xb48   : > { %v2636_v34 = vadd.f32 %v4187_v31, %v2635_v33  ;;  %v4646_v35 = vpop.f32.mrb[49].mxu0  ;;  %v4678_v36 = vpop.f32.mrb[57].mxu1  ;;  %v2428_v46 = vadd.f32 %v4183_v43, %v2427_v32 }
 0xb49   : > { %v2430_v37 = vpop.f32.mrb[50].mxu0  ;;  %v2638_v38 = vpop.f32.mrb[58].mxu1 }
 0xb4a   : > { %v3009_v39 = vpack.c.bf16 %v2636_v34, %v2636_v34  ;;  %v4647_v41 = vpop.f32.mrb[51].mxu0  ;;  %v4679_v42 = vpop.f32.mrb[59].mxu1  ;;  %v3005_v55 = vpack.c.bf16 %v2428_v46, %v2428_v46  ;;  %v4186_v38 = vld [vmem:[%s6040_s6 + $0xf] ss:$0 sm:$0xff] }
 0xb4b   : > { %v4192_v41 = vld [vmem:[%s6040_s6 + $0x15] ss:$0 sm:$0xff] }
 0xb4c   : > { %v3017_v44 = vsel %vm1358_vm2, %v3009_v39, 0 }
 0xb4d   : > { %4737 = vmatpush3.bf16.xpose.msra.mxu1 %v3017_v44 }
 0xb4e   : > { %4748 = vmatprep.subr.bf16.mxu1 %v5085_v11 }
 0xb4f   : > { %v2479_v47 = vpop.f32.mrb[52].mxu0  ;;  %v2739_v48 = vpop.f32.mrb[60].mxu1 }
 0xb50   : > { %v2740_v49 = vadd.f32 %v4189_v45, %v2739_v48  ;;  %v4654_v50 = vpop.f32.mrb[53].mxu0  ;;  %v4694_v51 = vpop.f32.mrb[61].mxu1  ;;  %v2480_v30 = vadd.f32 %v4184_v27, %v2479_v47 }
 0xb51   : > { %v2482_v53 = vpop.f32.mrb[54].mxu0  ;;  %v2742_v54 = vpop.f32.mrb[62].mxu1 }
 0xb52   : > { %v3011_v56 = vpack.c.bf16 %v2740_v49, %v2740_v49  ;;  %v4655_v57 = vpop.f32.mrb[55].mxu0  ;;  %v4695_v58 = vpop.f32.mrb[63].mxu1  ;;  %v3006_v35 = vpack.c.bf16 %v2480_v30, %v2480_v30 }
 0xb54   : > { %v3109_v59 = vsel %vm1358_vm2, %v3011_v56, 0  ;;  %4739 = vmatmul.mubr.msk.bf16.vlgmr.msra.gmra.mrb[72].mxu1 %vm1358_vm2, %v3005_v55 }
 0xb55   : > { %4749 = vmatpush3.bf16.xpose.msra.mxu1 %v3109_v59  ;;  %4750 = vmatprep.mubr.msk.bf16.mxu1 %vm5086_vm1, %v5085_v11 }
 0xb56   : > { %4760 = vmatprep.subr.bf16.mxu1 %v5085_v11 }
 0xb57   : > { %v2531_v63 = vpop.f32.mrb[56].mxu0  ;;  %v2843_v0 = vpop.f32.mrb[64].mxu1 }
 0xb58   : > { %v2532_v40 = vadd.f32 %v4185_v60, %v2531_v63  ;;  %v2844_v1 = vadd.f32 %v4191_v61, %v2843_v0  ;;  %v4662_v3 = vpop.f32.mrb[57].mxu0  ;;  %v4710_v4 = vpop.f32.mrb[65].mxu1 }
 0xb59   : > { %v2534_v5 = vpop.f32.mrb[58].mxu0  ;;  %v2846_v7 = vpop.f32.mrb[66].mxu1 }
 0xb5a   : > { %v3007_v8 = vpack.c.bf16 %v2532_v40, %v2532_v40  ;;  %v3249_v9 = vpack.c.bf16 %v2844_v1, %v2844_v1  ;;  %v4663_v10 = vpop.f32.mrb[59].mxu0  ;;  %v4711_v12 = vpop.f32.mrb[67].mxu1 }
 0xb5c   : > { %v3257_v62 = vsel %vm1604_vm3, %v3249_v9, 0  ;;  %4751 = vmatmul.mubr.msk.bf16.vlgmr.msra.gmra.mrb[76].mxu1 %vm1358_vm2, %v3007_v8 }
 0xb5d   : > { %4761 = vmatpush3.bf16.msra.mxu1 %v3257_v62  ;;  %4762 = vmatprep.mubr.msk.bf16.mxu1 %vm5086_vm1, %v5085_v11 }
 0xb5e   : > { %4772 = vmatprep.subr.bf16.mxu1 %v5085_v11 }
 0xb5f   : > { %v2583_v13 = vpop.f32.mrb[60].mxu0  ;;  %v5797_v14 = vpop.f32.mrb[68].mxu1 }
 0xb60   : > { %v4670_v2 = vpop.f32.mrb[61].mxu0  ;;  %v4726_v15 = vpop.f32.mrb[69].mxu1  ;;  %v2584_v42 = vadd.f32 %v4186_v38, %v2583_v13  ;;  %v4193_v38 = vld [vmem:[%s6040_s6 + $0x16] ss:$0 sm:$0xff] }
 0xb61   : > { %v2586_v16 = vpop.f32.mrb[62].mxu0  ;;  %v2950_v17 = vpop.f32.mrb[70].mxu1 }
 0xb62   : > { %v4671_v18 = vpop.f32.mrb[63].mxu0  ;;  %v4727_v19 = vpop.f32.mrb[71].mxu1  ;;  %v3008_v47 = vpack.c.bf16 %v2584_v42, %v2584_v42 }
 0xb67   : > { %v2687_v21 = vpop.f32.mrb[64].mxu0 }
 0xb68   : > { %v2688_v22 = vadd.f32 %v4188_v20, %v2687_v21  ;;  %v4686_v23 = vpop.f32.mrb[65].mxu0 }
 0xb69   : > { %v2690_v24 = vpop.f32.mrb[66].mxu0 }
 0xb6a   : > { %v3010_v25 = vpack.c.bf16 %v2688_v22, %v2688_v22  ;;  %v4687_v26 = vpop.f32.mrb[67].mxu0 }
 0xb6c   : > { %v3063_v28 = vsel %vm1358_vm2, %v3010_v25, 0 }
 0xb6d   : > { %4743 = vmatpush3.bf16.xpose.msra.mxu0 %v3063_v28 }
 0xb6e   : > { %4754 = vmatprep.subr.bf16.mxu0 %v5085_v11 }
 0xb6f   : > { %v2791_v31 = vpop.f32.mrb[68].mxu0 }
 0xb70   : > { %v2792_v32 = vadd.f32 %v4190_v29, %v2791_v31  ;;  %v4702_v33 = vpop.f32.mrb[69].mxu0 }
 0xb71   : > { %v2794_v34 = vpop.f32.mrb[70].mxu0 }
 0xb72   : > { %v3012_v36 = vpack.c.bf16 %v2792_v32, %v2792_v32  ;;  %v4703_v37 = vpop.f32.mrb[71].mxu0 }
 0xb74   : > { %v3155_v39 = vsel %vm1358_vm2, %v3012_v36, 0  ;;  %4745 = vmatmul.mubr.msk.bf16.vlgmr.msra.gmra.mrb[80].mxu0 %vm1358_vm2, %v3006_v35 }
 0xb75   : > { %4755 = vmatpush3.bf16.xpose.msra.mxu0 %v3155_v39  ;;  %4756 = vmatprep.mubr.msk.bf16.mxu0 %vm5086_vm1, %v5085_v11  ;;  %v2948_v39 = vadd.f32 %v4193_v38, %v5797_v14 }
 0xb76   : > { %4766 = vmatprep.subr.bf16.mxu0 %v5085_v11 }
 0xb77   : > { %v2895_v43 = vpop.f32.mrb[72].mxu0 }
 0xb78   : > { %v2896_v44 = vadd.f32 %v4192_v41, %v2895_v43  ;;  %v4718_v45 = vpop.f32.mrb[73].mxu0  ;;  %v3251_v43 = vpack.c.bf16 %v2948_v39, %v2948_v39 }
 0xb79   : > { %v2898_v46 = vpop.f32.mrb[74].mxu0 }
 0xb7a   : > { %v3250_v48 = vpack.c.bf16 %v2896_v44, %v2896_v44  ;;  %v4719_v49 = vpop.f32.mrb[75].mxu0  ;;  %v3349_v46 = vsel %vm1604_vm3, %v3251_v43, 0 }
 0xb7c   : > { %v3303_v50 = vsel %vm1604_vm3, %v3250_v48, 0  ;;  %4757 = vmatmul.mubr.msk.bf16.vlgmr.msra.gmra.mrb[84].mxu0 %vm1358_vm2, %v3008_v47 }
 0xb7d   : > { %4767 = vmatpush3.bf16.msra.mxu0 %v3303_v50  ;;  %4768 = vmatprep.mubr.msk.bf16.mxu0 %vm5086_vm1, %v5085_v11  ;;  %v4194_v50 = vld [vmem:[%s6040_s6 + $0x17] ss:$0 sm:$0xff] }
 0xb7e   : > { %4778 = vmatprep.subr.bf16.mxu0 %v5085_v11 }
 0xb7f   : > { %v5826_v51 = vpop.f32.mrb[76].mxu0 }
 0xb80   : > { %v4734_v53 = vpop.f32.mrb[77].mxu0 }
 0xb81   : > { %v3002_v54 = vpop.f32.mrb[78].mxu0  ;;  %v3000_v53 = vadd.f32 %v4194_v50, %v5826_v51  ;;  %v4239_v51 = vld [vmem:[%s6041_s7 + $0x10] sm:$0xf]  ;;  %v4248_v50 = vld [vmem:[%s6042_s8 + $0x1] ss:$0 sm:$0xff] }
 0xb82   : > { %v4735_v55 = vpop.f32.mrb[79].mxu0 }
 0xc27   : > { %v3053_v56 = vpop.f32.mrb[72].mxu1 }
 0xc28   : > { %v3197_v57 = vsel %vm5464_vm4, -1e+30, %v3053_v56  ;;  %v4740_v58 = vpop.f32.mrb[73].mxu1  ;;  %v3252_v56 = vpack.c.bf16 %v3000_v53, %v3000_v53 }
 0xc29   : > { %v3056_v59 = vpop.f32.mrb[74].mxu1  ;;  %v3201_v60 = vsel %vm1358_vm2, %v3197_v57, -inf }
 0xc2a   : > { %3202 = vmax.xlane.f32.xlu0 %v3201_v60  ;;  %v4741_v61 = vpop.f32.mrb[75].mxu1  ;;  %v3395_v59 = vsel %vm1604_vm3, %v3252_v56, 0 }
 0xc2f   : > { %v3145_v63 = vpop.f32.mrb[76].mxu1 }
 0xc30   : > { %v3199_v0 = vsel %vm5464_vm4, -1e+30, %v3145_v63  ;;  %v4752_v40 = vpop.f32.mrb[77].mxu1 }
 0xc31   : > { %v3148_v1 = vpop.f32.mrb[78].mxu1  ;;  %v3207_v3 = vsel %vm1358_vm2, %v3199_v0, -inf  ;;  %v4240_v40 = vld [vmem:[%s6041_s7 + $0x14] sm:$0xf] }
 0xc32   : > { %3208 = vmax.xlane.f32.xlu0 %v3207_v3  ;;  %v4753_v4 = vpop.f32.mrb[79].mxu1  ;;  %v3496_v1 = vsel %vm1604_vm3, %v4240_v40, 0  ;;  %v4241_v3 = vld [vmem:[%s6041_s7 + $0x18] sm:$0xf] }
 0xc47   : > { %v3099_v5 = vpop.f32.mrb[80].mxu0 }
 0xc48   : > { %v3198_v7 = vsel %vm5464_vm4, -1e+30, %v3099_v5  ;;  %v4746_v8 = vpop.f32.mrb[81].mxu0 }
 0xc49   : > { %v3102_v9 = vpop.f32.mrb[82].mxu0  ;;  %v3204_v10 = vsel %vm1358_vm2, %v3198_v7, -inf  ;;  %v3542_v8 = vsel %vm1604_vm3, %v4241_v3, 0 }
 0xc4a   : > { %3205 = vmax.xlane.f32.xlu1 %v3204_v10  ;;  %v4747_v12 = vpop.f32.mrb[83].mxu0 }
 0xc4f   : > { %v3191_v62 = vpop.f32.mrb[84].mxu0 }
 0xc50   : > { %v3200_v13 = vsel %vm5464_vm4, -1e+30, %v3191_v62  ;;  %v4758_v2 = vpop.f32.mrb[85].mxu0 }
 0xc51   : > { %v3194_v15 = vpop.f32.mrb[86].mxu0  ;;  %v3210_v16 = vsel %vm1358_vm2, %v3200_v13, -inf }
 0xc52   : > { %3211 = vmax.xlane.f32.xlu1 %v3210_v16  ;;  %v4759_v17 = vpop.f32.mrb[87].mxu0  ;;  %v4242_v16 = vld [vmem:[%s6041_s7 + $0x1c] sm:$0xf] }
 0xcb7   : > { %v3203_v18 = vpop.xlane.xlu0 %3202 }
 0xcb8   : > { %v3213_v19 = vsub.f32 %v3197_v57, %v3203_v18 }
 0xcba   : > { %v3217_v20 = vmul.f32 1.442695, %v3213_v19 }
 0xcbc   : > { %4982 = vpow2.f32 %v3217_v20  ;;  %v3588_v20 = vsel %vm1604_vm3, %v4242_v16, 0  ;;  %v4953_v16 = vld [vmem:[%s6047_s13 + $0x78] sm:$0xff]  }
 0xcbf   : > { %v3209_v21 = vpop.xlane.xlu0 %3208 }
 0xcc0   : > { %v3215_v22 = vsub.f32 %v3199_v0, %v3209_v21  ;;  %v3450_v0 = vsel %vm1604_vm3, %v4239_v51, 0 }
 0xcc2   : > { %v3221_v23 = vmul.f32 1.442695, %v3215_v22 }
 0xcc4   : > { %4984 = vpow2.f32 %v3221_v23 }
 0xcc6   : > { %v4983_v24 = vpop.eup %4982 }
 0xcc7   : > { %v3225_v25 = vsel %vm1358_vm2, %v4983_v24, 0.0 }
 0xcc8   : > { %3226 = vadd.xlane.f32.xlu0 %v3225_v25 }
 0xcce   : > { %v4985_v6 = vpop.eup %4984 }
 0xccf   : > { %v3231_v26 = vsel %vm1358_vm2, %v4985_v6, 0.0 }
 0xcd0   : > { %3232 = vadd.xlane.f32.xlu0 %v3231_v26 }
 0xcd7   : > { %v3206_v27 = vpop.xlane.xlu1 %3205 }
 0xcd8   : > { %v3214_v28 = vsub.f32 %v3198_v7, %v3206_v27 }
 0xcda   : > { %v3219_v29 = vmul.f32 1.442695, %v3214_v28 }
 0xcdc   : > { %4986 = vpow2.f32 %v3219_v29 }
 0xcdf   : > { %v3212_v30 = vpop.xlane.xlu1 %3211 }
 0xce0   : > { %v3216_v31 = vsub.f32 %v3200_v13, %v3212_v30 }
 0xce2   : > { %v3223_v32 = vmul.f32 1.442695, %v3216_v31 }
 0xce4   : > { %4988 = vpow2.f32 %v3223_v32 }
 0xce6   : > { %v4987_v33 = vpop.eup %4986 }
 0xce7   : > { %v3228_v34 = vsel %vm1358_vm2, %v4987_v33, 0.0 }
 0xce8   : > { %3229 = vadd.xlane.f32.xlu1 %v3228_v34 }
 0xcee   : > { %v4989_v35 = vpop.eup %4988 }
 0xcef   : > { %v3234_v36 = vsel %vm1358_vm2, %v4989_v35, 0.0 }
 0xcf0   : > { %3235 = vadd.xlane.f32.xlu1 %v3234_v36 }
 0xd55   : > { %v3227_v37 = vpop.xlane.xlu0 %3226 }
 0xd56   : > { %4990 = vrcp.f32 %v3227_v37 }
 0xd5d   : > { %v3233_v41 = vpop.xlane.xlu0 %3232 }
 0xd5e   : > { %4992 = vrcp.f32 %v3233_v41 }
 0xd60   : > { %v4991_v42 = vpop.eup %4990 }
 0xd61   : > { %v3238_v44 = vmul.f32 %v4991_v42, %v4983_v24 }
 0xd63   : > { %v3245_v45 = vpack.c.bf16 %v3238_v44, %v3238_v44 }
 0xd65   : > { %4763 = vmatmul.mubr.msk.bf16.vlgmr.msra.gmra.mrb[80].mxu1 %vm1358_vm2, %v3245_v45 }
 0xd66   : > { %4773 = vmatpush3.bf16.msra.mxu1 %v3349_v46  ;;  %4774 = vmatprep.mubr.msk.bf16.mxu1 %vm5086_vm1, %v5085_v11 }
 0xd67   : > { %4784 = vmatprep.subr.bf16.mxu1 %v5085_v11 }
 0xd68   : > { %v4993_v47 = vpop.eup %4992 }
 0xd69   : > { %v3242_v48 = vmul.f32 %v4993_v47, %v4985_v6 }
 0xd6b   : > { %v3247_v49 = vpack.c.bf16 %v3242_v48, %v3242_v48 }
 0xd6d   : > { %4775 = vmatmul.mubr.msk.bf16.vlgmr.msra.gmra.mrb[84].mxu1 %vm1358_vm2, %v3247_v49 }
 0xd6e   : > { %4786 = vmatprep.mubr.msk.bf16.mxu1 %vm5086_vm1, %v5085_v11  ;;  %4785 = vmatpush3.bf16.msra.mxu1 %v3450_v0 }
 0xd6f   : > { %4796 = vmatprep.subr.bf16.mxu1 %v5085_v11 }
 0xd75   : > { %v3230_v14 = vpop.xlane.xlu1 %3229 }
 0xd76   : > { %4994 = vrcp.f32 %v3230_v14 }
 0xd7d   : > { %v3236_v54 = vpop.xlane.xlu1 %3235 }
 0xd7e   : > { %4996 = vrcp.f32 %v3236_v54 }
 0xd80   : > { %v4995_v55 = vpop.eup %4994 }
 0xd81   : > { %v3240_v57 = vmul.f32 %v4995_v55, %v4987_v33 }
 0xd83   : > { %v3246_v58 = vpack.c.bf16 %v3240_v57, %v3240_v57 }
 0xd85   : > { %4769 = vmatmul.mubr.msk.bf16.vlgmr.msra.gmra.mrb[88].mxu0 %vm1358_vm2, %v3246_v58 }
 0xd86   : > { %4779 = vmatpush3.bf16.msra.mxu0 %v3395_v59  ;;  %4780 = vmatprep.mubr.msk.bf16.mxu0 %vm5086_vm1, %v5085_v11 }
 0xd87   : > { %4790 = vmatprep.subr.bf16.mxu0 %v5085_v11 }
 0xd88   : > { %v4997_v60 = vpop.eup %4996 }
 0xd89   : > { %v3244_v61 = vmul.f32 %v4997_v60, %v4989_v35 }
 0xd8b   : > { %v3248_v63 = vpack.c.bf16 %v3244_v61, %v3244_v61  ;;  %v4944_v61 = vld [vmem:[%s6045_s11 + $0x10] sm:$0xff]  }
 0xd8d   : > { %4781 = vmatmul.mubr.msk.bf16.vlgmr.msra.gmra.mrb[92].mxu0 %vm1358_vm2, %v3248_v63 }
 0xd8e   : > { %4792 = vmatprep.mubr.msk.bf16.mxu0 %vm5086_vm1, %v5085_v11  ;;  %4791 = vmatpush3.bf16.msra.mxu0 %v3496_v1  ;;  %v4251_v1 = vld [vmem:[%s6043_s9 + $0x1] ss:$0 sm:$0xff] }
 0xd8f   : > { %4802 = vmatprep.subr.bf16.mxu0 %v5085_v11 }
 0xe38   : > { %v3293_v4 = vpop.f32.mrb[80].mxu1 }
 0xe39   : > { %v3437_v5 = vpack.c.bf16 %v3293_v4, %v3293_v4  ;;  %v4764_v7 = vpop.f32.mrb[81].mxu1  ;;  %v4252_v4 = vld [vmem:[%s6044_s10 + $0x1] ss:$0 sm:$0xff] }
 0xe3a   : > { %v3296_v9 = vpop.f32.mrb[82].mxu1 }
 0xe3b   : > { %v4765_v10 = vpop.f32.mrb[83].mxu1  ;;  %4787 = vmatmul.mubr.msk.bf16.vlgmr.msra.gmra.mrb[88].mxu1 %vm1358_vm2, %v3437_v5  ;;  %v4946_v9 = vld [vmem:[%s6047_s13 + $0x40] sm:$0xff]  }
 0xe3c   : > { %4797 = vmatpush3.bf16.msra.mxu1 %v3542_v8  ;;  %4798 = vmatprep.mubr.msk.bf16.mxu1 %vm5086_vm1, %v5085_v11  ;;  %v4947_v10 = vld [vmem:[%s6047_s13 + $0x48] sm:$0xff]  }
 0xe3d   : > { %4808 = vmatprep.subr.bf16.mxu1 %v5085_v11 }
 0xe40   : > { %v3385_v12 = vpop.f32.mrb[84].mxu1 }
 0xe41   : > { %v3439_v62 = vpack.c.bf16 %v3385_v12, %v3385_v12  ;;  %v4776_v13 = vpop.f32.mrb[85].mxu1  ;;  %v4948_v12 = vld [vmem:[%s6047_s13 + $0x50] sm:$0xff]  }
 0xe42   : > { %v3388_v2 = vpop.f32.mrb[86].mxu1  ;;  %v4950_v13 = vld [vmem:[%s6047_s13 + $0x60] sm:$0xff]  }
 0xe43   : > { %v4777_v15 = vpop.f32.mrb[87].mxu1  ;;  %4799 = vmatmul.mubr.msk.bf16.vlgmr.msra.gmra.mrb[92].mxu1 %vm1358_vm2, %v3439_v62  ;;  %v4949_v62 = vld [vmem:[%s6047_s13 + $0x58] sm:$0xff]   ;;  %v4951_v2 = vld [vmem:[%s6047_s13 + $0x68] sm:$0xff]  }
 0xe44   : > { %4812 = vmatprep.mubr.msk.bf16.mxu1 %vm5086_vm1, %v5085_v11  ;;  %4809 = vmatpush3.bf16.msra.mxu1 %v4944_v61  ;;  %v4952_v15 = vld [vmem:[%s6047_s13 + $0x70] sm:$0xff]  }
 0xe45   : > { %4810 = vmatprep.subr.bf16.mxu1 %v5085_v11 }
 0xe58   : > { %v3339_v17 = vpop.f32.mrb[88].mxu0 }
 0xe59   : > { %v3438_v18 = vpack.c.bf16 %v3339_v17, %v3339_v17  ;;  %v4770_v19 = vpop.f32.mrb[89].mxu0  ;;  %v4258_v17 = vld [vmem:[%s6072_s29 + $0x1] ss:$0 sm:$0xff] }
 0xe5a   : > { %v3342_v21 = vpop.f32.mrb[90].mxu0 }
 0xe5b   : > { %v4771_v22 = vpop.f32.mrb[91].mxu0  ;;  %4793 = vmatmul.mubr.msk.bf16.vlgmr.msra.gmra.mrb[96].mxu0 %vm1358_vm2, %v3438_v18 }
 0xe5c   : > { %4803 = vmatpush3.bf16.msra.mxu0 %v3588_v20  ;;  %4804 = vmatprep.mubr.msk.bf16.mxu0 %vm5086_vm1, %v5085_v11 }
 0xe5d   : > { %4816 = vmatprep.subr.bf16.mxu0 %v5085_v11 }
 0xe60   : > { %v3431_v23 = vpop.f32.mrb[92].mxu0 }
 0xe61   : > { %v3440_v24 = vpack.c.bf16 %v3431_v23, %v3431_v23  ;;  %v4782_v25 = vpop.f32.mrb[93].mxu0 }
 0xe62   : > { %v3434_v6 = vpop.f32.mrb[94].mxu0 }
 0xe63   : > { %v4783_v26 = vpop.f32.mrb[95].mxu0  ;;  %4805 = vmatmul.mubr.msk.bf16.vlgmr.msra.gmra.mrb[100].mxu0 %vm1358_vm2, %v3440_v24 }
 0xe64   : > { %4832 = vmatprep.mubr.msk.bf16.mxu0 %vm5086_vm1, %v5085_v11  ;;  %4817 = vmatpush3.bf16.msra.mxu0 %v4946_v9 }
 0xe65   : > { %4818 = vmatprep.subr.bf16.mxu0 %v5085_v11 }
 0xe68   : > { %4819 = vmatpush3.bf16.msra.mxu0 %v4947_v10 }
 0xe69   : > { %4820 = vmatprep.subr.bf16.mxu0 %v5085_v11 }
 0xe6c   : > { %4821 = vmatpush3.bf16.msra.mxu0 %v4948_v12 }
 0xe6d   : > { %4822 = vmatprep.subr.bf16.mxu0 %v5085_v11 }
 0xe70   : > { %4823 = vmatpush3.bf16.msra.mxu0 %v4949_v62 }
 0xe71   : > { %4824 = vmatprep.subr.bf16.mxu0 %v5085_v11 }
 0xe74   : > { %4825 = vmatpush3.bf16.msra.mxu0 %v4950_v13 }
 0xe75   : > { %4826 = vmatprep.subr.bf16.mxu0 %v5085_v11 }
 0xe78   : > { %4827 = vmatpush3.bf16.msra.mxu0 %v4951_v2 }
 0xe79   : > { %4828 = vmatprep.subr.bf16.mxu0 %v5085_v11 }
 0xe7c   : > { %4829 = vmatpush3.bf16.msra.mxu0 %v4952_v15 }
 0xe7d   : > { %4830 = vmatprep.subr.bf16.mxu0 %v5085_v11 }
 0xe80   : > { %4831 = vmatpush3.bf16.msra.mxu0 %v4953_v16 }
 0xf0e   : > { %v3486_v27 = vpop.f32.mrb[88].mxu1 }
 0xf0f   : > { %v4788_v28 = vpop.f32.mrb[89].mxu1  ;;  %v3630_v36 = vsel %vm561_vm0, %v3486_v27, 0.0 }
 0xf10   : > { %v3489_v29 = vpop.f32.mrb[90].mxu1 }
 0xf11   : > { %v4789_v30 = vpop.f32.mrb[91].mxu1 }
 0xf12   : > { %v4288_v30 = vld [vmem:[%s6048_s14 + $0x1] ss:$0 sm:$0xff] }
 0xf16   : > { %v3578_v31 = vpop.f32.mrb[92].mxu1 }
 0xf17   : > { %v4800_v32 = vpop.f32.mrb[93].mxu1  ;;  %v3633_v42 = vsel %vm561_vm0, %v3578_v31, 0.0 }
 0xf18   : > { %v3581_v33 = vpop.f32.mrb[94].mxu1 }
 0xf19   : > { %v4801_v34 = vpop.f32.mrb[95].mxu1 }
 0xf2e   : > { %v3532_v35 = vpop.f32.mrb[96].mxu0 }
 0xf2f   : > { %v3631_v37 = vsel %vm561_vm0, %v3532_v35, 0.0  ;;  %v4794_v38 = vpop.f32.mrb[97].mxu0 }
 0xf30   : > { %v3632_v39 = vadd.f32 %v3631_v37, %v3630_v36  ;;  %v3535_v41 = vpop.f32.mrb[98].mxu0 }
 0xf31   : > { %v4795_v43 = vpop.f32.mrb[99].mxu0 }
 0xf32   : > { %v3634_v44 = vadd.f32 %v3633_v42, %v3632_v39  ;;  %v4954_v43 = vld [vmem:[%s6051_s17] sm:$0xff]  }
 0xf36   : > { %v3624_v45 = vpop.f32.mrb[100].mxu0 }
 0xf37   : > { %v3635_v46 = vsel %vm561_vm0, %v3624_v45, 0.0  ;;  %v4806_v47 = vpop.f32.mrb[101].mxu0 }
 0xf38   : > { %v3636_v48 = vadd.f32 %v3635_v46, %v3634_v44  ;;  %v3627_v49 = vpop.f32.mrb[102].mxu0  ;;  %v4955_v44 = vld [vmem:[%s6051_s17 + $0x8] sm:$0xff]  }
 0xf39   : > { %v4807_v14 = vpop.f32.mrb[103].mxu0  ;;  %v4289_v49 = vld [vmem:[%s6049_s15] ss:$0 sm:$0xff] }
 0xf3a   : > { %v3637_v53 = vadd.f32 %v3636_v48, %v5612_v52  ;;  %v4945_v52 = vld [vmem:[%s6045_s11 + $0x18] sm:$0xff]  }
 0xf3b   : > { %4811 = vmatpush3.bf16.msra.mxu1 %v4945_v52 }
 0xf3c   : > { %v5908_v54 = vadd.f32 %v4248_v50, %v3637_v53  ;;  %4836 = vmatprep.subr.bf16.mxu1 %v5085_v11  ;;  %v4290_v50 = vld [vmem:[%s6050_s16] ss:$0 sm:$0xff] }
 0xf3e   : > { %v3651_v55 = vsel %vm561_vm0, %v5908_v54, 0.0 }
 0xf3f   : > { %3652 = vadd.xlane.f32.xlu0 %v3651_v55 }
 0xfcc   : > { %v3653_v56 = vpop.xlane.xlu0 %3652 }
 0xfcd   : > { %v3654_v57 = vmul.f32 0.03125, %v3653_v56 }
 0xfcf   : > { %v3655_v58 = vsub.f32 %v5908_v54, %v3654_v57 }
 0xfd1   : > { %v3656_v59 = vmul.f32 %v3655_v58, %v3655_v58 }
 0xfd3   : > { %v3657_v60 = vsel %vm561_vm0, %v3656_v59, 0.0 }
 0xfd4   : > { %3658 = vadd.xlane.f32.xlu1 %v3657_v60 }
0x1061   : > { %v3659_v63 = vpop.xlane.xlu1 %3658 }
0x1062   : > { %v3660_v51 = vmul.f32 0.03125, %v3659_v63 }
0x1064   : > { %v3661_v0 = vadd.f32 1e-05, %v3660_v51 }
0x1066   : > { %4998 = vrsqrt.f32 %v3661_v0 }
0x1070   : > { %v4999_v40 = vpop.eup %4998 }
0x1071   : > { %v3663_v3 = vmul.f32 %v4999_v40, %v3655_v58 }
0x1073   : > { %v3670_v5 = vmul.f32 %v4251_v1, %v3663_v3 }
0x1075   : > { %v3677_v7 = vadd.f32 %v4252_v4, %v3670_v5 }
0x1077   : > { %v3683_v8 = vpack.c.bf16 %v3677_v7, %v3677_v7 }
0x1079   : > { %4813 = vmatmul.mubr.msk.bf16.vlgmr.msra.gmra.mrb[96].mxu1 %vm561_vm0, %v3683_v8 }
0x107a   : > { %4840 = vmatprep.mubr.msk.bf16.mxu1 %vm5086_vm1, %v5085_v11  ;;  %4837 = vmatpush3.bf16.msra.mxu1 %v4954_v43 }
0x107b   : > { %4838 = vmatprep.subr.bf16.mxu1 %v5085_v11 }
0x107e   : > { %4839 = vmatpush3.bf16.msra.mxu1 %v4955_v44 }
0x114c   : > { %v3741_v18 = vpop.f32.mrb[96].mxu1 }
0x114d   : > { %v3742_v19 = vadd.f32 %v4258_v17, %v3741_v18  ;;  %v4814_v20 = vpop.f32.mrb[97].mxu1 }
0x114e   : > { %v3744_v21 = vpop.f32.mrb[98].mxu1 }
0x114f   : > { %v4262_v22 = vmul.f32 -1.702, %v3742_v19  ;;  %v4815_v23 = vpop.f32.mrb[99].mxu1 }
0x1151   : > { %v3749_v24 = vmul.f32 1.442695, %v4262_v22 }
0x1153   : > { %5000 = vpow2.f32 %v3749_v24 }
0x115d   : > { %v5001_v25 = vpop.eup %5000 }
0x115e   : > { %v3751_v6 = vadd.f32 1.0, %v5001_v25 }
0x1160   : > { %5002 = vrcp.f32 %v3751_v6 }
0x116a   : > { %v5003_v26 = vpop.eup %5002 }
0x116b   : > { %v3754_v27 = vmul.f32 %v5003_v26, %v3742_v19 }
0x116d   : > { %v3772_v28 = vpack.c.bf16 %v3754_v27, %v3754_v27 }
0x116f   : > { %4833 = vmatmul.mubr.bf16.vlgmr.msra.gmra.mrb[104].mxu0 %v3772_v28 }
0x1242   : > { %v3855_v29 = vpop.f32.mrb[104].mxu0 }
0x1243   : > { %v3861_v31 = vadd.f32 %v3855_v29, %v5908_v54  ;;  %v4834_v32 = vpop.f32.mrb[105].mxu0 }
0x1244   : > { %v3858_v33 = vpop.f32.mrb[106].mxu0 }
0x1245   : > { %v4835_v34 = vpop.f32.mrb[107].mxu0  ;;  %v3870_v35 = vadd.f32 %v4288_v30, %v3861_v31 }
0x1247   : > { %v3873_v36 = vsel %vm561_vm0, %v3870_v35, 0.0 }
0x1248   : > { %3874 = vadd.xlane.f32.xlu0 %v3873_v36 }
0x12d5   : > { %v3875_v37 = vpop.xlane.xlu0 %3874 }
0x12d6   : > { %v3876_v38 = vmul.f32 0.03125, %v3875_v37 }
0x12d8   : > { %v3877_v39 = vsub.f32 %v3870_v35, %v3876_v38 }
0x12da   : > { %v3878_v41 = vmul.f32 %v3877_v39, %v3877_v39 }
0x12dc   : > { %v3879_v42 = vsel %vm561_vm0, %v3878_v41, 0.0 }
0x12dd   : > { %3880 = vadd.xlane.f32.xlu1 %v3879_v42 }
0x136a   : > { %v3881_v45 = vpop.xlane.xlu1 %3880 }
0x136b   : > { %v3882_v46 = vmul.f32 0.03125, %v3881_v45 }
0x136d   : > { %v3883_v47 = vadd.f32 1e-05, %v3882_v46 }
0x136f   : > { %5004 = vrsqrt.f32 %v3883_v47 }
0x1379   : > { %v5005_v48 = vpop.eup %5004 }
0x137a   : > { %v3885_v14 = vmul.f32 %v5005_v48, %v3877_v39 }
0x137c   : > { %v3892_v53 = vmul.f32 %v4289_v49, %v3885_v14 }
0x137e   : > { %v3899_v11 = vadd.f32 %v4290_v50, %v3892_v53 }
0x1380   : > { %3900 = vst.msk [vmem:[#allocation2] sm:$0xff] %vm561_vm0, %v3899_v11 }
0x1387   : > { %v3903_v54 = vld [vmem:[%s3902_s30] sm:$0x1]  ;;  %s5022_s30 = sshll.u32 %s5087_s12, 4  ;;  %s5023_s30 = int_to_ptr.vmem [resolvable:$false] %s5022_s30 }
0x1388   : > { %v3908_v55 = vpack.c.bf16 %v3903_v54, %v3903_v54  ;;  %s5024_s3 = scalar_lea.vmem %s5023_s30, 32  ;;  %p5025_p5 = scmp.lt.s32.totalorder %s5994_s22, %s5023_s30 }
0x1389   : > { %p5026_p6 = scmp.lt.s32.totalorder %s5024_s3, %s5018_s28 }
0x138a   : > { %4841 = vmatmul.mubr.msk.bf16.vlgmr.msra.gmra.mrb[100].mxu1 %vm561_vm0, %v3908_v55 }
0x138b   : > { %p5027_p7 = por %p5026_p6, %p5025_p5 }
0x138d   : > { %p5028_p8 = pnand %p5027_p7, %p5021_p4 }
0x145d   : > { %v3958_v56 = vpop.f32.mrb[100].mxu1 }
0x145e   : > { %3965 = vst.msk [vmem:[%s545_s0] sm:$0x1] %vm3964_vm5, %v3958_v56  ;;  %v4842_v57 = vpop.f32.mrb[101].mxu1 }
0x145f   : > { %v3961_v58 = vpop.f32.mrb[102].mxu1 }
0x1460   : > { %5031 = shalt.err (!%p5028_p8)
}
0x1461   : > { %s5032_s4 = scalar_lea.hbm %s5992_s23, 16  ;;  %s5036_s0 = scalar_lea.hbm %s6052_s18, 32 }
0x1462   : > { %p5033_p9 = scmp.ne.s32.totalorder %s5992_s23, %s5032_s4  ;;  %p5037_p0 = scmp.lt.u32.totalorder %s5992_s23, %s6052_s18 }
0x1463   : > { %p5038_p1 = scmp.lt.u32.totalorder %s5036_s0, %s5032_s4  ;;  %p5040_p3 = scmp.lt.u32.totalorder %s5032_s4, %s5992_s23 }
0x1464   : > { %p5034_p12 = pnand %p5033_p9, %p5224_p10 }
0x1465   : > { %p5039_p2 = por %p5038_p1, %p5037_p0 }
0x1466   : > { %p5035_p13 = pneg %p5034_p12 }
0x1467   : > { %p5041_p4 = por %p5040_p3, %p5039_p2 }
0x1469   : > { %p5042_p5 = pnand %p5041_p4, %p5035_p13 }
0x146b   : > { %5045 = shalt.err (!%p5042_p5)
}
0x146c   : > { %4844 = dma.vmem_to_hbm [thread:$0]  (%p5224_p10), %s5994_s22, 16, %s5992_s23, %s3967_s24   ;;  %v4843_v59 = vpop.f32.mrb[103].mxu1 }
0x146d PF: > { %p4850_p6 = scmp.ge.s32.totalorder %s5082_s21, 2  ;;  %s3991_s28 = sand.u32 1, %s5070_s19  }
0x146e   : > { %s3992_s3 = scalar_lea.sflag [#allocation6], %s3991_s28 }
0x146f   : > { %p4847_p7 = pnand %p4850_p6, %p5228_p11 }
0x1471   : > { %5065 = dma.done.wait (!%p4847_p7), %s3992_s3, 16  }
0x1472   : > { %5067 = vsyncadd (!%p4847_p7), %s3992_s3, 4294967280  ;;  %s6073_s4 = sld [smem:[#allocation9_spill]]  ;;  %s6074_s20 = sld [smem:[#allocation10_spill]] }
0x1473   : > { %p34_p8 = scmp.ge.s32.totalorder %s5211_s2, 4   ;;  %s6075_s19 = smov %s5074_s1 }
0x1474   : > { %s6077_s21 = smov %s5211_s2 }
0x1475   :  { %36 = sbr.rel (!%p34_p8) target bundleno = 25 (0x19), region = 136 }
0x1478   : > { %s6076_s1 = smov %s6073_s4 }
0x147c   :  { %3996 = vsyncpa [#allocation6], 1 }
0x147d   :  { %3998 = vsyncpa [#allocation6 + $0x1], 1 }

</bundles_post_ra>
